<compile_context>
chip_gen: v5e
topology: v5e:2x2
jax: 0.10.0
libtpu: 0.0.40
codegen_flags: <defaults>
</compile_context>

<pallas_src>
import jax
import jax.numpy as jnp
from jax.experimental import pallas as pl
from jax.experimental.pallas import tpu as pltpu


def _round_up(x, m):
    return (x + m - 1) // m * m


def ffn_kernel(x_ref, w1_ref, b1_ref, w2_ref, b2_ref, gamma_ref, beta_ref, o_ref):
    # x_ref: (tm, d_in) tile of tokens (f32). Weights arrive already cast (bf16 by default);
    # both dots request f32 accumulation on the MXU. Residual + LayerNorm are f32.
    x = x_ref[...].astype(jnp.float32)

    # Linear 1 (d_in -> d_hid) + ReLU.
    h = jnp.dot(x.astype(w1_ref.dtype), w1_ref[...],
                preferred_element_type=jnp.float32) + b1_ref[...]
    h = jnp.maximum(h, 0.0)

    # Linear 2 (d_hid -> d_in), dropout == identity (eval mode), residual add.
    y = jnp.dot(h.astype(w2_ref.dtype), w2_ref[...],
                preferred_element_type=jnp.float32) + b2_ref[...]
    y = y + x

    # LayerNorm over features: one-pass stats (sum, sum of squares), biased variance, eps=1e-6.
    d = y.shape[-1]
    s1 = jnp.sum(y, axis=-1, keepdims=True)
    s2 = jnp.sum(y * y, axis=-1, keepdims=True)
    mean = s1 * (1.0 / d)
    var = jnp.maximum(s2 * (1.0 / d) - mean * mean, 0.0)
    inv = jax.lax.rsqrt(var + 1e-6)
    o_ref[...] = ((y - mean) * inv * gamma_ref[...] + beta_ref[...]).astype(o_ref.dtype)


def _build_ffn_call(rows_p, d_in, d_hid, tm, out_dtype, single_buffer_weights):
    # Grid-invariant operands (index_map always (0,0)): request a single VMEM buffer.
    const_mode = pl.Buffered(1) if single_buffer_weights else None

    def const_spec(shape):
        return pl.BlockSpec(shape, lambda i: (0, 0), pipeline_mode=const_mode)

    return pl.pallas_call(
        ffn_kernel,
        out_shape=jax.ShapeDtypeStruct((rows_p, d_in), out_dtype),
        grid_spec=pltpu.PrefetchScalarGridSpec(
            num_scalar_prefetch=0,
            grid=(rows_p // tm,),
            in_specs=[
                pl.BlockSpec((tm, d_in), lambda i: (i, 0)),  # x tile (pipelined / double-buffered)
                const_spec((d_in, d_hid)),                   # w1 (full, grid-invariant)
                const_spec((1, d_hid)),                      # b1
                const_spec((d_hid, d_in)),                   # w2 (full, grid-invariant)
                const_spec((1, d_in)),                       # b2
                const_spec((1, d_in)),                       # layernorm gamma
                const_spec((1, d_in)),                       # layernorm beta
            ],
            out_specs=pl.BlockSpec((tm, d_in), lambda i: (i, 0)),
        ),
        compiler_params=pltpu.CompilerParams(
            dimension_semantics=("parallel",),
            vmem_limit_bytes=64 * 1024 * 1024,
        ),
    )


def positionwise_feed_forward(x, w1, b1, w2, b2, gamma, beta, *, tm=256,
                              matmul_dtype=jnp.bfloat16):
    """x: (B, S, d_in). Returns LayerNorm(x + W2 relu(W1 x + b1) + b2), shape (B, S, d_in)."""
    B, S, d_in = x.shape
    d_hid = w1.shape[1]
    rows = B * S

    # Row tile: as large as requested (amortizes per-step overhead, fills the MXU M dim),
    # but never larger than the 8-aligned row count; pad rows so the grid divides evenly.
    tm = _round_up(max(8, min(tm, _round_up(rows, 8))), 8)
    rows_p = _round_up(rows, tm)

    x2 = x.reshape(rows, d_in)
    if rows_p != rows:
        x2 = jnp.pad(x2, ((0, rows_p - rows), (0, 0)))

    # MXU operands in bf16 (default); LayerNorm / bias params stay f32.
    args = (
        x2,
        w1.astype(matmul_dtype),
        b1.reshape(1, d_hid).astype(jnp.float32),
        w2.astype(matmul_dtype),
        b2.reshape(1, d_in).astype(jnp.float32),
        gamma.reshape(1, d_in).astype(jnp.float32),
        beta.reshape(1, d_in).astype(jnp.float32),
    )

    try:
        out = _build_ffn_call(rows_p, d_in, d_hid, tm, x.dtype, True)(*args)
        out = jax.block_until_ready(out)
    except Exception:
        # Pallas version without per-BlockSpec pipeline_mode: default double-buffering.
        out = _build_ffn_call(rows_p, d_in, d_hid, tm, x.dtype, False)(*args)
        out = jax.block_until_ready(out)

    return out[:rows].reshape(B, S, d_in)


def reference(x, w1, b1, w2, b2, gamma, beta, *, matmul_dtype=jnp.float32):
    """Pure-JAX reference; matmul_dtype=bfloat16 mimics the kernel's MXU operand precision."""
    xm = x.astype(matmul_dtype)
    h = jnp.dot(xm, w1.astype(matmul_dtype), preferred_element_type=jnp.float32) + b1
    h = jnp.maximum(h, 0.0)
    y = jnp.dot(h.astype(matmul_dtype), w2.astype(matmul_dtype),
                preferred_element_type=jnp.float32) + b2 + x
    mean = jnp.mean(y, axis=-1, keepdims=True)
    var = jnp.mean((y - mean) ** 2, axis=-1, keepdims=True)
    return (y - mean) / jnp.sqrt(var + 1e-6) * gamma + beta


if __name__ == "__main__":
    # Small shapes, but lane-dense feature axis (d_in multiple of 128) per perf feedback.
    B, S, d_in, d_hid = 2, 80, 128, 256   # rows = 160

    key = jax.random.PRNGKey(0)
    kx, k1, k2, kb1, kb2 = jax.random.split(key, 5)

    x = jax.random.normal(kx, (B, S, d_in), dtype=jnp.float32)

    # Deterministic "synthetic" parameters (shapes match nn.Linear / nn.LayerNorm).
    bound1 = 1.0 / jnp.sqrt(d_in)
    bound2 = 1.0 / jnp.sqrt(d_hid)
    w1 = jax.random.uniform(k1, (d_in, d_hid), jnp.float32, -bound1, bound1)
    b1 = jax.random.uniform(kb1, (d_hid,), jnp.float32, -bound1, bound1)
    w2 = jax.random.uniform(k2, (d_hid, d_in), jnp.float32, -bound2, bound2)
    b2 = jax.random.uniform(kb2, (d_in,), jnp.float32, -bound2, bound2)
    gamma = jnp.ones((d_in,), jnp.float32)   # LayerNorm weight init
    beta = jnp.zeros((d_in,), jnp.float32)   # LayerNorm bias init

    # Default path: rows=160 < tm=256, so a single 160-row step.
    out = jax.block_until_ready(
        positionwise_feed_forward(x, w1, b1, w2, b2, gamma, beta))
    # Also exercise the multi-step + padded-rows path: 160 rows -> padded to 256, 2 steps of 128.
    out_tiled = jax.block_until_ready(
        positionwise_feed_forward(x, w1, b1, w2, b2, gamma, beta, tm=128))

    assert out.shape == (B, S, d_in)
    assert out_tiled.shape == (B, S, d_in)

    # Precision-matched check (reference uses the same bf16 MXU operands as the kernel).
    ref_bf16 = reference(x, w1, b1, w2, b2, gamma, beta, matmul_dtype=jnp.bfloat16)
    assert jnp.allclose(out, ref_bf16, atol=1e-4, rtol=1e-4), "mismatch vs bf16-matched reference"
    assert jnp.allclose(out_tiled, ref_bf16, atol=1e-4, rtol=1e-4), "tiled path mismatch"

    # Semantic check against the full-f32 PyTorch-equivalent forward (bf16 rounding tolerance).
    ref_f32 = reference(x, w1, b1, w2, b2, gamma, beta, matmul_dtype=jnp.float32)
    assert jnp.allclose(out, ref_f32, atol=2e-2, rtol=2e-2), "mismatch vs f32 reference"

    print("KERNEL_OK")
</pallas_src>

<mosaic_0001>
module attributes {stable_mosaic.version = 11 : i64} {
  func.func @ffn_kernel(%arg0: i32, %arg1: memref<160x128xf32, #tpu.memory_space<vmem>>, %arg2: memref<128x256xbf16, #tpu.memory_space<vmem>>, %arg3: memref<1x256xf32, #tpu.memory_space<vmem>>, %arg4: memref<256x128xbf16, #tpu.memory_space<vmem>>, %arg5: memref<1x128xf32, #tpu.memory_space<vmem>>, %arg6: memref<1x128xf32, #tpu.memory_space<vmem>>, %arg7: memref<1x128xf32, #tpu.memory_space<vmem>>, %arg8: memref<160x128xf32, #tpu.memory_space<vmem>>) attributes {dimension_semantics = [#tpu.dimension_semantics<parallel>], iteration_bounds = array<i64: 1>, scalar_prefetch = 0 : i64, scratch_operands = 0 : i64, tpu.core_type = #tpu.core_type<tc>, window_params = [{transform_indices = @transform_0, window_bounds = array<i64: 160, 128>}, {pipeline_mode = #tpu.pipeline_mode<synchronous>, transform_indices = @transform_1, window_bounds = array<i64: 128, 256>}, {pipeline_mode = #tpu.pipeline_mode<synchronous>, transform_indices = @transform_2, window_bounds = array<i64: 1, 256>}, {pipeline_mode = #tpu.pipeline_mode<synchronous>, transform_indices = @transform_3, window_bounds = array<i64: 256, 128>}, {pipeline_mode = #tpu.pipeline_mode<synchronous>, transform_indices = @transform_4, window_bounds = array<i64: 1, 128>}, {pipeline_mode = #tpu.pipeline_mode<synchronous>, transform_indices = @transform_5, window_bounds = array<i64: 1, 128>}, {pipeline_mode = #tpu.pipeline_mode<synchronous>, transform_indices = @transform_6, window_bounds = array<i64: 1, 128>}, {transform_indices = @transform_7, window_bounds = array<i64: 160, 128>}]} {
    %c0 = arith.constant 0 : index
    %c0_0 = arith.constant 0 : index
    %0 = vector.load %arg1[%c0, %c0_0] : memref<160x128xf32, #tpu.memory_space<vmem>>, vector<160x128xf32>
    %1 = arith.truncf %0 : vector<160x128xf32> to vector<160x128xbf16>
    %c0_1 = arith.constant 0 : index
    %c0_2 = arith.constant 0 : index
    %2 = vector.load %arg2[%c0_1, %c0_2] : memref<128x256xbf16, #tpu.memory_space<vmem>>, vector<128x256xbf16>
    %cst = arith.constant dense<0.000000e+00> : vector<160x256xf32>
    %3 = tpu.matmul %1, %2, %cst {dimension_numbers = #tpu.dot_dimension_numbers<[1], [0], [0], [1], [0, 0, 1, 1], [], []>} : vector<160x128xbf16>, vector<128x256xbf16>, vector<160x256xf32> -> vector<160x256xf32>
    %c0_3 = arith.constant 0 : index
    %c0_4 = arith.constant 0 : index
    %4 = vector.load %arg3[%c0_3, %c0_4] : memref<1x256xf32, #tpu.memory_space<vmem>>, vector<1x256xf32>
    %5 = vector.broadcast %4 : vector<1x256xf32> to vector<160x256xf32>
    %6 = arith.addf %3, %5 : vector<160x256xf32>
    %cst_5 = arith.constant 0.000000e+00 : f32
    %7 = vector.broadcast %cst_5 : f32 to vector<160x256xf32>
    %8 = arith.maximumf %6, %7 : vector<160x256xf32>
    %9 = arith.truncf %8 : vector<160x256xf32> to vector<160x256xbf16>
    %c0_6 = arith.constant 0 : index
    %c0_7 = arith.constant 0 : index
    %10 = vector.load %arg4[%c0_6, %c0_7] : memref<256x128xbf16, #tpu.memory_space<vmem>>, vector<256x128xbf16>
    %cst_8 = arith.constant dense<0.000000e+00> : vector<160x128xf32>
    %11 = tpu.matmul %9, %10, %cst_8 {dimension_numbers = #tpu.dot_dimension_numbers<[1], [0], [0], [1], [0, 0, 1, 1], [], []>} : vector<160x256xbf16>, vector<256x128xbf16>, vector<160x128xf32> -> vector<160x128xf32>
    %c0_9 = arith.constant 0 : index
    %c0_10 = arith.constant 0 : index
    %12 = vector.load %arg5[%c0_9, %c0_10] : memref<1x128xf32, #tpu.memory_space<vmem>>, vector<1x128xf32>
    %13 = vector.broadcast %12 : vector<1x128xf32> to vector<160x128xf32>
    %14 = arith.addf %11, %13 : vector<160x128xf32>
    %15 = arith.addf %14, %0 : vector<160x128xf32>
    %cst_11 = arith.constant dense<0.000000e+00> : vector<160xf32>
    %16 = vector.multi_reduction <add>, %15, %cst_11 [1] : vector<160x128xf32> to vector<160xf32>
    %17 = vector.shape_cast %16 : vector<160xf32> to vector<160x1xf32>
    %18 = arith.mulf %15, %15 : vector<160x128xf32>
    %cst_12 = arith.constant dense<0.000000e+00> : vector<160xf32>
    %19 = vector.multi_reduction <add>, %18, %cst_12 [1] : vector<160x128xf32> to vector<160xf32>
    %20 = vector.shape_cast %19 : vector<160xf32> to vector<160x1xf32>
    %cst_13 = arith.constant 7.812500e-03 : f32
    %21 = vector.broadcast %cst_13 : f32 to vector<160x1xf32>
    %22 = arith.mulf %17, %21 : vector<160x1xf32>
    %cst_14 = arith.constant 7.812500e-03 : f32
    %23 = vector.broadcast %cst_14 : f32 to vector<160x1xf32>
    %24 = arith.mulf %20, %23 : vector<160x1xf32>
    %25 = arith.mulf %22, %22 : vector<160x1xf32>
    %26 = arith.subf %24, %25 : vector<160x1xf32>
    %cst_15 = arith.constant 0.000000e+00 : f32
    %27 = vector.broadcast %cst_15 : f32 to vector<160x1xf32>
    %28 = arith.maximumf %26, %27 : vector<160x1xf32>
    %cst_16 = arith.constant 9.99999997E-7 : f32
    %29 = vector.broadcast %cst_16 : f32 to vector<160x1xf32>
    %30 = arith.addf %28, %29 : vector<160x1xf32>
    %31 = math.rsqrt %30 : vector<160x1xf32>
    %32 = vector.broadcast %22 : vector<160x1xf32> to vector<160x128xf32>
    %33 = arith.subf %15, %32 : vector<160x128xf32>
    %34 = vector.broadcast %31 : vector<160x1xf32> to vector<160x128xf32>
    %35 = arith.mulf %33, %34 : vector<160x128xf32>
    %c0_17 = arith.constant 0 : index
    %c0_18 = arith.constant 0 : index
    %36 = vector.load %arg6[%c0_17, %c0_18] : memref<1x128xf32, #tpu.memory_space<vmem>>, vector<1x128xf32>
    %37 = vector.broadcast %36 : vector<1x128xf32> to vector<160x128xf32>
    %38 = arith.mulf %35, %37 : vector<160x128xf32>
    %c0_19 = arith.constant 0 : index
    %c0_20 = arith.constant 0 : index
    %39 = vector.load %arg7[%c0_19, %c0_20] : memref<1x128xf32, #tpu.memory_space<vmem>>, vector<1x128xf32>
    %40 = vector.broadcast %39 : vector<1x128xf32> to vector<160x128xf32>
    %41 = arith.addf %38, %40 : vector<160x128xf32>
    %c0_21 = arith.constant 0 : index
    %c0_22 = arith.constant 0 : index
    %42 = vector.load %arg8[%c0_21, %c0_22] : memref<160x128xf32, #tpu.memory_space<vmem>>, vector<160x128xf32>
    tpu.vector_store %arg8[%c0_21, %c0_22], %41 {strides = array<i32>} : memref<160x128xf32, #tpu.memory_space<vmem>>, vector<160x128xf32>,
    return
  }
  func.func @transform_0(%arg0: i32) -> (i32, i32) {
    %c0_i32 = arith.constant 0 : i32
    %c0_i32_0 = arith.constant 0 : i32
    return %arg0, %c0_i32 : i32, i32
  }
  func.func @transform_1(%arg0: i32) -> (i32, i32) {
    %c0_i32 = arith.constant 0 : i32
    %c0_i32_0 = arith.constant 0 : i32
    %c0_i32_1 = arith.constant 0 : i32
    return %c0_i32, %c0_i32_0 : i32, i32
  }
  func.func @transform_2(%arg0: i32) -> (i32, i32) {
    %c0_i32 = arith.constant 0 : i32
    %c0_i32_0 = arith.constant 0 : i32
    %c0_i32_1 = arith.constant 0 : i32
    return %c0_i32, %c0_i32_0 : i32, i32
  }
  func.func @transform_3(%arg0: i32) -> (i32, i32) {
    %c0_i32 = arith.constant 0 : i32
    %c0_i32_0 = arith.constant 0 : i32
    %c0_i32_1 = arith.constant 0 : i32
    return %c0_i32, %c0_i32_0 : i32, i32
  }
  func.func @transform_4(%arg0: i32) -> (i32, i32) {
    %c0_i32 = arith.constant 0 : i32
    %c0_i32_0 = arith.constant 0 : i32
    %c0_i32_1 = arith.constant 0 : i32
    return %c0_i32, %c0_i32_0 : i32, i32
  }
  func.func @transform_5(%arg0: i32) -> (i32, i32) {
    %c0_i32 = arith.constant 0 : i32
    %c0_i32_0 = arith.constant 0 : i32
    %c0_i32_1 = arith.constant 0 : i32
    return %c0_i32, %c0_i32_0 : i32, i32
  }
  func.func @transform_6(%arg0: i32) -> (i32, i32) {
    %c0_i32 = arith.constant 0 : i32
    %c0_i32_0 = arith.constant 0 : i32
    %c0_i32_1 = arith.constant 0 : i32
    return %c0_i32, %c0_i32_0 : i32, i32
  }
  func.func @transform_7(%arg0: i32) -> (i32, i32) {
    %c0_i32 = arith.constant 0 : i32
    %c0_i32_0 = arith.constant 0 : i32
    return %arg0, %c0_i32 : i32, i32
  }
}

module attributes {stable_mosaic.version = 11 : i64} {
  func.func @ffn_kernel(%arg0: i32, %arg1: memref<160x128xf32, #tpu.memory_space<vmem>>, %arg2: memref<128x256xbf16, #tpu.memory_space<vmem>>, %arg3: memref<1x256xf32, #tpu.memory_space<vmem>>, %arg4: memref<256x128xbf16, #tpu.memory_space<vmem>>, %arg5: memref<1x128xf32, #tpu.memory_space<vmem>>, %arg6: memref<1x128xf32, #tpu.memory_space<vmem>>, %arg7: memref<1x128xf32, #tpu.memory_space<vmem>>, %arg8: memref<160x128xf32, #tpu.memory_space<vmem>>) attributes {dimension_semantics = [#tpu.dimension_semantics<parallel>], iteration_bounds = array<i64: 1>, scalar_prefetch = 0 : i64, scratch_operands = 0 : i64, tpu.core_type = #tpu.core_type<tc>, window_params = [{transform_indices = @transform_0, window_bounds = array<i64: 160, 128>}, {pipeline_mode = #tpu.pipeline_mode<synchronous>, transform_indices = @transform_1, window_bounds = array<i64: 128, 256>}, {pipeline_mode = #tpu.pipeline_mode<synchronous>, transform_indices = @transform_2, window_bounds = array<i64: 1, 256>}, {pipeline_mode = #tpu.pipeline_mode<synchronous>, transform_indices = @transform_3, window_bounds = array<i64: 256, 128>}, {pipeline_mode = #tpu.pipeline_mode<synchronous>, transform_indices = @transform_4, window_bounds = array<i64: 1, 128>}, {pipeline_mode = #tpu.pipeline_mode<synchronous>, transform_indices = @transform_5, window_bounds = array<i64: 1, 128>}, {pipeline_mode = #tpu.pipeline_mode<synchronous>, transform_indices = @transform_6, window_bounds = array<i64: 1, 128>}, {transform_indices = @transform_7, window_bounds = array<i64: 160, 128>}]} {
    %c0 = arith.constant 0 : index
    %c0_0 = arith.constant 0 : index
    %0 = vector.load %arg1[%c0, %c0_0] : memref<160x128xf32, #tpu.memory_space<vmem>>, vector<160x128xf32>
    %1 = arith.truncf %0 : vector<160x128xf32> to vector<160x128xbf16>
    %c0_1 = arith.constant 0 : index
    %c0_2 = arith.constant 0 : index
    %2 = vector.load %arg2[%c0_1, %c0_2] : memref<128x256xbf16, #tpu.memory_space<vmem>>, vector<128x256xbf16>
    %cst = arith.constant dense<0.000000e+00> : vector<160x256xf32>
    %3 = tpu.matmul %1, %2, %cst {dimension_numbers = #tpu.dot_dimension_numbers<[1], [0], [0], [1], [0, 0, 1, 1], [], []>} : vector<160x128xbf16>, vector<128x256xbf16>, vector<160x256xf32> -> vector<160x256xf32>
    %c0_3 = arith.constant 0 : index
    %c0_4 = arith.constant 0 : index
    %4 = vector.load %arg3[%c0_3, %c0_4] : memref<1x256xf32, #tpu.memory_space<vmem>>, vector<1x256xf32>
    %5 = vector.broadcast %4 : vector<1x256xf32> to vector<160x256xf32>
    %6 = arith.addf %3, %5 : vector<160x256xf32>
    %cst_5 = arith.constant 0.000000e+00 : f32
    %7 = vector.broadcast %cst_5 : f32 to vector<160x256xf32>
    %8 = arith.maximumf %6, %7 : vector<160x256xf32>
    %9 = arith.truncf %8 : vector<160x256xf32> to vector<160x256xbf16>
    %c0_6 = arith.constant 0 : index
    %c0_7 = arith.constant 0 : index
    %10 = vector.load %arg4[%c0_6, %c0_7] : memref<256x128xbf16, #tpu.memory_space<vmem>>, vector<256x128xbf16>
    %cst_8 = arith.constant dense<0.000000e+00> : vector<160x128xf32>
    %11 = tpu.matmul %9, %10, %cst_8 {dimension_numbers = #tpu.dot_dimension_numbers<[1], [0], [0], [1], [0, 0, 1, 1], [], []>} : vector<160x256xbf16>, vector<256x128xbf16>, vector<160x128xf32> -> vector<160x128xf32>
    %c0_9 = arith.constant 0 : index
    %c0_10 = arith.constant 0 : index
    %12 = vector.load %arg5[%c0_9, %c0_10] : memref<1x128xf32, #tpu.memory_space<vmem>>, vector<1x128xf32>
    %13 = vector.broadcast %12 : vector<1x128xf32> to vector<160x128xf32>
    %14 = arith.addf %11, %13 : vector<160x128xf32>
    %15 = arith.addf %14, %0 : vector<160x128xf32>
    %cst_11 = arith.constant dense<0.000000e+00> : vector<160xf32>
    %16 = vector.multi_reduction <add>, %15, %cst_11 [1] : vector<160x128xf32> to vector<160xf32>
    %17 = vector.shape_cast %16 : vector<160xf32> to vector<160x1xf32>
    %18 = arith.mulf %15, %15 : vector<160x128xf32>
    %cst_12 = arith.constant dense<0.000000e+00> : vector<160xf32>
    %19 = vector.multi_reduction <add>, %18, %cst_12 [1] : vector<160x128xf32> to vector<160xf32>
    %20 = vector.shape_cast %19 : vector<160xf32> to vector<160x1xf32>
    %cst_13 = arith.constant 7.812500e-03 : f32
    %21 = vector.broadcast %cst_13 : f32 to vector<160x1xf32>
    %22 = arith.mulf %17, %21 : vector<160x1xf32>
    %cst_14 = arith.constant 7.812500e-03 : f32
    %23 = vector.broadcast %cst_14 : f32 to vector<160x1xf32>
    %24 = arith.mulf %20, %23 : vector<160x1xf32>
    %25 = arith.mulf %22, %22 : vector<160x1xf32>
    %26 = arith.subf %24, %25 : vector<160x1xf32>
    %cst_15 = arith.constant 0.000000e+00 : f32
    %27 = vector.broadcast %cst_15 : f32 to vector<160x1xf32>
    %28 = arith.maximumf %26, %27 : vector<160x1xf32>
    %cst_16 = arith.constant 9.99999997E-7 : f32
    %29 = vector.broadcast %cst_16 : f32 to vector<160x1xf32>
    %30 = arith.addf %28, %29 : vector<160x1xf32>
    %31 = math.rsqrt %30 : vector<160x1xf32>
    %32 = vector.broadcast %22 : vector<160x1xf32> to vector<160x128xf32>
    %33 = arith.subf %15, %32 : vector<160x128xf32>
    %34 = vector.broadcast %31 : vector<160x1xf32> to vector<160x128xf32>
    %35 = arith.mulf %33, %34 : vector<160x128xf32>
    %c0_17 = arith.constant 0 : index
    %c0_18 = arith.constant 0 : index
    %36 = vector.load %arg6[%c0_17, %c0_18] : memref<1x128xf32, #tpu.memory_space<vmem>>, vector<1x128xf32>
    %37 = vector.broadcast %36 : vector<1x128xf32> to vector<160x128xf32>
    %38 = arith.mulf %35, %37 : vector<160x128xf32>
    %c0_19 = arith.constant 0 : index
    %c0_20 = arith.constant 0 : index
    %39 = vector.load %arg7[%c0_19, %c0_20] : memref<1x128xf32, #tpu.memory_space<vmem>>, vector<1x128xf32>
    %40 = vector.broadcast %39 : vector<1x128xf32> to vector<160x128xf32>
    %41 = arith.addf %38, %40 : vector<160x128xf32>
    %c0_21 = arith.constant 0 : index
    %c0_22 = arith.constant 0 : index
    %42 = vector.load %arg8[%c0_21, %c0_22] : memref<160x128xf32, #tpu.memory_space<vmem>>, vector<160x128xf32>
    tpu.vector_store %arg8[%c0_21, %c0_22], %41 {strides = array<i32>} : memref<160x128xf32, #tpu.memory_space<vmem>>, vector<160x128xf32>,
    return
  }
  func.func @transform_0(%arg0: i32) -> (i32, i32) {
    %c0_i32 = arith.constant 0 : i32
    %c0_i32_0 = arith.constant 0 : i32
    return %arg0, %c0_i32 : i32, i32
  }
  func.func @transform_1(%arg0: i32) -> (i32, i32) {
    %c0_i32 = arith.constant 0 : i32
    %c0_i32_0 = arith.constant 0 : i32
    %c0_i32_1 = arith.constant 0 : i32
    return %c0_i32, %c0_i32_0 : i32, i32
  }
  func.func @transform_2(%arg0: i32) -> (i32, i32) {
    %c0_i32 = arith.constant 0 : i32
    %c0_i32_0 = arith.constant 0 : i32
    %c0_i32_1 = arith.constant 0 : i32
    return %c0_i32, %c0_i32_0 : i32, i32
  }
  func.func @transform_3(%arg0: i32) -> (i32, i32) {
    %c0_i32 = arith.constant 0 : i32
    %c0_i32_0 = arith.constant 0 : i32
    %c0_i32_1 = arith.constant 0 : i32
    return %c0_i32, %c0_i32_0 : i32, i32
  }
  func.func @transform_4(%arg0: i32) -> (i32, i32) {
    %c0_i32 = arith.constant 0 : i32
    %c0_i32_0 = arith.constant 0 : i32
    %c0_i32_1 = arith.constant 0 : i32
    return %c0_i32, %c0_i32_0 : i32, i32
  }
  func.func @transform_5(%arg0: i32) -> (i32, i32) {
    %c0_i32 = arith.constant 0 : i32
    %c0_i32_0 = arith.constant 0 : i32
    %c0_i32_1 = arith.constant 0 : i32
    return %c0_i32, %c0_i32_0 : i32, i32
  }
  func.func @transform_6(%arg0: i32) -> (i32, i32) {
    %c0_i32 = arith.constant 0 : i32
    %c0_i32_0 = arith.constant 0 : i32
    %c0_i32_1 = arith.constant 0 : i32
    return %c0_i32, %c0_i32_0 : i32, i32
  }
  func.func @transform_7(%arg0: i32) -> (i32, i32) {
    %c0_i32 = arith.constant 0 : i32
    %c0_i32_0 = arith.constant 0 : i32
    return %arg0, %c0_i32 : i32, i32
  }
}

</mosaic_0001>

<bundles_post_ra>
// kernel: tpu_custom_call.1
= control target key start
LH: loop header
LB: loop body
LE: loop exit
PB: predicated region body
PF: predicated region fallthrough
CT: control target
= control target key end

     0   :  { %12 = vsyncpa [#allocation3], 0  ;;  %s2034_s0 = inlined_call_operand.hbm [shape: f32[160,128], index: 0, kind: input, shape index: {}]   ;;  %s2035_s1 = inlined_call_operand.hbm [shape: bf16[128,256], index: 1, kind: input, shape index: {}]   ;;  %s2036_s2 = inlined_call_operand.hbm [shape: f32[1,256], index: 2, kind: input, shape index: {}]   ;;  %s2037_s3 = inlined_call_operand.hbm [shape: bf16[256,128], index: 3, kind: input, shape index: {}]   ;;  %s2038_s4 = inlined_call_operand.vmem [shape: f32[1,128], index: 4, kind: input, shape index: {}]   ;;  %s2039_s5 = inlined_call_operand.vmem [shape: f32[1,128], index: 5, kind: input, shape index: {}]   ;;  %s2040_s6 = inlined_call_operand.vmem [shape: f32[1,128], index: 6, kind: input, shape index: {}]   ;;  %s2041_s7 = inlined_call_operand.hbm [shape: f32[160,128], index: 7, kind: output, shape index: {}]  }
   0x1   :  { %13 = vsyncpa [#allocation6], 0 }
   0x2   :  { %14 = vsyncpa [#allocation9], 0 }
   0x3   :  { %15 = vsyncpa [#allocation4], 0  ;;  %s33_s26 = sshll.u32 %s2035_s1, 4  ;;  %s1557_s27 = smov [#allocation5]   ;;  %s34_s26 = int_to_ptr.hbm [resolvable:$true] %s33_s26 }
   0x4   :  { %s35_s28 = sshll.u32 %s1557_s27, 4  ;;  %s20_s8 = sshll.u32 %s2034_s0, 4  ;;  %s36_s28 = int_to_ptr.vmem [resolvable:$true] %s35_s28  ;;  %s21_s8 = int_to_ptr.hbm [resolvable:$true] %s20_s8 }
   0x5   :  { %s1558_s9 = smov 128   ;;  %s1559_s10 = smov 8  }
   0x6   :  { %41 = dma.hbm_to_vmem [thread:$0]  %s34_s26, 2048, %s36_s28, [#allocation6], %s1558_s9, %s1558_s9, %s1559_s10  }
   0x7   :  { %s1560_s11 = smov [#allocation2]   ;;  %s47_s1 = sshll.u32 %s2036_s2, 4  ;;  %s48_s1 = int_to_ptr.hbm [resolvable:$true] %s47_s1 }
   0x8   :  { %s22_s12 = sshll.u32 %s1560_s11, 4  ;;  %s57_s16 = sshll.u32 %s2037_s3, 4  ;;  %s23_s12 = int_to_ptr.vmem [resolvable:$true] %s22_s12  ;;  %s58_s16 = int_to_ptr.hbm [resolvable:$true] %s57_s16 }
   0x9   :  { %28 = dma.hbm_to_vmem [thread:$0]  %s21_s8, 2560, %s23_s12, [#allocation3], %s1558_s9, %s1558_s9, %s1559_s10  }
   0xa   :  { %s1561_s17 = smov [#allocation7]   ;;  %s1562_s19 = smov [#allocation8]  }
   0xb   :  { %s49_s18 = sshll.u32 %s1561_s17, 4  ;;  %s59_s20 = sshll.u32 %s1562_s19, 4  ;;  %s50_s18 = int_to_ptr.vmem [resolvable:$true] %s49_s18  ;;  %s60_s20 = int_to_ptr.vmem [resolvable:$true] %s59_s20 }
   0xc   :  { %52 = dma.hbm_to_vmem [thread:$0]  %s48_s1, 32, %s50_s18, [#allocation6]  }
   0xd   :  { %s1563_s21 = smov 64   ;;  %s1564_s2 = smov 4  }
   0xe   :  { %65 = dma.hbm_to_vmem [thread:$0]  %s58_s16, 2048, %s60_s20, [#allocation9], %s1563_s21, %s1563_s21, %s1564_s2  }
   0xf   :  { %1549 = dma.done.wait [#allocation3], 2560  }
  0x10   :  { %1550 = vsyncadd [#allocation3], 4294964736 }
  0x11   :  { %1551 = dma.done.wait [#allocation6], 2080  }
  0x12   :  { %1552 = vsyncadd [#allocation6], 4294965216 }
  0x13   :  { %1553 = dma.done.wait [#allocation9], 2048  }
  0x14   :  { %1554 = vsyncadd [#allocation9], 4294965248  ;;  %v1275_v0 = vld [vmem:[#allocation5 + $0x70] sm:$0xf]  ;;  %v1360_v1 = vld [vmem:[#allocation5 + $0x74] sm:$0xf0] }
  0x15   :  { %v1359_v2 = vld [vmem:[#allocation5 + $0x74] sm:$0xf]  ;;  %v1276_v3 = vor.u32 %v1360_v1, %v1275_v0  ;;  %v1277_v4 = vld [vmem:[#allocation5 + $0x78] sm:$0xf0]  ;;  %v1267_v5 = vld [vmem:[#allocation5 + $0x60] sm:$0xf] }
  0x16   :  { %v1358_v6 = vld [vmem:[#allocation5 + $0x64] sm:$0xf0]  ;;  %v1280_v7 = vor.u32 %v1359_v2, %v1277_v4  ;;  %v1357_v8 = vld [vmem:[#allocation5 + $0x64] sm:$0xf]  ;;  %v1269_v9 = vld [vmem:[#allocation5 + $0x68] sm:$0xf0] }
  0x17   :  { %220 = vmatpush.bf16.msra.mxu0 %v1276_v3  ;;  %v1268_v10 = vor.u32 %v1358_v6, %v1267_v5  ;;  %v1272_v11 = vor.u32 %v1357_v8, %v1269_v9  ;;  %v1259_v12 = vld [vmem:[#allocation5 + $0x50] sm:$0xf]  ;;  %v1356_v13 = vld [vmem:[#allocation5 + $0x54] sm:$0xf0]  ;;  %v1355_v14 = vld [vmem:[#allocation5 + $0x54] sm:$0xf] }
  0x18   :  { %279 = vmatpush.bf16.msra.mxu1 %v1280_v7  ;;  %v1261_v15 = vld [vmem:[#allocation5 + $0x58] sm:$0xf0]  ;;  %v1260_v16 = vor.u32 %v1356_v13, %v1259_v12  ;;  %v1251_v18 = vld [vmem:[#allocation5 + $0x40] sm:$0xf]  ;;  %v1354_v19 = vld [vmem:[#allocation5 + $0x44] sm:$0xf0] }
  0x19   :  { %v1264_v17 = vor.u32 %v1355_v14, %v1261_v15  ;;  %v1353_v20 = vld [vmem:[#allocation5 + $0x44] sm:$0xf]  ;;  %v1253_v21 = vld [vmem:[#allocation5 + $0x48] sm:$0xf0]  ;;  %v1252_v22 = vor.u32 %v1354_v19, %v1251_v18  ;;  %v1243_v23 = vld [vmem:[#allocation5 + $0x30] sm:$0xf] }
  0x1a   :  { %v1352_v24 = vld [vmem:[#allocation5 + $0x34] sm:$0xf0]  ;;  %v1256_v25 = vor.u32 %v1353_v20, %v1253_v21  ;;  %v1351_v26 = vld [vmem:[#allocation5 + $0x34] sm:$0xf]  ;;  %v1245_v27 = vld [vmem:[#allocation5 + $0x38] sm:$0xf0] }
  0x1b   :  { %221 = vmatpush.bf16.msra.mxu0 %v1268_v10  ;;  %v1244_v28 = vor.u32 %v1352_v24, %v1243_v23  ;;  %v1248_v29 = vor.u32 %v1351_v26, %v1245_v27  ;;  %v1235_v30 = vld [vmem:[#allocation5 + $0x20] sm:$0xf]  ;;  %v1350_v31 = vld [vmem:[#allocation5 + $0x24] sm:$0xf0]  ;;  %v1349_v32 = vld [vmem:[#allocation5 + $0x24] sm:$0xf] }
  0x1c   :  { %280 = vmatpush.bf16.msra.mxu1 %v1272_v11  ;;  %v1237_v33 = vld [vmem:[#allocation5 + $0x28] sm:$0xf0]  ;;  %v1236_v34 = vor.u32 %v1350_v31, %v1235_v30  ;;  %v1227_v36 = vld [vmem:[#allocation5 + $0x10] sm:$0xf]  ;;  %v1348_v37 = vld [vmem:[#allocation5 + $0x14] sm:$0xf0] }
  0x1d   :  { %v1240_v35 = vor.u32 %v1349_v32, %v1237_v33  ;;  %v1347_v38 = vld [vmem:[#allocation5 + $0x14] sm:$0xf]  ;;  %v1229_v39 = vld [vmem:[#allocation5 + $0x18] sm:$0xf0]  ;;  %v1228_v40 = vor.u32 %v1348_v37, %v1227_v36  ;;  %v1219_v42 = vld [vmem:[#allocation5] sm:$0xf] }
  0x1e   :  { %v1232_v41 = vor.u32 %v1347_v38, %v1229_v39  ;;  %v1346_v43 = vld [vmem:[#allocation5 + $0x4] sm:$0xf0]  ;;  %v1345_v44 = vld [vmem:[#allocation5 + $0x4] sm:$0xf]  ;;  %v1221_v45 = vld [vmem:[#allocation5 + $0x8] sm:$0xf0] }
  0x1f   :  { %222 = vmatpush.bf16.msra.mxu0 %v1260_v16  ;;  %v1220_v46 = vor.u32 %v1346_v43, %v1219_v42  ;;  %v1624_v47 = vld [vmem:[#allocation2] sm:$0xff]  ;;  %v1626_v48 = vld [vmem:[#allocation2 + $0x8] sm:$0xff]  ;;  %v1224_v49 = vor.u32 %v1345_v44, %v1221_v45  ;;  %v1630_v51 = vld [vmem:[#allocation2 + $0x10] sm:$0xff]  ;;  %s1202_s28 = sshll.u32 %s2041_s7, 4  ;;  %s1203_s28 = int_to_ptr.hbm [resolvable:$true] %s1202_s28 }
  0x20   :  { %281 = vmatpush.bf16.msra.mxu1 %v1264_v17  ;;  %v108_v50 = vpack.c.bf16 %v1626_v48, %v1624_v47  ;;  %v1632_v52 = vld [vmem:[#allocation2 + $0x18] sm:$0xff]  ;;  %v1636_v54 = vld [vmem:[#allocation2 + $0x20] sm:$0xff]  ;;  %v1638_v55 = vld [vmem:[#allocation2 + $0x28] sm:$0xff] }
  0x21   :  { %v109_v53 = vpack.c.bf16 %v1632_v52, %v1630_v51  ;;  %v110_v56 = vpack.c.bf16 %v1638_v55, %v1636_v54  ;;  %v1642_v57 = vld [vmem:[#allocation2 + $0x30] sm:$0xff]  ;;  %v1644_v58 = vld [vmem:[#allocation2 + $0x38] sm:$0xff]  ;;  %v1648_v60 = vld [vmem:[#allocation2 + $0x40] sm:$0xff] }
  0x22   :  { %v111_v59 = vpack.c.bf16 %v1644_v58, %v1642_v57  ;;  %v1650_v61 = vld [vmem:[#allocation2 + $0x48] sm:$0xff]  ;;  %v1368_v63 = vld [vmem:[#allocation8 + $0x38] sm:$0xff]  ;;  %v1654_v1 = vld [vmem:[#allocation2 + $0x50] sm:$0xff] }
  0x23   :  { %223 = vmatpush.bf16.msra.mxu0 %v1252_v22  ;;  %v112_v62 = vpack.c.bf16 %v1650_v61, %v1648_v60  ;;  %v1376_v0 = vld [vmem:[#allocation8 + $0x78] sm:$0xff]  ;;  %530 = vmatpush.bf16.msra.mxu2 %v1368_v63  ;;  %v1367_v4 = vld [vmem:[#allocation8 + $0x30] sm:$0xff]  ;;  %v1366_v6 = vld [vmem:[#allocation8 + $0x28] sm:$0xff] }
  0x24   :  { %282 = vmatpush.bf16.msra.mxu1 %v1256_v25  ;;  %589 = vmatpush.bf16.msra.mxu3 %v1376_v0  ;;  %v1656_v2 = vld [vmem:[#allocation2 + $0x58] sm:$0xff]  ;;  %v1374_v7 = vld [vmem:[#allocation8 + $0x68] sm:$0xff]  ;;  %v1365_v8 = vld [vmem:[#allocation8 + $0x20] sm:$0xff] }
  0x25   :  { %v113_v3 = vpack.c.bf16 %v1656_v2, %v1654_v1  ;;  %v1375_v5 = vld [vmem:[#allocation8 + $0x70] sm:$0xff]  ;;  %v1373_v9 = vld [vmem:[#allocation8 + $0x60] sm:$0xff]  ;;  %v1364_v13 = vld [vmem:[#allocation8 + $0x18] sm:$0xff] }
  0x26   :  { %v1660_v10 = vld [vmem:[#allocation2 + $0x60] sm:$0xff]  ;;  %v1662_v11 = vld [vmem:[#allocation2 + $0x68] sm:$0xff]  ;;  %v1363_v15 = vld [vmem:[#allocation8 + $0x10] sm:$0xff] }
  0x27   :  { %224 = vmatpush.bf16.msra.mxu0 %v1244_v28  ;;  %531 = vmatpush.bf16.msra.mxu2 %v1367_v4  ;;  %v114_v12 = vpack.c.bf16 %v1662_v11, %v1660_v10  ;;  %v1372_v14 = vld [vmem:[#allocation8 + $0x58] sm:$0xff]  ;;  %v1371_v16 = vld [vmem:[#allocation8 + $0x50] sm:$0xff]  ;;  %v1362_v17 = vld [vmem:[#allocation8 + $0x8] sm:$0xff] }
  0x28   :  { %283 = vmatpush.bf16.msra.mxu1 %v1248_v29  ;;  %590 = vmatpush.bf16.msra.mxu3 %v1375_v5  ;;  %v1370_v18 = vld [vmem:[#allocation8 + $0x48] sm:$0xff]  ;;  %v1361_v19 = vld [vmem:[#allocation8] sm:$0xff]  ;;  %v1668_v22 = vld [vmem:[#allocation2 + $0x78] sm:$0xff] }
  0x29   :  { %v1369_v20 = vld [vmem:[#allocation8 + $0x40] sm:$0xff]  ;;  %v1666_v21 = vld [vmem:[#allocation2 + $0x70] sm:$0xff]  ;;  %v134_v27 = vld [vmem:[#allocation7] sm:$0x3] }
  0x2a   :  { %v115_v23 = vpack.c.bf16 %v1668_v22, %v1666_v21  ;;  %v1672_v24 = vld [vmem:[#allocation2 + $0x80] sm:$0xff]  ;;  %v1674_v25 = vld [vmem:[#allocation2 + $0x88] sm:$0xff]  ;;  %v1678_v30 = vperm.slane %v134_v27, 0  ;;  %v1680_v31 = vperm.slane %v134_v27, 1  ;;  %v1686_v42 = vld [vmem:[#allocation2 + $0x90] sm:$0xff] }
  0x2b   :  { %225 = vmatpush.bf16.msra.mxu0 %v1236_v34  ;;  %532 = vmatpush.bf16.msra.mxu2 %v1366_v6  ;;  %v116_v26 = vpack.c.bf16 %v1674_v25, %v1672_v24  ;;  %v1688_v43 = vld [vmem:[#allocation2 + $0x98] sm:$0xff] }
  0x2c   :  { %284 = vmatpush.bf16.msra.mxu1 %v1240_v35  ;;  %591 = vmatpush.bf16.msra.mxu3 %v1374_v7 }
  0x2f   :  { %226 = vmatpush.bf16.msra.mxu0 %v1228_v40  ;;  %533 = vmatpush.bf16.msra.mxu2 %v1365_v8 }
  0x30   :  { %285 = vmatpush.bf16.msra.mxu1 %v1232_v41  ;;  %592 = vmatpush.bf16.msra.mxu3 %v1373_v9 }
  0x33   :  { %227 = vmatpush.bf16.msra.mxu0 %v1220_v46  ;;  %534 = vmatpush.bf16.msra.mxu2 %v1364_v13  ;;  %v117_v46 = vpack.c.bf16 %v1688_v43, %v1686_v42 }
  0x34   :  { %286 = vmatpush.bf16.msra.mxu1 %v1224_v49  ;;  %593 = vmatpush.bf16.msra.mxu3 %v1372_v14 }
  0x36   :  { %228 = vmatmul.bf16.vlgmr.msra.gmra.mxu0 %v108_v50 }
  0x37   :  { %287 = vmatmul.bf16.vlgmr.msra.gmra.mxu1 %v108_v50  ;;  %535 = vmatpush.bf16.msra.mxu2 %v1363_v15 }
  0x38   :  { %594 = vmatpush.bf16.msra.mxu3 %v1371_v16 }
  0x3b   :  { %536 = vmatpush.bf16.msra.mxu2 %v1362_v17 }
  0x3c   :  { %595 = vmatpush.bf16.msra.mxu3 %v1370_v18 }
  0x3f   :  { %537 = vmatpush.bf16.msra.mxu2 %v1361_v19 }
  0x40   :  { %596 = vmatpush.bf16.msra.mxu3 %v1369_v20 }
  0x46   :  { %233 = vmatmul.bf16.gmra.mxu0 %v109_v53 }
  0x47   :  { %292 = vmatmul.bf16.gmra.mxu1 %v109_v53 }
  0x56   :  { %238 = vmatmul.bf16.gmra.mxu0 %v110_v56 }
  0x57   :  { %297 = vmatmul.bf16.gmra.mxu1 %v110_v56 }
  0x66   :  { %243 = vmatmul.bf16.gmra.mxu0 %v111_v59 }
  0x67   :  { %302 = vmatmul.bf16.gmra.mxu1 %v111_v59 }
  0x76   :  { %248 = vmatmul.bf16.gmra.mxu0 %v112_v62 }
  0x77   :  { %307 = vmatmul.bf16.gmra.mxu1 %v112_v62 }
  0x86   :  { %253 = vmatmul.bf16.gmra.mxu0 %v113_v3 }
  0x87   :  { %312 = vmatmul.bf16.gmra.mxu1 %v113_v3 }
  0x96   :  { %258 = vmatmul.bf16.gmra.mxu0 %v114_v12 }
  0x97   :  { %317 = vmatmul.bf16.gmra.mxu1 %v114_v12 }
  0xa6   :  { %263 = vmatmul.bf16.gmra.mxu0 %v115_v23 }
  0xa7   :  { %322 = vmatmul.bf16.gmra.mxu1 %v115_v23 }
  0xb3   :  { %v229_v28 = vpop.f32.mrf.mxu0 }
  0xb4   :  { %v288_v29 = vpop.f32.mrf.mxu1  ;;  %v230_v32 = vadd.f32 %v229_v28, %v1678_v30 }
  0xb5   :  { %v289_v33 = vadd.f32 %v288_v29, %v1680_v31 }
  0xb6   :  { %268 = vmatmul.bf16.gmra.mxu0 %v116_v26  ;;  %v338_v38 = vmax.f32 %v230_v32, 0.0 }
  0xb7   :  { %327 = vmatmul.bf16.gmra.mxu1 %v116_v26  ;;  %v339_v40 = vmax.f32 %v289_v33, 0.0 }
  0xbb   :  { %v231_v34 = vpop.f32.mrf.mxu0 }
  0xbc   :  { %v232_v35 = vadd.f32 %v231_v34, %v1678_v30  ;;  %v290_v36 = vpop.f32.mrf.mxu1 }
  0xbd   :  { %v291_v37 = vadd.f32 %v290_v36, %v1680_v31 }
  0xbe   :  { %v340_v39 = vmax.f32 %v232_v35, 0.0 }
  0xbf   :  { %v341_v41 = vmax.f32 %v291_v37, 0.0 }
  0xc0   :  { %v378_v44 = vpack.c.bf16 %v340_v39, %v338_v38 }
  0xc1   :  { %v379_v45 = vpack.c.bf16 %v341_v41, %v339_v40 }
  0xc2   :  { %538 = vmatmul.bf16.vlgmr.msra.gmra.mxu2 %v378_v44 }
  0xc3   :  { %597 = vmatmul.bf16.vlgmr.msra.gmra.mxu3 %v379_v45  ;;  %v234_v49 = vpop.f32.mrf.mxu0 }
  0xc4   :  { %v293_v50 = vpop.f32.mrf.mxu1  ;;  %v235_v53 = vadd.f32 %v234_v49, %v1678_v30 }
  0xc5   :  { %v294_v56 = vadd.f32 %v293_v50, %v1680_v31 }
  0xc6   :  { %273 = vmatmul.bf16.gmra.mxu0 %v117_v46  ;;  %v342_v3 = vmax.f32 %v235_v53, 0.0 }
  0xc7   :  { %332 = vmatmul.bf16.gmra.mxu1 %v117_v46  ;;  %v343_v5 = vmax.f32 %v294_v56, 0.0 }
  0xcb   :  { %v236_v59 = vpop.f32.mrf.mxu0 }
  0xcc   :  { %v237_v62 = vadd.f32 %v236_v59, %v1678_v30  ;;  %v295_v63 = vpop.f32.mrf.mxu1 }
  0xcd   :  { %v296_v0 = vadd.f32 %v295_v63, %v1680_v31 }
  0xce   :  { %v344_v4 = vmax.f32 %v237_v62, 0.0 }
  0xcf   :  { %v345_v6 = vmax.f32 %v296_v0, 0.0 }
  0xd0   :  { %v380_v7 = vpack.c.bf16 %v344_v4, %v342_v3 }
  0xd1   :  { %v381_v8 = vpack.c.bf16 %v345_v6, %v343_v5 }
  0xd2   :  { %543 = vmatmul.bf16.gmra.mxu2 %v380_v7 }
  0xd3   :  { %602 = vmatmul.bf16.gmra.mxu3 %v381_v8  ;;  %v239_v9 = vpop.f32.mrf.mxu0 }
  0xd4   :  { %v298_v12 = vpop.f32.mrf.mxu1  ;;  %v240_v13 = vadd.f32 %v239_v9, %v1678_v30 }
  0xd5   :  { %v299_v14 = vadd.f32 %v298_v12, %v1680_v31 }
  0xd6   :  { %v346_v19 = vmax.f32 %v240_v13, 0.0 }
  0xd7   :  { %v347_v23 = vmax.f32 %v299_v14, 0.0 }
  0xdb   :  { %v241_v15 = vpop.f32.mrf.mxu0 }
  0xdc   :  { %v242_v16 = vadd.f32 %v241_v15, %v1678_v30  ;;  %v300_v17 = vpop.f32.mrf.mxu1 }
  0xdd   :  { %v301_v18 = vadd.f32 %v300_v17, %v1680_v31 }
  0xde   :  { %v348_v20 = vmax.f32 %v242_v16, 0.0 }
  0xdf   :  { %v349_v26 = vmax.f32 %v301_v18, 0.0 }
  0xe0   :  { %v382_v27 = vpack.c.bf16 %v348_v20, %v346_v19 }
  0xe1   :  { %v383_v28 = vpack.c.bf16 %v349_v26, %v347_v23 }
  0xe2   :  { %548 = vmatmul.bf16.gmra.mxu2 %v382_v27 }
  0xe3   :  { %607 = vmatmul.bf16.gmra.mxu3 %v383_v28  ;;  %v244_v29 = vpop.f32.mrf.mxu0 }
  0xe4   :  { %v303_v32 = vpop.f32.mrf.mxu1  ;;  %v245_v33 = vadd.f32 %v244_v29, %v1678_v30 }
  0xe5   :  { %v304_v34 = vadd.f32 %v303_v32, %v1680_v31 }
  0xe6   :  { %v350_v39 = vmax.f32 %v245_v33, 0.0 }
  0xe7   :  { %v351_v41 = vmax.f32 %v304_v34, 0.0 }
  0xeb   :  { %v246_v35 = vpop.f32.mrf.mxu0 }
  0xec   :  { %v247_v36 = vadd.f32 %v246_v35, %v1678_v30  ;;  %v305_v37 = vpop.f32.mrf.mxu1 }
  0xed   :  { %v306_v38 = vadd.f32 %v305_v37, %v1680_v31 }
  0xee   :  { %v352_v40 = vmax.f32 %v247_v36, 0.0 }
  0xef   :  { %v353_v44 = vmax.f32 %v306_v38, 0.0 }
  0xf0   :  { %v384_v45 = vpack.c.bf16 %v352_v40, %v350_v39 }
  0xf1   :  { %v385_v46 = vpack.c.bf16 %v353_v44, %v351_v41 }
  0xf2   :  { %553 = vmatmul.bf16.gmra.mxu2 %v384_v45 }
  0xf3   :  { %612 = vmatmul.bf16.gmra.mxu3 %v385_v46  ;;  %v249_v49 = vpop.f32.mrf.mxu0 }
  0xf4   :  { %v308_v50 = vpop.f32.mrf.mxu1  ;;  %v250_v53 = vadd.f32 %v249_v49, %v1678_v30 }
  0xf5   :  { %v309_v56 = vadd.f32 %v308_v50, %v1680_v31 }
  0xf6   :  { %v354_v3 = vmax.f32 %v250_v53, 0.0 }
  0xf7   :  { %v355_v5 = vmax.f32 %v309_v56, 0.0 }
  0xfb   :  { %v251_v59 = vpop.f32.mrf.mxu0 }
  0xfc   :  { %v252_v62 = vadd.f32 %v251_v59, %v1678_v30  ;;  %v310_v63 = vpop.f32.mrf.mxu1 }
  0xfd   :  { %v311_v0 = vadd.f32 %v310_v63, %v1680_v31 }
  0xfe   :  { %v356_v4 = vmax.f32 %v252_v62, 0.0 }
  0xff   :  { %v357_v6 = vmax.f32 %v311_v0, 0.0 }
 0x100   :  { %v386_v7 = vpack.c.bf16 %v356_v4, %v354_v3 }
 0x101   :  { %v387_v8 = vpack.c.bf16 %v357_v6, %v355_v5 }
 0x102   :  { %558 = vmatmul.bf16.gmra.mxu2 %v386_v7 }
 0x103   :  { %617 = vmatmul.bf16.gmra.mxu3 %v387_v8  ;;  %v254_v9 = vpop.f32.mrf.mxu0 }
 0x104   :  { %v313_v12 = vpop.f32.mrf.mxu1  ;;  %v255_v13 = vadd.f32 %v254_v9, %v1678_v30 }
 0x105   :  { %v314_v14 = vadd.f32 %v313_v12, %v1680_v31 }
 0x106   :  { %v358_v19 = vmax.f32 %v255_v13, 0.0 }
 0x107   :  { %v359_v23 = vmax.f32 %v314_v14, 0.0 }
 0x10b   :  { %v256_v15 = vpop.f32.mrf.mxu0 }
 0x10c   :  { %v257_v16 = vadd.f32 %v256_v15, %v1678_v30  ;;  %v315_v17 = vpop.f32.mrf.mxu1 }
 0x10d   :  { %v316_v18 = vadd.f32 %v315_v17, %v1680_v31 }
 0x10e   :  { %v360_v20 = vmax.f32 %v257_v16, 0.0 }
 0x10f   :  { %v361_v26 = vmax.f32 %v316_v18, 0.0 }
 0x110   :  { %v388_v27 = vpack.c.bf16 %v360_v20, %v358_v19 }
 0x111   :  { %v389_v28 = vpack.c.bf16 %v361_v26, %v359_v23 }
 0x112   :  { %563 = vmatmul.bf16.gmra.mxu2 %v388_v27 }
 0x113   :  { %622 = vmatmul.bf16.gmra.mxu3 %v389_v28  ;;  %v259_v29 = vpop.f32.mrf.mxu0 }
 0x114   :  { %v318_v32 = vpop.f32.mrf.mxu1  ;;  %v260_v33 = vadd.f32 %v259_v29, %v1678_v30  ;;  %v1727_v29 = vld [vmem:[%s2038_s4] ss:$0 sm:$0xff] }
 0x115   :  { %v319_v34 = vadd.f32 %v318_v32, %v1680_v31 }
 0x116   :  { %v362_v39 = vmax.f32 %v260_v33, 0.0 }
 0x117   :  { %v363_v41 = vmax.f32 %v319_v34, 0.0 }
 0x11b   :  { %v261_v35 = vpop.f32.mrf.mxu0 }
 0x11c   :  { %v262_v36 = vadd.f32 %v261_v35, %v1678_v30  ;;  %v320_v37 = vpop.f32.mrf.mxu1 }
 0x11d   :  { %v321_v38 = vadd.f32 %v320_v37, %v1680_v31 }
 0x11e   :  { %v364_v40 = vmax.f32 %v262_v36, 0.0 }
 0x11f   :  { %v365_v44 = vmax.f32 %v321_v38, 0.0 }
 0x120   :  { %v390_v45 = vpack.c.bf16 %v364_v40, %v362_v39 }
 0x121   :  { %v391_v46 = vpack.c.bf16 %v365_v44, %v363_v41 }
 0x122   :  { %568 = vmatmul.bf16.gmra.mxu2 %v390_v45 }
 0x123   :  { %627 = vmatmul.bf16.gmra.mxu3 %v391_v46  ;;  %v264_v49 = vpop.f32.mrf.mxu0 }
 0x124   :  { %v323_v50 = vpop.f32.mrf.mxu1  ;;  %v265_v53 = vadd.f32 %v264_v49, %v1678_v30 }
 0x125   :  { %v324_v56 = vadd.f32 %v323_v50, %v1680_v31 }
 0x126   :  { %v366_v3 = vmax.f32 %v265_v53, 0.0 }
 0x127   :  { %v367_v5 = vmax.f32 %v324_v56, 0.0 }
 0x12b   :  { %v266_v59 = vpop.f32.mrf.mxu0 }
 0x12c   :  { %v267_v62 = vadd.f32 %v266_v59, %v1678_v30  ;;  %v325_v63 = vpop.f32.mrf.mxu1 }
 0x12d   :  { %v326_v0 = vadd.f32 %v325_v63, %v1680_v31 }
 0x12e   :  { %v368_v4 = vmax.f32 %v267_v62, 0.0 }
 0x12f   :  { %v369_v6 = vmax.f32 %v326_v0, 0.0 }
 0x130   :  { %v392_v7 = vpack.c.bf16 %v368_v4, %v366_v3 }
 0x131   :  { %v393_v8 = vpack.c.bf16 %v369_v6, %v367_v5 }
 0x132   :  { %573 = vmatmul.bf16.gmra.mxu2 %v392_v7 }
 0x133   :  { %632 = vmatmul.bf16.gmra.mxu3 %v393_v8  ;;  %v269_v9 = vpop.f32.mrf.mxu0 }
 0x134   :  { %v328_v12 = vpop.f32.mrf.mxu1  ;;  %v270_v13 = vadd.f32 %v269_v9, %v1678_v30 }
 0x135   :  { %v329_v14 = vadd.f32 %v328_v12, %v1680_v31 }
 0x136   :  { %v370_v19 = vmax.f32 %v270_v13, 0.0 }
 0x137   :  { %v371_v23 = vmax.f32 %v329_v14, 0.0 }
 0x13b   :  { %v271_v15 = vpop.f32.mrf.mxu0 }
 0x13c   :  { %v272_v16 = vadd.f32 %v271_v15, %v1678_v30  ;;  %v330_v17 = vpop.f32.mrf.mxu1 }
 0x13d   :  { %v331_v18 = vadd.f32 %v330_v17, %v1680_v31 }
 0x13e   :  { %v372_v20 = vmax.f32 %v272_v16, 0.0 }
 0x13f   :  { %v373_v26 = vmax.f32 %v331_v18, 0.0 }
 0x140   :  { %v394_v27 = vpack.c.bf16 %v372_v20, %v370_v19 }
 0x141   :  { %v395_v28 = vpack.c.bf16 %v373_v26, %v371_v23 }
 0x142   :  { %578 = vmatmul.bf16.gmra.mxu2 %v394_v27 }
 0x143   :  { %637 = vmatmul.bf16.gmra.mxu3 %v395_v28  ;;  %v274_v32 = vpop.f32.mrf.mxu0 }
 0x144   :  { %v333_v33 = vpop.f32.mrf.mxu1  ;;  %v275_v38 = vadd.f32 %v274_v32, %v1678_v30 }
 0x145   :  { %v539_v34 = vpop.f32.mrf.mxu2  ;;  %v334_v40 = vadd.f32 %v333_v33, %v1680_v31 }
 0x146   :  { %v540_v35 = vadd.f32 %v1727_v29, %v539_v34  ;;  %v598_v36 = vpop.f32.mrf.mxu3  ;;  %v374_v53 = vmax.f32 %v275_v38, 0.0 }
 0x147   :  { %v375_v62 = vmax.f32 %v334_v40, 0.0 }
 0x148   :  { %v599_v37 = vadd.f32 %v598_v36, %v540_v35 }
 0x14a   :  { %v1732_v39 = vadd.f32 %v599_v37, %v1624_v47 }
 0x14b   :  { %v276_v41 = vpop.f32.mrf.mxu0 }
 0x14c   :  { %v277_v44 = vadd.f32 %v276_v41, %v1678_v30  ;;  %v335_v45 = vpop.f32.mrf.mxu1  ;;  %668 = vadd.xlane.f32.xlu0 %v1732_v39  ;;  %v708_v46 = vmul.f32 %v1732_v39, %v1732_v39 }
 0x14d   :  { %v336_v49 = vadd.f32 %v335_v45, %v1680_v31  ;;  %v541_v50 = vpop.f32.mrf.mxu2 }
 0x14e   :  { %v376_v56 = vmax.f32 %v277_v44, 0.0  ;;  %v542_v59 = vadd.f32 %v1727_v29, %v541_v50  ;;  %v600_v47 = vpop.f32.mrf.mxu3  ;;  %728 = vadd.xlane.f32.xlu2 %v708_v46 }
 0x14f   :  { %v377_v63 = vmax.f32 %v336_v49, 0.0 }
 0x150   :  { %v601_v0 = vadd.f32 %v600_v47, %v542_v59  ;;  %v396_v3 = vpack.c.bf16 %v376_v56, %v374_v53 }
 0x151   :  { %v397_v30 = vpack.c.bf16 %v377_v63, %v375_v62 }
 0x152   :  { %v1742_v4 = vadd.f32 %v601_v0, %v1626_v48  ;;  %583 = vmatmul.bf16.gmra.mxu2 %v396_v3 }
 0x153   :  { %642 = vmatmul.bf16.gmra.mxu3 %v397_v30 }
 0x154   :  { %670 = vadd.xlane.f32.xlu0 %v1742_v4  ;;  %v709_v9 = vmul.f32 %v1742_v4, %v1742_v4 }
 0x155   :  { %v544_v31 = vpop.f32.mrf.mxu2 }
 0x156   :  { %v545_v5 = vadd.f32 %v1727_v29, %v544_v31  ;;  %v603_v6 = vpop.f32.mrf.mxu3 }
 0x158   :  { %v604_v7 = vadd.f32 %v603_v6, %v545_v5 }
 0x15a   :  { %v1747_v8 = vadd.f32 %v604_v7, %v1630_v51 }
 0x15c   :  { %672 = vadd.xlane.f32.xlu1 %v1747_v8  ;;  %730 = vadd.xlane.f32.xlu0 %v709_v9  ;;  %v710_v16 = vmul.f32 %v1747_v8, %v1747_v8 }
 0x15d   :  { %v546_v48 = vpop.f32.mrf.mxu2 }
 0x15e   :  { %v547_v12 = vadd.f32 %v1727_v29, %v546_v48  ;;  %v605_v13 = vpop.f32.mrf.mxu3 }
 0x160   :  { %v606_v14 = vadd.f32 %v605_v13, %v547_v12 }
 0x162   :  { %v1754_v15 = vadd.f32 %v606_v14, %v1632_v52 }
 0x164   :  { %732 = vadd.xlane.f32.xlu1 %v710_v16  ;;  %v711_v51 = vmul.f32 %v1754_v15, %v1754_v15 }
 0x165   :  { %v549_v17 = vpop.f32.mrf.mxu2 }
 0x166   :  { %v550_v18 = vadd.f32 %v1727_v29, %v549_v17  ;;  %v608_v19 = vpop.f32.mrf.mxu3  ;;  %734 = vadd.xlane.f32.xlu2 %v711_v51 }
 0x168   :  { %v609_v20 = vadd.f32 %v608_v19, %v550_v18 }
 0x16a   :  { %v1762_v23 = vadd.f32 %v609_v20, %v1636_v54 }
 0x16c   :  { %674 = vadd.xlane.f32.xlu1 %v1754_v15  ;;  %v712_v52 = vmul.f32 %v1762_v23, %v1762_v23 }
 0x16d   :  { %v551_v26 = vpop.f32.mrf.mxu2 }
 0x16e   :  { %v552_v27 = vadd.f32 %v1727_v29, %v551_v26  ;;  %v610_v28 = vpop.f32.mrf.mxu3  ;;  %736 = vadd.xlane.f32.xlu0 %v712_v52  ;;  %676 = vadd.xlane.f32.xlu2 %v1762_v23 }
 0x170   :  { %v611_v32 = vadd.f32 %v610_v28, %v552_v27 }
 0x172   :  { %v1770_v33 = vadd.f32 %v611_v32, %v1638_v55 }
 0x174   :  { %v713_v54 = vmul.f32 %v1770_v33, %v1770_v33 }
 0x175   :  { %v554_v34 = vpop.f32.mrf.mxu2 }
 0x176   :  { %v555_v35 = vadd.f32 %v1727_v29, %v554_v34  ;;  %v613_v36 = vpop.f32.mrf.mxu3  ;;  %738 = vadd.xlane.f32.xlu1 %v713_v54  ;;  %678 = vadd.xlane.f32.xlu2 %v1770_v33 }
 0x178   :  { %v614_v37 = vadd.f32 %v613_v36, %v555_v35 }
 0x17a   :  { %v1777_v38 = vadd.f32 %v614_v37, %v1642_v57 }
 0x17c   :  { %680 = vadd.xlane.f32.xlu0 %v1777_v38  ;;  %v714_v55 = vmul.f32 %v1777_v38, %v1777_v38 }
 0x17d   :  { %v556_v40 = vpop.f32.mrf.mxu2 }
 0x17e   :  { %v557_v41 = vadd.f32 %v1727_v29, %v556_v40  ;;  %v615_v44 = vpop.f32.mrf.mxu3  ;;  %740 = vadd.xlane.f32.xlu2 %v714_v55 }
 0x180   :  { %v616_v45 = vadd.f32 %v615_v44, %v557_v41 }
 0x182   :  { %v1784_v46 = vadd.f32 %v616_v45, %v1644_v58 }
 0x184   :  { %682 = vadd.xlane.f32.xlu1 %v1784_v46  ;;  %v715_v57 = vmul.f32 %v1784_v46, %v1784_v46 }
 0x185   :  { %v559_v49 = vpop.f32.mrf.mxu2 }
 0x186   :  { %v560_v50 = vadd.f32 %v1727_v29, %v559_v49  ;;  %v618_v53 = vpop.f32.mrf.mxu3  ;;  %742 = vadd.xlane.f32.xlu0 %v715_v57 }
 0x188   :  { %v619_v56 = vadd.f32 %v618_v53, %v560_v50 }
 0x18a   :  { %v1791_v59 = vadd.f32 %v619_v56, %v1648_v60 }
 0x18c   :  { %684 = vadd.xlane.f32.xlu2 %v1791_v59  ;;  %v716_v58 = vmul.f32 %v1791_v59, %v1791_v59 }
 0x18d   :  { %v561_v47 = vpop.f32.mrf.mxu2 }
 0x18e   :  { %v562_v62 = vadd.f32 %v1727_v29, %v561_v47  ;;  %v620_v63 = vpop.f32.mrf.mxu3  ;;  %744 = vadd.xlane.f32.xlu1 %v716_v58 }
 0x190   :  { %v621_v0 = vadd.f32 %v620_v63, %v562_v62 }
 0x192   :  { %v1798_v3 = vadd.f32 %v621_v0, %v1650_v61 }
 0x194   :  { %686 = vadd.xlane.f32.xlu0 %v1798_v3  ;;  %v717_v60 = vmul.f32 %v1798_v3, %v1798_v3 }
 0x195   :  { %v564_v30 = vpop.f32.mrf.mxu2 }
 0x196   :  { %v565_v31 = vadd.f32 %v1727_v29, %v564_v30  ;;  %v623_v5 = vpop.f32.mrf.mxu3  ;;  %746 = vadd.xlane.f32.xlu2 %v717_v60 }
 0x198   :  { %v624_v6 = vadd.f32 %v623_v5, %v565_v31 }
 0x19a   :  { %v1805_v7 = vadd.f32 %v624_v6, %v1654_v1 }
 0x19c   :  { %688 = vadd.xlane.f32.xlu1 %v1805_v7  ;;  %v718_v61 = vmul.f32 %v1805_v7, %v1805_v7 }
 0x19d   :  { %v566_v9 = vpop.f32.mrf.mxu2 }
 0x19e   :  { %v567_v48 = vadd.f32 %v1727_v29, %v566_v9  ;;  %v625_v12 = vpop.f32.mrf.mxu3  ;;  %748 = vadd.xlane.f32.xlu0 %v718_v61 }
 0x1a0   :  { %v626_v13 = vadd.f32 %v625_v12, %v567_v48 }
 0x1a2   :  { %v1812_v14 = vadd.f32 %v626_v13, %v1656_v2 }
 0x1a4   :  { %690 = vadd.xlane.f32.xlu2 %v1812_v14  ;;  %v719_v1 = vmul.f32 %v1812_v14, %v1812_v14 }
 0x1a5   :  { %v569_v16 = vpop.f32.mrf.mxu2 }
 0x1a6   :  { %v570_v51 = vadd.f32 %v1727_v29, %v569_v16  ;;  %v628_v17 = vpop.f32.mrf.mxu3  ;;  %750 = vadd.xlane.f32.xlu1 %v719_v1 }
 0x1a8   :  { %v629_v18 = vadd.f32 %v628_v17, %v570_v51 }
 0x1aa   :  { %v1819_v19 = vadd.f32 %v629_v18, %v1660_v10 }
 0x1ac   :  { %692 = vadd.xlane.f32.xlu0 %v1819_v19  ;;  %v720_v2 = vmul.f32 %v1819_v19, %v1819_v19 }
 0x1ad   :  { %v571_v20 = vpop.f32.mrf.mxu2 }
 0x1ae   :  { %v572_v52 = vadd.f32 %v1727_v29, %v571_v20  ;;  %v630_v26 = vpop.f32.mrf.mxu3  ;;  %752 = vadd.xlane.f32.xlu2 %v720_v2 }
 0x1b0   :  { %v631_v27 = vadd.f32 %v630_v26, %v572_v52 }
 0x1b2   :  { %v1826_v28 = vadd.f32 %v631_v27, %v1662_v11 }
 0x1b4   :  { %694 = vadd.xlane.f32.xlu1 %v1826_v28  ;;  %v721_v10 = vmul.f32 %v1826_v28, %v1826_v28 }
 0x1b5   :  { %v574_v32 = vpop.f32.mrf.mxu2 }
 0x1b6   :  { %v575_v54 = vadd.f32 %v1727_v29, %v574_v32  ;;  %v633_v34 = vpop.f32.mrf.mxu3  ;;  %754 = vadd.xlane.f32.xlu0 %v721_v10 }
 0x1b8   :  { %v634_v35 = vadd.f32 %v633_v34, %v575_v54 }
 0x1ba   :  { %v1833_v36 = vadd.f32 %v634_v35, %v1666_v21 }
 0x1bc   :  { %696 = vadd.xlane.f32.xlu2 %v1833_v36  ;;  %v722_v11 = vmul.f32 %v1833_v36, %v1833_v36 }
 0x1bd   :  { %v576_v37 = vpop.f32.mrf.mxu2 }
 0x1be   :  { %v577_v55 = vadd.f32 %v1727_v29, %v576_v37  ;;  %v635_v40 = vpop.f32.mrf.mxu3  ;;  %756 = vadd.xlane.f32.xlu1 %v722_v11 }
 0x1bf   :  { %v669_v41 = vpop.xlane.xlu0 %668 }
 0x1c0   :  { %v636_v44 = vadd.f32 %v635_v40, %v577_v55  ;;  %v768_v45 = vmul.f32 0.0078125, %v669_v41 }
 0x1c1   :  { %v729_v57 = vpop.xlane.xlu2 %728 }
 0x1c2   :  { %v1840_v49 = vadd.f32 %v636_v44, %v1668_v22  ;;  %v808_v50 = vmul.f32 %v768_v45, %v768_v45  ;;  %v788_v21 = vmul.f32 0.0078125, %v729_v57  ;;  %v1088_v41 = vsub.f32 %v1732_v39, %v768_v45  ;;  %v1870_v44 = vld [vmem:[%s2039_s5] ss:$0 sm:$0xff]  ;;  %s1565_s5 = smov [#allocation10]  }
 0x1c4   :  { %v828_v53 = vsub.f32 %v788_v21, %v808_v50  ;;  %698 = vadd.xlane.f32.xlu0 %v1840_v49  ;;  %v723_v56 = vmul.f32 %v1840_v49, %v1840_v49 }
 0x1c5   :  { %v579_v58 = vpop.f32.mrf.mxu2 }
 0x1c6   :  { %v848_v47 = vmax.f32 %v828_v53, 0.0  ;;  %v580_v62 = vadd.f32 %v1727_v29, %v579_v58  ;;  %v638_v63 = vpop.f32.mrf.mxu3  ;;  %758 = vadd.xlane.f32.xlu2 %v723_v56  ;;  %v1878_v53 = vld [vmem:[%s2040_s6] ss:$0 sm:$0xff]  ;;  %s1200_s6 = sshll.u32 %s1565_s5, 4  ;;  %s1201_s6 = int_to_ptr.vmem [resolvable:$true] %s1200_s6 }
 0x1c7   :  { %v671_v0 = vpop.xlane.xlu0 %670 }
 0x1c8   :  { %v868_v60 = vadd.f32 1e-06, %v848_v47  ;;  %v639_v30 = vadd.f32 %v638_v63, %v580_v62  ;;  %v1849_v31 = vmul.f32 0.0078125, %v671_v0 }
 0x1ca   :  { %1389 = vrsqrt.f32 %v868_v60  ;;  %v1847_v22 = vadd.f32 %v639_v30, %v1672_v24  ;;  %v809_v1 = vmul.f32 %v1849_v31, %v1849_v31  ;;  %vm894_vm1 = vweird.f32 %v868_v60 }
 0x1cc   :  { %700 = vadd.xlane.f32.xlu1 %v1847_v22  ;;  %v724_v5 = vmul.f32 %v1847_v22, %v1847_v22 }
 0x1cd   :  { %v581_v6 = vpop.f32.mrf.mxu2 }
 0x1ce   :  { %v582_v61 = vadd.f32 %v1727_v29, %v581_v6  ;;  %v640_v9 = vpop.f32.mrf.mxu3  ;;  %760 = vadd.xlane.f32.xlu0 %v724_v5 }
 0x1cf   :  { %v673_v48 = vpop.xlane.xlu1 %672  ;;  %v731_v12 = vpop.xlane.xlu0 %730 }
 0x1d0   :  { %v1390_v13 = vpop.eup %1389  ;;  %v641_v24 = vadd.f32 %v640_v9, %v582_v61  ;;  %v789_v16 = vmul.f32 0.0078125, %v731_v12  ;;  %v1860_v20 = vmul.f32 0.0078125, %v673_v48 }
 0x1d1   :  { %v889_v51 = vmul.f32 %v1390_v13, %v868_v60  ;;  %vm895_vm0 = vweird.f32 %v1390_v13 }
 0x1d2   :  { %v1858_v17 = vadd.f32 %v641_v24, %v1674_v25  ;;  %v829_v18 = vsub.f32 %v789_v16, %v809_v1  ;;  %v810_v25 = vmul.f32 %v1860_v20, %v1860_v20  ;;  %vm896_vm2 = vmor %vm894_vm1, %vm895_vm0 }
 0x1d3   :  { %v890_v2 = vmul.f32 %v1390_v13, %v889_v51 }
 0x1d4   :  { %v849_v52 = vmax.f32 %v829_v18, 0.0  ;;  %702 = vadd.xlane.f32.xlu2 %v1858_v17 }
 0x1d5   :  { %v891_v26 = vmul.f32 0.5, %v890_v2  ;;  %v584_v27 = vpop.f32.mrf.mxu2 }
 0x1d6   :  { %v869_v10 = vadd.f32 1e-06, %v849_v52  ;;  %v585_v32 = vadd.f32 %v1727_v29, %v584_v27  ;;  %v643_v54 = vpop.f32.mrf.mxu3 }
 0x1d7   :  { %v892_v34 = vsub.f32 1.5, %v891_v26  ;;  %v733_v35 = vpop.xlane.xlu1 %732 }
 0x1d8   :  { %1391 = vrsqrt.f32 %v869_v10  ;;  %v644_v11 = vadd.f32 %v643_v54, %v585_v32  ;;  %v790_v37 = vmul.f32 0.0078125, %v733_v35  ;;  %vm904_vm4 = vweird.f32 %v869_v10 }
 0x1d9   :  { %v893_v55 = vmul.f32 %v1390_v13, %v892_v34  ;;  %v735_v40 = vpop.xlane.xlu2 %734  ;;  %v1089_v35 = vsub.f32 %v1742_v4, %v1849_v31 }
 0x1da   :  { %v1873_v57 = vadd.f32 %v644_v11, %v1686_v42  ;;  %v830_v50 = vsub.f32 %v790_v37, %v810_v25  ;;  %v791_v24 = vmul.f32 0.0078125, %v735_v40 }
 0x1db   :  { %v897_v21 = vsel %vm896_vm2, %v1390_v13, %v893_v55 }
 0x1dc   :  { %v1108_v56 = vmul.f32 %v1088_v41, %v897_v21  ;;  %v850_v58 = vmax.f32 %v830_v50, 0.0  ;;  %704 = vadd.xlane.f32.xlu0 %v1873_v57  ;;  %v726_v39 = vmul.f32 %v1873_v57, %v1873_v57 }
 0x1dd   :  { %v586_v45 = vpop.f32.mrf.mxu2 }
 0x1de   :  { %v1392_v47 = vpop.eup %1391  ;;  %v1132_v62 = vmul.f32 %v1870_v44, %v1108_v56  ;;  %v870_v42 = vadd.f32 1e-06, %v850_v58  ;;  %v587_v63 = vadd.f32 %v1727_v29, %v586_v45  ;;  %764 = vadd.xlane.f32.xlu2 %v726_v39  ;;  %v645_v60 = vpop.f32.mrf.mxu3  ;;  %v725_v58 = vmul.f32 %v1858_v17, %v1858_v17 }
 0x1df   :  { %v899_v0 = vmul.f32 %v1392_v47, %v869_v10  ;;  %v675_v30 = vpop.xlane.xlu1 %674  ;;  %vm905_vm3 = vweird.f32 %v1392_v47 }
 0x1e0   :  { %v1156_v5 = vadd.f32 %v1878_v53, %v1132_v62  ;;  %1393 = vrsqrt.f32 %v870_v42  ;;  %v646_v6 = vadd.f32 %v645_v60, %v587_v63  ;;  %v1886_v9 = vmul.f32 0.0078125, %v675_v30  ;;  %vm906_vm5 = vmor %vm904_vm4, %vm905_vm3 }
 0x1e1   :  { %v900_v61 = vmul.f32 %v1392_v47, %v899_v0  ;;  %v737_v48 = vpop.xlane.xlu0 %736  ;;  %v677_v12 = vpop.xlane.xlu2 %676  ;;  %vm914_vm7 = vweird.f32 %v870_v42  ;;  %v1090_v60 = vsub.f32 %v1747_v8, %v1860_v20 }
 0x1e2   :  { %1176 = vst [vmem:[#allocation10] sm:$0xff] %v1156_v5  ;;  %v1889_v13 = vadd.f32 %v646_v6, %v1688_v43  ;;  %v1891_v1 = vmul.f32 0.0078125, %v677_v12  ;;  %v811_v16 = vmul.f32 %v1886_v9, %v1886_v9  ;;  %v792_v51 = vmul.f32 0.0078125, %v737_v48 }
 0x1e3   :  { %v901_v29 = vmul.f32 0.5, %v900_v61 }
 0x1e4   :  { %v812_v18 = vmul.f32 %v1891_v1, %v1891_v1  ;;  %706 = vadd.xlane.f32.xlu1 %v1889_v13  ;;  %v727_v2 = vmul.f32 %v1889_v13, %v1889_v13  ;;  %v831_v43 = vsub.f32 %v791_v24, %v811_v16 }
 0x1e5   :  { %v902_v52 = vsub.f32 1.5, %v901_v29 }
 0x1e6   :  { %v1394_v26 = vpop.eup %1393  ;;  %v832_v27 = vsub.f32 %v792_v51, %v812_v18  ;;  %766 = vadd.xlane.f32.xlu0 %v727_v2  ;;  %v851_v34 = vmax.f32 %v831_v43, 0.0 }
 0x1e7   :  { %v903_v32 = vmul.f32 %v1392_v47, %v902_v52  ;;  %v909_v54 = vmul.f32 %v1394_v26, %v870_v42  ;;  %vm915_vm6 = vweird.f32 %v1394_v26 }
 0x1e8   :  { %v852_v25 = vmax.f32 %v832_v27, 0.0  ;;  %v871_v55 = vadd.f32 1e-06, %v851_v34  ;;  %vm916_vm8 = vmor %vm914_vm7, %vm915_vm6 }
 0x1e9   :  { %v907_v11 = vsel %vm906_vm5, %v1392_v47, %v903_v32  ;;  %v910_v37 = vmul.f32 %v1394_v26, %v909_v54  ;;  %v739_v40 = vpop.xlane.xlu1 %738  ;;  %v679_v41 = vpop.xlane.xlu2 %678 }
 0x1ea   :  { %v1109_v50 = vmul.f32 %v1089_v35, %v907_v11  ;;  %v872_v21 = vadd.f32 1e-06, %v852_v25  ;;  %v1902_v56 = vmul.f32 0.0078125, %v679_v41  ;;  %1395 = vrsqrt.f32 %v871_v55 }
 0x1eb   :  { %v911_v10 = vmul.f32 0.5, %v910_v37  ;;  %v793_v4 = vmul.f32 0.0078125, %v739_v40  ;;  %v1091_v35 = vsub.f32 %v1754_v15, %v1886_v9  ;;  %vm924_vm11 = vweird.f32 %v871_v55 }
 0x1ec   :  { %v1133_v39 = vmul.f32 %v1870_v44, %v1109_v50  ;;  %1397 = vrsqrt.f32 %v872_v21  ;;  %v813_v31 = vmul.f32 %v1902_v56, %v1902_v56  ;;  %762 = vadd.xlane.f32.xlu1 %v725_v58  ;;  %vm934_vm13 = vweird.f32 %v872_v21 }
 0x1ed   :  { %v912_v45 = vsub.f32 1.5, %v911_v10  ;;  %v1092_v15 = vsub.f32 %v1762_v23, %v1891_v1 }
 0x1ee   :  { %v1157_v47 = vadd.f32 %v1878_v53, %v1133_v39  ;;  %v833_v62 = vsub.f32 %v793_v4, %v813_v31 }
 0x1ef   :  { %v913_v63 = vmul.f32 %v1394_v26, %v912_v45  ;;  %v681_v0 = vpop.xlane.xlu0 %680 }
 0x1f0   :  { %1177 = vst [vmem:[#allocation10 + $0x8] sm:$0xff] %v1157_v47  ;;  %v853_v30 = vmax.f32 %v833_v62, 0.0  ;;  %v1912_v5 = vmul.f32 0.0078125, %v681_v0  ;;  %v1396_v6 = vpop.eup %1395 }
 0x1f1   :  { %v917_v61 = vsel %vm916_vm8, %v1394_v26, %v913_v63  ;;  %v919_v29 = vmul.f32 %v1396_v6, %v871_v55  ;;  %v741_v16 = vpop.xlane.xlu2 %740  ;;  %vm925_vm9 = vweird.f32 %v1396_v6 }
 0x1f2   :  { %v1398_v48 = vpop.eup %1397  ;;  %v1110_v12 = vmul.f32 %v1090_v60, %v917_v61  ;;  %v873_v24 = vadd.f32 1e-06, %v853_v30  ;;  %v814_v42 = vmul.f32 %v1912_v5, %v1912_v5  ;;  %v794_v20 = vmul.f32 0.0078125, %v741_v16  ;;  %vm926_vm12 = vmor %vm924_vm11, %vm925_vm9 }
 0x1f3   :  { %v929_v51 = vmul.f32 %v1398_v48, %v872_v21  ;;  %v920_v2 = vmul.f32 %v1396_v6, %v919_v29  ;;  %vm935_vm10 = vweird.f32 %v1398_v48 }
 0x1f4   :  { %v1134_v18 = vmul.f32 %v1870_v44, %v1110_v12  ;;  %1399 = vrsqrt.f32 %v873_v24  ;;  %v834_v26 = vsub.f32 %v794_v20, %v814_v42  ;;  %vm936_vm14 = vmor %vm934_vm13, %vm935_vm10  ;;  %vm944_vm0 = vweird.f32 %v873_v24 }
 0x1f5   :  { %v930_v8 = vmul.f32 %v1398_v48, %v929_v51  ;;  %v921_v43 = vmul.f32 0.5, %v920_v2 }
 0x1f6   :  { %v1158_v52 = vadd.f32 %v1878_v53, %v1134_v18  ;;  %v854_v11 = vmax.f32 %v834_v26, 0.0  ;;  %v1093_v18 = vsub.f32 %v1770_v33, %v1902_v56 }
 0x1f7   :  { %v931_v27 = vmul.f32 0.5, %v930_v8  ;;  %v683_v32 = vpop.xlane.xlu1 %682  ;;  %v922_v54 = vsub.f32 1.5, %v921_v43 }
 0x1f8   :  { %1178 = vst [vmem:[#allocation10 + $0x10] sm:$0xff] %v1158_v52  ;;  %v1918_v34 = vmul.f32 0.0078125, %v683_v32  ;;  %v874_v4 = vadd.f32 1e-06, %v854_v11 }
 0x1f9   :  { %v932_v25 = vsub.f32 1.5, %v931_v27  ;;  %v743_v37 = vpop.xlane.xlu0 %742  ;;  %v923_v41 = vmul.f32 %v1396_v6, %v922_v54 }
 0x1fa   :  { %v1400_v40 = vpop.eup %1399  ;;  %v815_v50 = vmul.f32 %v1918_v34, %v1918_v34  ;;  %v795_v58 = vmul.f32 0.0078125, %v743_v37  ;;  %1401 = vrsqrt.f32 %v874_v4  ;;  %vm954_vm3 = vweird.f32 %v874_v4 }
 0x1fb   :  { %v933_v10 = vmul.f32 %v1398_v48, %v932_v25  ;;  %v939_v39 = vmul.f32 %v1400_v40, %v873_v24  ;;  %v927_v31 = vsel %vm926_vm12, %v1396_v6, %v923_v41  ;;  %vm945_vm15 = vweird.f32 %v1400_v40 }
 0x1fc   :  { %v835_v9 = vsub.f32 %v795_v58, %v815_v50  ;;  %v1111_v45 = vmul.f32 %v1091_v35, %v927_v31  ;;  %vm946_vm1 = vmor %vm944_vm0, %vm945_vm15 }
 0x1fd   :  { %v937_v47 = vsel %vm936_vm14, %v1398_v48, %v933_v10  ;;  %v940_v62 = vmul.f32 %v1400_v40, %v939_v39  ;;  %v1094_v10 = vsub.f32 %v1777_v38, %v1912_v5  ;;  %v1095_v38 = vsub.f32 %v1784_v46, %v1918_v34 }
 0x1fe   :  { %v1112_v55 = vmul.f32 %v1092_v15, %v937_v47  ;;  %v855_v63 = vmax.f32 %v835_v9, 0.0  ;;  %v1135_v0 = vmul.f32 %v1870_v44, %v1111_v45 }
 0x1ff   :  { %v941_v60 = vmul.f32 0.5, %v940_v62  ;;  %v685_v30 = vpop.xlane.xlu2 %684 }
 0x200   :  { %v1136_v21 = vmul.f32 %v1870_v44, %v1112_v55  ;;  %v875_v61 = vadd.f32 1e-06, %v855_v63  ;;  %v1928_v12 = vmul.f32 0.0078125, %v685_v30  ;;  %v1159_v6 = vadd.f32 %v1878_v53, %v1135_v0  ;;  %v1402_v16 = vpop.eup %1401 }
 0x201   :  { %v942_v29 = vsub.f32 1.5, %v941_v60  ;;  %v745_v23 = vpop.xlane.xlu1 %744  ;;  %v949_v2 = vmul.f32 %v1402_v16, %v874_v4  ;;  %vm955_vm2 = vweird.f32 %v1402_v16 }
 0x202   :  { %v1160_v1 = vadd.f32 %v1878_v53, %v1136_v21  ;;  %1403 = vrsqrt.f32 %v875_v61  ;;  %v816_v48 = vmul.f32 %v1928_v12, %v1928_v12  ;;  %1179 = vst [vmem:[#allocation10 + $0x18] sm:$0xff] %v1159_v6  ;;  %v796_v42 = vmul.f32 0.0078125, %v745_v23  ;;  %vm956_vm4 = vmor %vm954_vm3, %vm955_vm2 }
 0x203   :  { %v943_v51 = vmul.f32 %v1400_v40, %v942_v29  ;;  %v950_v43 = vmul.f32 %v1402_v16, %v949_v2  ;;  %vm964_vm6 = vweird.f32 %v875_v61 }
 0x204   :  { %1180 = vst [vmem:[#allocation10 + $0x20] sm:$0xff] %v1160_v1  ;;  %v836_v20 = vsub.f32 %v796_v42, %v816_v48 }
 0x205   :  { %v947_v8 = vsel %vm946_vm1, %v1400_v40, %v943_v51  ;;  %v951_v35 = vmul.f32 0.5, %v950_v43 }
 0x206   :  { %v1113_v52 = vmul.f32 %v1093_v18, %v947_v8  ;;  %v856_v27 = vmax.f32 %v836_v20, 0.0 }
 0x207   :  { %v687_v26 = vpop.xlane.xlu0 %686  ;;  %v952_v50 = vsub.f32 1.5, %v951_v35 }
 0x208   :  { %v1404_v32 = vpop.eup %1403  ;;  %v1137_v54 = vmul.f32 %v1870_v44, %v1113_v52  ;;  %v1937_v25 = vmul.f32 0.0078125, %v687_v26  ;;  %v876_v11 = vadd.f32 1e-06, %v856_v27  ;;  %v1096_v26 = vsub.f32 %v1791_v59, %v1928_v12 }
 0x209   :  { %v959_v24 = vmul.f32 %v1404_v32, %v875_v61  ;;  %v747_v37 = vpop.xlane.xlu2 %746  ;;  %v953_v58 = vmul.f32 %v1402_v16, %v952_v50  ;;  %vm965_vm5 = vweird.f32 %v1404_v32 }
 0x20a   :  { %v1161_v41 = vadd.f32 %v1878_v53, %v1137_v54  ;;  %v817_v33 = vmul.f32 %v1937_v25, %v1937_v25  ;;  %1405 = vrsqrt.f32 %v876_v11  ;;  %v797_v40 = vmul.f32 0.0078125, %v747_v37  ;;  %vm966_vm7 = vmor %vm964_vm6, %vm965_vm5 }
 0x20b   :  { %v960_v56 = vmul.f32 %v1404_v32, %v959_v24  ;;  %v957_v15 = vsel %vm956_vm4, %v1402_v16, %v953_v58  ;;  %vm974_vm9 = vweird.f32 %v876_v11 }
 0x20c   :  { %1181 = vst [vmem:[#allocation10 + $0x28] sm:$0xff] %v1161_v41  ;;  %v837_v31 = vsub.f32 %v797_v40, %v817_v33  ;;  %v1114_v9 = vmul.f32 %v1094_v10, %v957_v15 }
 0x20d   :  { %v961_v39 = vmul.f32 0.5, %v960_v56 }
 0x20e   :  { %v857_v47 = vmax.f32 %v837_v31, 0.0  ;;  %v1138_v0 = vmul.f32 %v1870_v44, %v1114_v9 }
 0x20f   :  { %v962_v45 = vsub.f32 1.5, %v961_v39  ;;  %v689_v62 = vpop.xlane.xlu1 %688 }
 0x210   :  { %v1944_v55 = vmul.f32 0.0078125, %v689_v62  ;;  %v1406_v63 = vpop.eup %1405  ;;  %v877_v4 = vadd.f32 1e-06, %v857_v47  ;;  %v1162_v6 = vadd.f32 %v1878_v53, %v1138_v0 }
 0x211   :  { %v963_v60 = vmul.f32 %v1404_v32, %v962_v45  ;;  %v749_v30 = vpop.xlane.xlu0 %748  ;;  %v969_v5 = vmul.f32 %v1406_v63, %v876_v11  ;;  %vm975_vm8 = vweird.f32 %v1406_v63  ;;  %v1097_v45 = vsub.f32 %v1798_v3, %v1937_v25 }
 0x212   :  { %v818_v21 = vmul.f32 %v1944_v55, %v1944_v55  ;;  %1407 = vrsqrt.f32 %v877_v4  ;;  %v798_v48 = vmul.f32 0.0078125, %v749_v30  ;;  %1182 = vst [vmem:[#allocation10 + $0x30] sm:$0xff] %v1162_v6  ;;  %vm976_vm10 = vmor %vm974_vm9, %vm975_vm8  ;;  %vm984_vm12 = vweird.f32 %v877_v4 }
 0x213   :  { %v967_v29 = vsel %vm966_vm7, %v1404_v32, %v963_v60  ;;  %v970_v1 = vmul.f32 %v1406_v63, %v969_v5 }
 0x214   :  { %v1115_v23 = vmul.f32 %v1095_v38, %v967_v29  ;;  %v838_v51 = vsub.f32 %v798_v48, %v818_v21 }
 0x215   :  { %v971_v16 = vmul.f32 0.5, %v970_v1 }
 0x216   :  { %v1139_v61 = vmul.f32 %v1870_v44, %v1115_v23  ;;  %v858_v18 = vmax.f32 %v838_v51, 0.0  ;;  %v1098_v51 = vsub.f32 %v1805_v7, %v1944_v55 }
 0x217   :  { %v691_v42 = vpop.xlane.xlu2 %690  ;;  %v972_v34 = vsub.f32 1.5, %v971_v16 }
 0x218   :  { %v1163_v46 = vadd.f32 %v1878_v53, %v1139_v61  ;;  %v1954_v2 = vmul.f32 0.0078125, %v691_v42  ;;  %v1408_v8 = vpop.eup %1407  ;;  %v878_v27 = vadd.f32 1e-06, %v858_v18 }
 0x219   :  { %v751_v20 = vpop.xlane.xlu1 %750  ;;  %v973_v52 = vmul.f32 %v1406_v63, %v972_v34  ;;  %v979_v43 = vmul.f32 %v1408_v8, %v877_v4  ;;  %vm985_vm11 = vweird.f32 %v1408_v8 }
 0x21a   :  { %1183 = vst [vmem:[#allocation10 + $0x38] sm:$0xff] %v1163_v46  ;;  %v819_v32 = vmul.f32 %v1954_v2, %v1954_v2  ;;  %v799_v54 = vmul.f32 0.0078125, %v751_v20  ;;  %1409 = vrsqrt.f32 %v878_v27  ;;  %vm986_vm13 = vmor %vm984_vm12, %vm985_vm11  ;;  %vm994_vm15 = vweird.f32 %v878_v27 }
 0x21b   :  { %v977_v35 = vsel %vm976_vm10, %v1406_v63, %v973_v52  ;;  %v980_v24 = vmul.f32 %v1408_v8, %v979_v43 }
 0x21c   :  { %v1116_v37 = vmul.f32 %v1096_v26, %v977_v35  ;;  %v839_v41 = vsub.f32 %v799_v54, %v819_v32 }
 0x21d   :  { %v981_v50 = vmul.f32 0.5, %v980_v24 }
 0x21e   :  { %v1140_v33 = vmul.f32 %v1870_v44, %v1116_v37  ;;  %v859_v56 = vmax.f32 %v839_v41, 0.0  ;;  %v1099_v41 = vsub.f32 %v1812_v14, %v1954_v2 }
 0x21f   :  { %v693_v11 = vpop.xlane.xlu0 %692  ;;  %v982_v40 = vsub.f32 1.5, %v981_v50 }
 0x220   :  { %v1961_v58 = vmul.f32 0.0078125, %v693_v11  ;;  %v1164_v59 = vadd.f32 %v1878_v53, %v1140_v33  ;;  %v879_v12 = vadd.f32 1e-06, %v859_v56  ;;  %v1410_v39 = vpop.eup %1409 }
 0x221   :  { %v753_v10 = vpop.xlane.xlu2 %752  ;;  %v983_v31 = vmul.f32 %v1408_v8, %v982_v40  ;;  %v989_v47 = vmul.f32 %v1410_v39, %v878_v27  ;;  %vm995_vm14 = vweird.f32 %v1410_v39 }
 0x222   :  { %v820_v15 = vmul.f32 %v1961_v58, %v1961_v58  ;;  %v800_v9 = vmul.f32 0.0078125, %v753_v10  ;;  %1184 = vst [vmem:[#allocation10 + $0x40] sm:$0xff] %v1164_v59  ;;  %1411 = vrsqrt.f32 %v879_v12  ;;  %vm996_vm0 = vmor %vm994_vm15, %vm995_vm14  ;;  %vm1004_vm2 = vweird.f32 %v879_v12 }
 0x223   :  { %v987_v62 = vsel %vm986_vm13, %v1408_v8, %v983_v31  ;;  %v990_v60 = vmul.f32 %v1410_v39, %v989_v47 }
 0x224   :  { %v840_v63 = vsub.f32 %v800_v9, %v820_v15  ;;  %v1117_v0 = vmul.f32 %v1097_v45, %v987_v62  ;;  %v1100_v62 = vsub.f32 %v1819_v19, %v1961_v58 }
 0x225   :  { %v991_v5 = vmul.f32 0.5, %v990_v60 }
 0x226   :  { %v860_v30 = vmax.f32 %v840_v63, 0.0  ;;  %v1141_v38 = vmul.f32 %v1870_v44, %v1117_v0 }
 0x227   :  { %v695_v4 = vpop.xlane.xlu1 %694  ;;  %v992_v1 = vsub.f32 1.5, %v991_v5 }
 0x228   :  { %v880_v21 = vadd.f32 1e-06, %v860_v30  ;;  %v1969_v6 = vmul.f32 0.0078125, %v695_v4  ;;  %v1412_v29 = vpop.eup %1411  ;;  %v1165_v23 = vadd.f32 %v1878_v53, %v1141_v38 }
 0x229   :  { %v755_v3 = vpop.xlane.xlu0 %754  ;;  %v999_v25 = vmul.f32 %v1412_v29, %v879_v12  ;;  %v993_v48 = vmul.f32 %v1410_v39, %v992_v1  ;;  %vm1005_vm1 = vweird.f32 %v1412_v29 }
 0x22a   :  { %1413 = vrsqrt.f32 %v880_v21  ;;  %1185 = vst [vmem:[#allocation10 + $0x48] sm:$0xff] %v1165_v23  ;;  %v821_v61 = vmul.f32 %v1969_v6, %v1969_v6  ;;  %v801_v16 = vmul.f32 0.0078125, %v755_v3  ;;  %vm1006_vm3 = vmor %vm1004_vm2, %vm1005_vm1  ;;  %vm1014_vm5 = vweird.f32 %v880_v21 }
 0x22b   :  { %v1000_v42 = vmul.f32 %v1412_v29, %v999_v25  ;;  %v997_v46 = vsel %vm996_vm0, %v1410_v39, %v993_v48 }
 0x22c   :  { %v841_v34 = vsub.f32 %v801_v16, %v821_v61  ;;  %v1118_v18 = vmul.f32 %v1098_v51, %v997_v46  ;;  %v1101_v46 = vsub.f32 %v1826_v28, %v1969_v6 }
 0x22d   :  { %v1001_v8 = vmul.f32 0.5, %v1000_v42 }
 0x22e   :  { %v861_v20 = vmax.f32 %v841_v34, 0.0  ;;  %v1142_v26 = vmul.f32 %v1870_v44, %v1118_v18 }
 0x22f   :  { %v697_v52 = vpop.xlane.xlu2 %696  ;;  %v1002_v32 = vsub.f32 1.5, %v1001_v8 }
 0x230   :  { %v1414_v43 = vpop.eup %1413  ;;  %v1977_v27 = vmul.f32 0.0078125, %v697_v52  ;;  %v881_v35 = vadd.f32 1e-06, %v861_v20  ;;  %v1166_v7 = vadd.f32 %v1878_v53, %v1142_v26 }
 0x231   :  { %v1009_v54 = vmul.f32 %v1414_v43, %v880_v21  ;;  %v757_v24 = vpop.xlane.xlu1 %756  ;;  %v1003_v55 = vmul.f32 %v1412_v29, %v1002_v32  ;;  %vm1015_vm4 = vweird.f32 %v1414_v43 }
 0x232   :  { %v822_v37 = vmul.f32 %v1977_v27, %v1977_v27  ;;  %1415 = vrsqrt.f32 %v881_v35  ;;  %v802_v33 = vmul.f32 0.0078125, %v757_v24  ;;  %1186 = vst [vmem:[#allocation10 + $0x50] sm:$0xff] %v1166_v7  ;;  %vm1016_vm6 = vmor %vm1014_vm5, %vm1015_vm4  ;;  %vm1024_vm8 = vweird.f32 %v881_v35 }
 0x233   :  { %v1010_v50 = vmul.f32 %v1414_v43, %v1009_v54  ;;  %v1007_v56 = vsel %vm1006_vm3, %v1412_v29, %v1003_v55  ;;  %v1102_v6 = vsub.f32 %v1833_v36, %v1977_v27 }
 0x234   :  { %v1119_v11 = vmul.f32 %v1099_v41, %v1007_v56  ;;  %v842_v59 = vsub.f32 %v802_v33, %v822_v37 }
 0x235   :  { %v1011_v40 = vmul.f32 0.5, %v1010_v50 }
 0x236   :  { %v1143_v10 = vmul.f32 %v1870_v44, %v1119_v11  ;;  %v862_v12 = vmax.f32 %v842_v59, 0.0 }
 0x237   :  { %v1012_v39 = vsub.f32 1.5, %v1011_v40  ;;  %v699_v31 = vpop.xlane.xlu0 %698 }
 0x238   :  { %v1985_v15 = vmul.f32 0.0078125, %v699_v31  ;;  %v1416_v9 = vpop.eup %1415  ;;  %v1167_v14 = vadd.f32 %v1878_v53, %v1143_v10  ;;  %v882_v45 = vadd.f32 1e-06, %v862_v12 }
 0x239   :  { %v1013_v2 = vmul.f32 %v1414_v43, %v1012_v39  ;;  %v759_v47 = vpop.xlane.xlu2 %758  ;;  %v1019_v63 = vmul.f32 %v1416_v9, %v881_v35  ;;  %vm1025_vm7 = vweird.f32 %v1416_v9 }
 0x23a   :  { %v823_v0 = vmul.f32 %v1985_v15, %v1985_v15  ;;  %1187 = vst [vmem:[#allocation10 + $0x58] sm:$0xff] %v1167_v14  ;;  %1417 = vrsqrt.f32 %v882_v45  ;;  %v803_v30 = vmul.f32 0.0078125, %v759_v47  ;;  %vm1026_vm9 = vmor %vm1024_vm8, %vm1025_vm7  ;;  %vm1034_vm11 = vweird.f32 %v882_v45 }
 0x23b   :  { %v1017_v60 = vsel %vm1016_vm6, %v1414_v43, %v1013_v2  ;;  %v1020_v5 = vmul.f32 %v1416_v9, %v1019_v63  ;;  %v1103_v14 = vsub.f32 %v1840_v49, %v1985_v15 }
 0x23c   :  { %v1120_v38 = vmul.f32 %v1100_v62, %v1017_v60  ;;  %v843_v4 = vsub.f32 %v803_v30, %v823_v0 }
 0x23d   :  { %v1021_v21 = vmul.f32 0.5, %v1020_v5 }
 0x23e   :  { %v1144_v29 = vmul.f32 %v1870_v44, %v1120_v38  ;;  %v863_v23 = vmax.f32 %v843_v4, 0.0 }
 0x23f   :  { %v701_v1 = vpop.xlane.xlu1 %700  ;;  %v1022_v19 = vsub.f32 1.5, %v1021_v21 }
 0x240   :  { %v1168_v3 = vadd.f32 %v1878_v53, %v1144_v29  ;;  %v1994_v58 = vmul.f32 0.0078125, %v701_v1  ;;  %v1418_v25 = vpop.eup %1417  ;;  %v883_v48 = vadd.f32 1e-06, %v863_v23 }
 0x241   :  { %v761_v61 = vpop.xlane.xlu0 %760  ;;  %v1023_v16 = vmul.f32 %v1416_v9, %v1022_v19  ;;  %v1029_v51 = vmul.f32 %v1418_v25, %v882_v45  ;;  %vm1035_vm10 = vweird.f32 %v1418_v25 }
 0x242   :  { %1188 = vst [vmem:[#allocation10 + $0x60] sm:$0xff] %v1168_v3  ;;  %v824_v42 = vmul.f32 %v1994_v58, %v1994_v58  ;;  %1419 = vrsqrt.f32 %v883_v48  ;;  %v804_v34 = vmul.f32 0.0078125, %v761_v61  ;;  %vm1036_vm12 = vmor %vm1034_vm11, %vm1035_vm10  ;;  %vm1044_vm14 = vweird.f32 %v883_v48 }
 0x243   :  { %v1027_v18 = vsel %vm1026_vm9, %v1416_v9, %v1023_v16  ;;  %v1030_v8 = vmul.f32 %v1418_v25, %v1029_v51  ;;  %v1104_v3 = vsub.f32 %v1847_v22, %v1994_v58 }
 0x244   :  { %v1121_v20 = vmul.f32 %v1101_v46, %v1027_v18  ;;  %v844_v52 = vsub.f32 %v804_v34, %v824_v42 }
 0x245   :  { %v1031_v43 = vmul.f32 0.5, %v1030_v8 }
 0x246   :  { %v1145_v26 = vmul.f32 %v1870_v44, %v1121_v20  ;;  %v864_v32 = vmax.f32 %v844_v52, 0.0 }
 0x247   :  { %v1032_v54 = vsub.f32 1.5, %v1031_v43  ;;  %v703_v55 = vpop.xlane.xlu2 %702 }
 0x248   :  { %v1420_v35 = vpop.eup %1419  ;;  %v1169_v24 = vadd.f32 %v1878_v53, %v1145_v26  ;;  %v884_v7 = vadd.f32 1e-06, %v864_v32  ;;  %v785_v61 = vmul.f32 0.0078125, %v703_v55 }
 0x249   :  { %v1033_v37 = vmul.f32 %v1418_v25, %v1032_v54  ;;  %v1039_v28 = vmul.f32 %v1420_v35, %v883_v48  ;;  %vm1045_vm13 = vweird.f32 %v1420_v35 }
 0x24a   :  { %1189 = vst [vmem:[#allocation10 + $0x68] sm:$0xff] %v1169_v24  ;;  %1421 = vrsqrt.f32 %v884_v7  ;;  %vm1046_vm15 = vmor %vm1044_vm14, %vm1045_vm13  ;;  %vm1054_vm1 = vweird.f32 %v884_v7  ;;  %v825_v20 = vmul.f32 %v785_v61, %v785_v61 }
 0x24b   :  { %v1037_v41 = vsel %vm1036_vm12, %v1418_v25, %v1033_v37  ;;  %v1040_v50 = vmul.f32 %v1420_v35, %v1039_v28 }
 0x24c   :  { %v1122_v33 = vmul.f32 %v1102_v6, %v1037_v41 }
 0x24d   :  { %v1041_v56 = vmul.f32 0.5, %v1040_v50 }
 0x24e   :  { %v1146_v11 = vmul.f32 %v1870_v44, %v1122_v33 }
 0x24f   :  { %v705_v40 = vpop.xlane.xlu0 %704  ;;  %v1042_v59 = vsub.f32 1.5, %v1041_v56 }
 0x250   :  { %v2005_v10 = vmul.f32 0.0078125, %v705_v40  ;;  %v1422_v39 = vpop.eup %1421  ;;  %v1170_v12 = vadd.f32 %v1878_v53, %v1146_v11 }
 0x251   :  { %v765_v31 = vpop.xlane.xlu2 %764  ;;  %v1043_v9 = vmul.f32 %v1420_v35, %v1042_v59  ;;  %v1049_v36 = vmul.f32 %v1422_v39, %v884_v7  ;;  %vm1055_vm0 = vweird.f32 %v1422_v39 }
 0x252   :  { %v826_v27 = vmul.f32 %v2005_v10, %v2005_v10  ;;  %1190 = vst [vmem:[#allocation10 + $0x70] sm:$0xff] %v1170_v12  ;;  %v806_v2 = vmul.f32 0.0078125, %v765_v31  ;;  %vm1056_vm2 = vmor %vm1054_vm1, %vm1055_vm0  ;;  %v1106_v55 = vsub.f32 %v1873_v57, %v2005_v10 }
 0x253   :  { %v1047_v45 = vsel %vm1046_vm15, %v1420_v35, %v1043_v9  ;;  %v1050_v47 = vmul.f32 %v1422_v39, %v1049_v36 }
 0x254   :  { %v1123_v62 = vmul.f32 %v1103_v14, %v1047_v45  ;;  %v846_v63 = vsub.f32 %v806_v2, %v826_v27  ;;  %v1105_v2 = vsub.f32 %v1858_v17, %v785_v61 }
 0x255   :  { %v1051_v0 = vmul.f32 0.5, %v1050_v47 }
 0x256   :  { %v1147_v60 = vmul.f32 %v1870_v44, %v1123_v62  ;;  %v866_v30 = vmax.f32 %v846_v63, 0.0 }
 0x257   :  { %v707_v38 = vpop.xlane.xlu1 %706  ;;  %v1052_v5 = vsub.f32 1.5, %v1051_v0 }
 0x258   :  { %v787_v4 = vmul.f32 0.0078125, %v707_v38  ;;  %v1171_v29 = vadd.f32 %v1878_v53, %v1147_v60  ;;  %v886_v21 = vadd.f32 1e-06, %v866_v30 }
 0x259   :  { %v767_v23 = vpop.xlane.xlu0 %766  ;;  %v1053_v1 = vmul.f32 %v1422_v39, %v1052_v5 }
 0x25a   :  { %v827_v49 = vmul.f32 %v787_v4, %v787_v4  ;;  %v807_v15 = vmul.f32 0.0078125, %v767_v23  ;;  %1191 = vst [vmem:[#allocation10 + $0x78] sm:$0xff] %v1171_v29  ;;  %1423 = vrsqrt.f32 %v886_v21  ;;  %vm1074_vm4 = vweird.f32 %v886_v21 }
 0x25b   :  { %v1057_v19 = vsel %vm1056_vm2, %v1422_v39, %v1053_v1  ;;  %v1107_v39 = vsub.f32 %v1889_v13, %v787_v4 }
 0x25c   :  { %v847_v25 = vsub.f32 %v807_v15, %v827_v49  ;;  %v1124_v48 = vmul.f32 %v1104_v3, %v1057_v19 }
 0x25e   :  { %v867_v16 = vmax.f32 %v847_v25, 0.0  ;;  %v1148_v51 = vmul.f32 %v1870_v44, %v1124_v48 }
 0x25f   :  { %v763_v42 = vpop.xlane.xlu1 %762 }
 0x260   :  { %v887_v46 = vadd.f32 1e-06, %v867_v16  ;;  %v805_v34 = vmul.f32 0.0078125, %v763_v42  ;;  %v1424_v18 = vpop.eup %1423  ;;  %v1172_v8 = vadd.f32 %v1878_v53, %v1148_v51 }
 0x261   :  { %v1069_v52 = vmul.f32 %v1424_v18, %v886_v21  ;;  %vm1075_vm3 = vweird.f32 %v1424_v18 }
 0x262   :  { %1425 = vrsqrt.f32 %v887_v46  ;;  %1192 = vst [vmem:[#allocation10 + $0x80] sm:$0xff] %v1172_v8  ;;  %v845_v22 = vsub.f32 %v805_v34, %v825_v20  ;;  %vm1076_vm5 = vmor %vm1074_vm4, %vm1075_vm3  ;;  %vm1084_vm7 = vweird.f32 %v887_v46 }
 0x263   :  { %v1070_v58 = vmul.f32 %v1424_v18, %v1069_v52 }
 0x264   :  { %v865_v43 = vmax.f32 %v845_v22, 0.0 }
 0x265   :  { %v1071_v26 = vmul.f32 0.5, %v1070_v58 }
 0x266   :  { %v885_v32 = vadd.f32 1e-06, %v865_v43 }
 0x267   :  { %v1072_v35 = vsub.f32 1.5, %v1071_v26 }
 0x268   :  { %v1426_v54 = vpop.eup %1425  ;;  %1427 = vrsqrt.f32 %v885_v32  ;;  %vm1064_vm10 = vweird.f32 %v885_v32 }
 0x269   :  { %v1079_v24 = vmul.f32 %v1426_v54, %v887_v46  ;;  %v1073_v7 = vmul.f32 %v1424_v18, %v1072_v35  ;;  %vm1085_vm6 = vweird.f32 %v1426_v54 }
 0x26a   :  { %vm1086_vm8 = vmor %vm1084_vm7, %vm1085_vm6 }
 0x26b   :  { %v1080_v37 = vmul.f32 %v1426_v54, %v1079_v24  ;;  %v1077_v28 = vsel %vm1076_vm5, %v1424_v18, %v1073_v7 }
 0x26c   :  { %v1126_v6 = vmul.f32 %v1106_v55, %v1077_v28 }
 0x26d   :  { %v1081_v41 = vmul.f32 0.5, %v1080_v37 }
 0x26e   :  { %v1428_v50 = vpop.eup %1427  ;;  %v1150_v33 = vmul.f32 %v1870_v44, %v1126_v6 }
 0x26f   :  { %v1082_v56 = vsub.f32 1.5, %v1081_v41  ;;  %v1059_v11 = vmul.f32 %v1428_v50, %v885_v32  ;;  %vm1065_vm9 = vweird.f32 %v1428_v50 }
 0x270   :  { %v1174_v40 = vadd.f32 %v1878_v53, %v1150_v33  ;;  %vm1066_vm11 = vmor %vm1064_vm10, %vm1065_vm9 }
 0x271   :  { %v1083_v59 = vmul.f32 %v1426_v54, %v1082_v56  ;;  %v1060_v12 = vmul.f32 %v1428_v50, %v1059_v11 }
 0x272   :  { %1194 = vst [vmem:[#allocation10 + $0x90] sm:$0xff] %v1174_v40 }
 0x273   :  { %v1087_v57 = vsel %vm1086_vm8, %v1426_v54, %v1083_v59  ;;  %v1061_v31 = vmul.f32 0.5, %v1060_v12 }
 0x274   :  { %v1127_v10 = vmul.f32 %v1107_v39, %v1087_v57 }
 0x275   :  { %v1062_v36 = vsub.f32 1.5, %v1061_v31 }
 0x276   :  { %v1151_v9 = vmul.f32 %v1870_v44, %v1127_v10 }
 0x277   :  { %v1063_v14 = vmul.f32 %v1428_v50, %v1062_v36 }
 0x278   :  { %v1175_v27 = vadd.f32 %v1878_v53, %v1151_v9 }
 0x279   :  { %v1067_v45 = vsel %vm1066_vm11, %v1428_v50, %v1063_v14 }
 0x27a   :  { %1195 = vst [vmem:[#allocation10 + $0x98] sm:$0xff] %v1175_v27  ;;  %v1125_v13 = vmul.f32 %v1105_v2, %v1067_v45 }
 0x27c   :  { %v1149_v47 = vmul.f32 %v1870_v44, %v1125_v13 }
 0x27e   :  { %v1173_v62 = vadd.f32 %v1878_v53, %v1149_v47 }
 0x280   :  { %1193 = vst [vmem:[#allocation10 + $0x88] sm:$0xff] %v1173_v62 }
 0x281   :  { %1208 = dma.vmem_to_hbm [thread:$0]  %s1201_s6, 2560, %s1203_s28, [#allocation4], %s1558_s9, %s1558_s9, %s1559_s10  }
 0x282   :  { %1555 = dma.done.wait [#allocation4], 2560  }
 0x283   :  { %1556 = vsyncadd [#allocation4], 4294964736 }
 0x284   :  { %1213 = vsyncpa [#allocation3], 1 }
 0x285   :  { %1214 = vsyncpa [#allocation6], 1 }
 0x286   :  { %1215 = vsyncpa [#allocation9], 1 }
 0x287   :  { %1216 = vsyncpa [#allocation4], 1 }

// kernel: tpu_custom_call.1
= control target key start
LH: loop header
LB: loop body
LE: loop exit
PB: predicated region body
PF: predicated region fallthrough
CT: control target
= control target key end

     0   :  { %12 = vsyncpa [#allocation3], 0  ;;  %s2034_s0 = inlined_call_operand.hbm [shape: f32[160,128], index: 0, kind: input, shape index: {}]   ;;  %s2035_s1 = inlined_call_operand.hbm [shape: bf16[128,256], index: 1, kind: input, shape index: {}]   ;;  %s2036_s2 = inlined_call_operand.hbm [shape: f32[1,256], index: 2, kind: input, shape index: {}]   ;;  %s2037_s3 = inlined_call_operand.hbm [shape: bf16[256,128], index: 3, kind: input, shape index: {}]   ;;  %s2038_s4 = inlined_call_operand.vmem [shape: f32[1,128], index: 4, kind: input, shape index: {}]   ;;  %s2039_s5 = inlined_call_operand.vmem [shape: f32[1,128], index: 5, kind: input, shape index: {}]   ;;  %s2040_s6 = inlined_call_operand.vmem [shape: f32[1,128], index: 6, kind: input, shape index: {}]   ;;  %s2041_s7 = inlined_call_operand.hbm [shape: f32[160,128], index: 7, kind: output, shape index: {}]  }
   0x1   :  { %13 = vsyncpa [#allocation6], 0 }
   0x2   :  { %14 = vsyncpa [#allocation9], 0 }
   0x3   :  { %15 = vsyncpa [#allocation4], 0  ;;  %s33_s26 = sshll.u32 %s2035_s1, 4  ;;  %s1557_s27 = smov [#allocation5]   ;;  %s34_s26 = int_to_ptr.hbm [resolvable:$true] %s33_s26 }
   0x4   :  { %s35_s28 = sshll.u32 %s1557_s27, 4  ;;  %s20_s8 = sshll.u32 %s2034_s0, 4  ;;  %s36_s28 = int_to_ptr.vmem [resolvable:$true] %s35_s28  ;;  %s21_s8 = int_to_ptr.hbm [resolvable:$true] %s20_s8 }
   0x5   :  { %s1558_s9 = smov 128   ;;  %s1559_s10 = smov 8  }
   0x6   :  { %41 = dma.hbm_to_vmem [thread:$0]  %s34_s26, 2048, %s36_s28, [#allocation6], %s1558_s9, %s1558_s9, %s1559_s10  }
   0x7   :  { %s1560_s11 = smov [#allocation2]   ;;  %s47_s1 = sshll.u32 %s2036_s2, 4  ;;  %s48_s1 = int_to_ptr.hbm [resolvable:$true] %s47_s1 }
   0x8   :  { %s22_s12 = sshll.u32 %s1560_s11, 4  ;;  %s57_s16 = sshll.u32 %s2037_s3, 4  ;;  %s23_s12 = int_to_ptr.vmem [resolvable:$true] %s22_s12  ;;  %s58_s16 = int_to_ptr.hbm [resolvable:$true] %s57_s16 }
   0x9   :  { %28 = dma.hbm_to_vmem [thread:$0]  %s21_s8, 2560, %s23_s12, [#allocation3], %s1558_s9, %s1558_s9, %s1559_s10  }
   0xa   :  { %s1561_s17 = smov [#allocation7]   ;;  %s1562_s19 = smov [#allocation8]  }
   0xb   :  { %s49_s18 = sshll.u32 %s1561_s17, 4  ;;  %s59_s20 = sshll.u32 %s1562_s19, 4  ;;  %s50_s18 = int_to_ptr.vmem [resolvable:$true] %s49_s18  ;;  %s60_s20 = int_to_ptr.vmem [resolvable:$true] %s59_s20 }
   0xc   :  { %52 = dma.hbm_to_vmem [thread:$0]  %s48_s1, 32, %s50_s18, [#allocation6]  }
   0xd   :  { %s1563_s21 = smov 64   ;;  %s1564_s2 = smov 4  }
   0xe   :  { %65 = dma.hbm_to_vmem [thread:$0]  %s58_s16, 2048, %s60_s20, [#allocation9], %s1563_s21, %s1563_s21, %s1564_s2  }
   0xf   :  { %1549 = dma.done.wait [#allocation3], 2560  }
  0x10   :  { %1550 = vsyncadd [#allocation3], 4294964736 }
  0x11   :  { %1551 = dma.done.wait [#allocation6], 2080  }
  0x12   :  { %1552 = vsyncadd [#allocation6], 4294965216 }
  0x13   :  { %1553 = dma.done.wait [#allocation9], 2048  }
  0x14   :  { %1554 = vsyncadd [#allocation9], 4294965248  ;;  %v1275_v0 = vld [vmem:[#allocation5 + $0x70] sm:$0xf]  ;;  %v1360_v1 = vld [vmem:[#allocation5 + $0x74] sm:$0xf0] }
  0x15   :  { %v1359_v2 = vld [vmem:[#allocation5 + $0x74] sm:$0xf]  ;;  %v1276_v3 = vor.u32 %v1360_v1, %v1275_v0  ;;  %v1277_v4 = vld [vmem:[#allocation5 + $0x78] sm:$0xf0]  ;;  %v1267_v5 = vld [vmem:[#allocation5 + $0x60] sm:$0xf] }
  0x16   :  { %v1358_v6 = vld [vmem:[#allocation5 + $0x64] sm:$0xf0]  ;;  %v1280_v7 = vor.u32 %v1359_v2, %v1277_v4  ;;  %v1357_v8 = vld [vmem:[#allocation5 + $0x64] sm:$0xf]  ;;  %v1269_v9 = vld [vmem:[#allocation5 + $0x68] sm:$0xf0] }
  0x17   :  { %220 = vmatpush.bf16.msra.mxu0 %v1276_v3  ;;  %v1268_v10 = vor.u32 %v1358_v6, %v1267_v5  ;;  %v1272_v11 = vor.u32 %v1357_v8, %v1269_v9  ;;  %v1259_v12 = vld [vmem:[#allocation5 + $0x50] sm:$0xf]  ;;  %v1356_v13 = vld [vmem:[#allocation5 + $0x54] sm:$0xf0]  ;;  %v1355_v14 = vld [vmem:[#allocation5 + $0x54] sm:$0xf] }
  0x18   :  { %279 = vmatpush.bf16.msra.mxu1 %v1280_v7  ;;  %v1261_v15 = vld [vmem:[#allocation5 + $0x58] sm:$0xf0]  ;;  %v1260_v16 = vor.u32 %v1356_v13, %v1259_v12  ;;  %v1251_v18 = vld [vmem:[#allocation5 + $0x40] sm:$0xf]  ;;  %v1354_v19 = vld [vmem:[#allocation5 + $0x44] sm:$0xf0] }
  0x19   :  { %v1264_v17 = vor.u32 %v1355_v14, %v1261_v15  ;;  %v1353_v20 = vld [vmem:[#allocation5 + $0x44] sm:$0xf]  ;;  %v1253_v21 = vld [vmem:[#allocation5 + $0x48] sm:$0xf0]  ;;  %v1252_v22 = vor.u32 %v1354_v19, %v1251_v18  ;;  %v1243_v23 = vld [vmem:[#allocation5 + $0x30] sm:$0xf] }
  0x1a   :  { %v1352_v24 = vld [vmem:[#allocation5 + $0x34] sm:$0xf0]  ;;  %v1256_v25 = vor.u32 %v1353_v20, %v1253_v21  ;;  %v1351_v26 = vld [vmem:[#allocation5 + $0x34] sm:$0xf]  ;;  %v1245_v27 = vld [vmem:[#allocation5 + $0x38] sm:$0xf0] }
  0x1b   :  { %221 = vmatpush.bf16.msra.mxu0 %v1268_v10  ;;  %v1244_v28 = vor.u32 %v1352_v24, %v1243_v23  ;;  %v1248_v29 = vor.u32 %v1351_v26, %v1245_v27  ;;  %v1235_v30 = vld [vmem:[#allocation5 + $0x20] sm:$0xf]  ;;  %v1350_v31 = vld [vmem:[#allocation5 + $0x24] sm:$0xf0]  ;;  %v1349_v32 = vld [vmem:[#allocation5 + $0x24] sm:$0xf] }
  0x1c   :  { %280 = vmatpush.bf16.msra.mxu1 %v1272_v11  ;;  %v1237_v33 = vld [vmem:[#allocation5 + $0x28] sm:$0xf0]  ;;  %v1236_v34 = vor.u32 %v1350_v31, %v1235_v30  ;;  %v1227_v36 = vld [vmem:[#allocation5 + $0x10] sm:$0xf]  ;;  %v1348_v37 = vld [vmem:[#allocation5 + $0x14] sm:$0xf0] }
  0x1d   :  { %v1240_v35 = vor.u32 %v1349_v32, %v1237_v33  ;;  %v1347_v38 = vld [vmem:[#allocation5 + $0x14] sm:$0xf]  ;;  %v1229_v39 = vld [vmem:[#allocation5 + $0x18] sm:$0xf0]  ;;  %v1228_v40 = vor.u32 %v1348_v37, %v1227_v36  ;;  %v1219_v42 = vld [vmem:[#allocation5] sm:$0xf] }
  0x1e   :  { %v1232_v41 = vor.u32 %v1347_v38, %v1229_v39  ;;  %v1346_v43 = vld [vmem:[#allocation5 + $0x4] sm:$0xf0]  ;;  %v1345_v44 = vld [vmem:[#allocation5 + $0x4] sm:$0xf]  ;;  %v1221_v45 = vld [vmem:[#allocation5 + $0x8] sm:$0xf0] }
  0x1f   :  { %222 = vmatpush.bf16.msra.mxu0 %v1260_v16  ;;  %v1220_v46 = vor.u32 %v1346_v43, %v1219_v42  ;;  %v1624_v47 = vld [vmem:[#allocation2] sm:$0xff]  ;;  %v1626_v48 = vld [vmem:[#allocation2 + $0x8] sm:$0xff]  ;;  %v1224_v49 = vor.u32 %v1345_v44, %v1221_v45  ;;  %v1630_v51 = vld [vmem:[#allocation2 + $0x10] sm:$0xff]  ;;  %s1202_s28 = sshll.u32 %s2041_s7, 4  ;;  %s1203_s28 = int_to_ptr.hbm [resolvable:$true] %s1202_s28 }
  0x20   :  { %281 = vmatpush.bf16.msra.mxu1 %v1264_v17  ;;  %v108_v50 = vpack.c.bf16 %v1626_v48, %v1624_v47  ;;  %v1632_v52 = vld [vmem:[#allocation2 + $0x18] sm:$0xff]  ;;  %v1636_v54 = vld [vmem:[#allocation2 + $0x20] sm:$0xff]  ;;  %v1638_v55 = vld [vmem:[#allocation2 + $0x28] sm:$0xff] }
  0x21   :  { %v109_v53 = vpack.c.bf16 %v1632_v52, %v1630_v51  ;;  %v110_v56 = vpack.c.bf16 %v1638_v55, %v1636_v54  ;;  %v1642_v57 = vld [vmem:[#allocation2 + $0x30] sm:$0xff]  ;;  %v1644_v58 = vld [vmem:[#allocation2 + $0x38] sm:$0xff]  ;;  %v1648_v60 = vld [vmem:[#allocation2 + $0x40] sm:$0xff] }
  0x22   :  { %v111_v59 = vpack.c.bf16 %v1644_v58, %v1642_v57  ;;  %v1650_v61 = vld [vmem:[#allocation2 + $0x48] sm:$0xff]  ;;  %v1368_v63 = vld [vmem:[#allocation8 + $0x38] sm:$0xff]  ;;  %v1654_v1 = vld [vmem:[#allocation2 + $0x50] sm:$0xff] }
  0x23   :  { %223 = vmatpush.bf16.msra.mxu0 %v1252_v22  ;;  %v112_v62 = vpack.c.bf16 %v1650_v61, %v1648_v60  ;;  %v1376_v0 = vld [vmem:[#allocation8 + $0x78] sm:$0xff]  ;;  %530 = vmatpush.bf16.msra.mxu2 %v1368_v63  ;;  %v1367_v4 = vld [vmem:[#allocation8 + $0x30] sm:$0xff]  ;;  %v1366_v6 = vld [vmem:[#allocation8 + $0x28] sm:$0xff] }
  0x24   :  { %282 = vmatpush.bf16.msra.mxu1 %v1256_v25  ;;  %589 = vmatpush.bf16.msra.mxu3 %v1376_v0  ;;  %v1656_v2 = vld [vmem:[#allocation2 + $0x58] sm:$0xff]  ;;  %v1374_v7 = vld [vmem:[#allocation8 + $0x68] sm:$0xff]  ;;  %v1365_v8 = vld [vmem:[#allocation8 + $0x20] sm:$0xff] }
  0x25   :  { %v113_v3 = vpack.c.bf16 %v1656_v2, %v1654_v1  ;;  %v1375_v5 = vld [vmem:[#allocation8 + $0x70] sm:$0xff]  ;;  %v1373_v9 = vld [vmem:[#allocation8 + $0x60] sm:$0xff]  ;;  %v1364_v13 = vld [vmem:[#allocation8 + $0x18] sm:$0xff] }
  0x26   :  { %v1660_v10 = vld [vmem:[#allocation2 + $0x60] sm:$0xff]  ;;  %v1662_v11 = vld [vmem:[#allocation2 + $0x68] sm:$0xff]  ;;  %v1363_v15 = vld [vmem:[#allocation8 + $0x10] sm:$0xff] }
  0x27   :  { %224 = vmatpush.bf16.msra.mxu0 %v1244_v28  ;;  %531 = vmatpush.bf16.msra.mxu2 %v1367_v4  ;;  %v114_v12 = vpack.c.bf16 %v1662_v11, %v1660_v10  ;;  %v1372_v14 = vld [vmem:[#allocation8 + $0x58] sm:$0xff]  ;;  %v1371_v16 = vld [vmem:[#allocation8 + $0x50] sm:$0xff]  ;;  %v1362_v17 = vld [vmem:[#allocation8 + $0x8] sm:$0xff] }
  0x28   :  { %283 = vmatpush.bf16.msra.mxu1 %v1248_v29  ;;  %590 = vmatpush.bf16.msra.mxu3 %v1375_v5  ;;  %v1370_v18 = vld [vmem:[#allocation8 + $0x48] sm:$0xff]  ;;  %v1361_v19 = vld [vmem:[#allocation8] sm:$0xff]  ;;  %v1668_v22 = vld [vmem:[#allocation2 + $0x78] sm:$0xff] }
  0x29   :  { %v1369_v20 = vld [vmem:[#allocation8 + $0x40] sm:$0xff]  ;;  %v1666_v21 = vld [vmem:[#allocation2 + $0x70] sm:$0xff]  ;;  %v134_v27 = vld [vmem:[#allocation7] sm:$0x3] }
  0x2a   :  { %v115_v23 = vpack.c.bf16 %v1668_v22, %v1666_v21  ;;  %v1672_v24 = vld [vmem:[#allocation2 + $0x80] sm:$0xff]  ;;  %v1674_v25 = vld [vmem:[#allocation2 + $0x88] sm:$0xff]  ;;  %v1678_v30 = vperm.slane %v134_v27, 0  ;;  %v1680_v31 = vperm.slane %v134_v27, 1  ;;  %v1686_v42 = vld [vmem:[#allocation2 + $0x90] sm:$0xff] }
  0x2b   :  { %225 = vmatpush.bf16.msra.mxu0 %v1236_v34  ;;  %532 = vmatpush.bf16.msra.mxu2 %v1366_v6  ;;  %v116_v26 = vpack.c.bf16 %v1674_v25, %v1672_v24  ;;  %v1688_v43 = vld [vmem:[#allocation2 + $0x98] sm:$0xff] }
  0x2c   :  { %284 = vmatpush.bf16.msra.mxu1 %v1240_v35  ;;  %591 = vmatpush.bf16.msra.mxu3 %v1374_v7 }
  0x2f   :  { %226 = vmatpush.bf16.msra.mxu0 %v1228_v40  ;;  %533 = vmatpush.bf16.msra.mxu2 %v1365_v8 }
  0x30   :  { %285 = vmatpush.bf16.msra.mxu1 %v1232_v41  ;;  %592 = vmatpush.bf16.msra.mxu3 %v1373_v9 }
  0x33   :  { %227 = vmatpush.bf16.msra.mxu0 %v1220_v46  ;;  %534 = vmatpush.bf16.msra.mxu2 %v1364_v13  ;;  %v117_v46 = vpack.c.bf16 %v1688_v43, %v1686_v42 }
  0x34   :  { %286 = vmatpush.bf16.msra.mxu1 %v1224_v49  ;;  %593 = vmatpush.bf16.msra.mxu3 %v1372_v14 }
  0x36   :  { %228 = vmatmul.bf16.vlgmr.msra.gmra.mxu0 %v108_v50 }
  0x37   :  { %287 = vmatmul.bf16.vlgmr.msra.gmra.mxu1 %v108_v50  ;;  %535 = vmatpush.bf16.msra.mxu2 %v1363_v15 }
  0x38   :  { %594 = vmatpush.bf16.msra.mxu3 %v1371_v16 }
  0x3b   :  { %536 = vmatpush.bf16.msra.mxu2 %v1362_v17 }
  0x3c   :  { %595 = vmatpush.bf16.msra.mxu3 %v1370_v18 }
  0x3f   :  { %537 = vmatpush.bf16.msra.mxu2 %v1361_v19 }
  0x40   :  { %596 = vmatpush.bf16.msra.mxu3 %v1369_v20 }
  0x46   :  { %233 = vmatmul.bf16.gmra.mxu0 %v109_v53 }
  0x47   :  { %292 = vmatmul.bf16.gmra.mxu1 %v109_v53 }
  0x56   :  { %238 = vmatmul.bf16.gmra.mxu0 %v110_v56 }
  0x57   :  { %297 = vmatmul.bf16.gmra.mxu1 %v110_v56 }
  0x66   :  { %243 = vmatmul.bf16.gmra.mxu0 %v111_v59 }
  0x67   :  { %302 = vmatmul.bf16.gmra.mxu1 %v111_v59 }
  0x76   :  { %248 = vmatmul.bf16.gmra.mxu0 %v112_v62 }
  0x77   :  { %307 = vmatmul.bf16.gmra.mxu1 %v112_v62 }
  0x86   :  { %253 = vmatmul.bf16.gmra.mxu0 %v113_v3 }
  0x87   :  { %312 = vmatmul.bf16.gmra.mxu1 %v113_v3 }
  0x96   :  { %258 = vmatmul.bf16.gmra.mxu0 %v114_v12 }
  0x97   :  { %317 = vmatmul.bf16.gmra.mxu1 %v114_v12 }
  0xa6   :  { %263 = vmatmul.bf16.gmra.mxu0 %v115_v23 }
  0xa7   :  { %322 = vmatmul.bf16.gmra.mxu1 %v115_v23 }
  0xb3   :  { %v229_v28 = vpop.f32.mrf.mxu0 }
  0xb4   :  { %v288_v29 = vpop.f32.mrf.mxu1  ;;  %v230_v32 = vadd.f32 %v229_v28, %v1678_v30 }
  0xb5   :  { %v289_v33 = vadd.f32 %v288_v29, %v1680_v31 }
  0xb6   :  { %268 = vmatmul.bf16.gmra.mxu0 %v116_v26  ;;  %v338_v38 = vmax.f32 %v230_v32, 0.0 }
  0xb7   :  { %327 = vmatmul.bf16.gmra.mxu1 %v116_v26  ;;  %v339_v40 = vmax.f32 %v289_v33, 0.0 }
  0xbb   :  { %v231_v34 = vpop.f32.mrf.mxu0 }
  0xbc   :  { %v232_v35 = vadd.f32 %v231_v34, %v1678_v30  ;;  %v290_v36 = vpop.f32.mrf.mxu1 }
  0xbd   :  { %v291_v37 = vadd.f32 %v290_v36, %v1680_v31 }
  0xbe   :  { %v340_v39 = vmax.f32 %v232_v35, 0.0 }
  0xbf   :  { %v341_v41 = vmax.f32 %v291_v37, 0.0 }
  0xc0   :  { %v378_v44 = vpack.c.bf16 %v340_v39, %v338_v38 }
  0xc1   :  { %v379_v45 = vpack.c.bf16 %v341_v41, %v339_v40 }
  0xc2   :  { %538 = vmatmul.bf16.vlgmr.msra.gmra.mxu2 %v378_v44 }
  0xc3   :  { %597 = vmatmul.bf16.vlgmr.msra.gmra.mxu3 %v379_v45  ;;  %v234_v49 = vpop.f32.mrf.mxu0 }
  0xc4   :  { %v293_v50 = vpop.f32.mrf.mxu1  ;;  %v235_v53 = vadd.f32 %v234_v49, %v1678_v30 }
  0xc5   :  { %v294_v56 = vadd.f32 %v293_v50, %v1680_v31 }
  0xc6   :  { %273 = vmatmul.bf16.gmra.mxu0 %v117_v46  ;;  %v342_v3 = vmax.f32 %v235_v53, 0.0 }
  0xc7   :  { %332 = vmatmul.bf16.gmra.mxu1 %v117_v46  ;;  %v343_v5 = vmax.f32 %v294_v56, 0.0 }
  0xcb   :  { %v236_v59 = vpop.f32.mrf.mxu0 }
  0xcc   :  { %v237_v62 = vadd.f32 %v236_v59, %v1678_v30  ;;  %v295_v63 = vpop.f32.mrf.mxu1 }
  0xcd   :  { %v296_v0 = vadd.f32 %v295_v63, %v1680_v31 }
  0xce   :  { %v344_v4 = vmax.f32 %v237_v62, 0.0 }
  0xcf   :  { %v345_v6 = vmax.f32 %v296_v0, 0.0 }
  0xd0   :  { %v380_v7 = vpack.c.bf16 %v344_v4, %v342_v3 }
  0xd1   :  { %v381_v8 = vpack.c.bf16 %v345_v6, %v343_v5 }
  0xd2   :  { %543 = vmatmul.bf16.gmra.mxu2 %v380_v7 }
  0xd3   :  { %602 = vmatmul.bf16.gmra.mxu3 %v381_v8  ;;  %v239_v9 = vpop.f32.mrf.mxu0 }
  0xd4   :  { %v298_v12 = vpop.f32.mrf.mxu1  ;;  %v240_v13 = vadd.f32 %v239_v9, %v1678_v30 }
  0xd5   :  { %v299_v14 = vadd.f32 %v298_v12, %v1680_v31 }
  0xd6   :  { %v346_v19 = vmax.f32 %v240_v13, 0.0 }
  0xd7   :  { %v347_v23 = vmax.f32 %v299_v14, 0.0 }
  0xdb   :  { %v241_v15 = vpop.f32.mrf.mxu0 }
  0xdc   :  { %v242_v16 = vadd.f32 %v241_v15, %v1678_v30  ;;  %v300_v17 = vpop.f32.mrf.mxu1 }
  0xdd   :  { %v301_v18 = vadd.f32 %v300_v17, %v1680_v31 }
  0xde   :  { %v348_v20 = vmax.f32 %v242_v16, 0.0 }
  0xdf   :  { %v349_v26 = vmax.f32 %v301_v18, 0.0 }
  0xe0   :  { %v382_v27 = vpack.c.bf16 %v348_v20, %v346_v19 }
  0xe1   :  { %v383_v28 = vpack.c.bf16 %v349_v26, %v347_v23 }
  0xe2   :  { %548 = vmatmul.bf16.gmra.mxu2 %v382_v27 }
  0xe3   :  { %607 = vmatmul.bf16.gmra.mxu3 %v383_v28  ;;  %v244_v29 = vpop.f32.mrf.mxu0 }
  0xe4   :  { %v303_v32 = vpop.f32.mrf.mxu1  ;;  %v245_v33 = vadd.f32 %v244_v29, %v1678_v30 }
  0xe5   :  { %v304_v34 = vadd.f32 %v303_v32, %v1680_v31 }
  0xe6   :  { %v350_v39 = vmax.f32 %v245_v33, 0.0 }
  0xe7   :  { %v351_v41 = vmax.f32 %v304_v34, 0.0 }
  0xeb   :  { %v246_v35 = vpop.f32.mrf.mxu0 }
  0xec   :  { %v247_v36 = vadd.f32 %v246_v35, %v1678_v30  ;;  %v305_v37 = vpop.f32.mrf.mxu1 }
  0xed   :  { %v306_v38 = vadd.f32 %v305_v37, %v1680_v31 }
  0xee   :  { %v352_v40 = vmax.f32 %v247_v36, 0.0 }
  0xef   :  { %v353_v44 = vmax.f32 %v306_v38, 0.0 }
  0xf0   :  { %v384_v45 = vpack.c.bf16 %v352_v40, %v350_v39 }
  0xf1   :  { %v385_v46 = vpack.c.bf16 %v353_v44, %v351_v41 }
  0xf2   :  { %553 = vmatmul.bf16.gmra.mxu2 %v384_v45 }
  0xf3   :  { %612 = vmatmul.bf16.gmra.mxu3 %v385_v46  ;;  %v249_v49 = vpop.f32.mrf.mxu0 }
  0xf4   :  { %v308_v50 = vpop.f32.mrf.mxu1  ;;  %v250_v53 = vadd.f32 %v249_v49, %v1678_v30 }
  0xf5   :  { %v309_v56 = vadd.f32 %v308_v50, %v1680_v31 }
  0xf6   :  { %v354_v3 = vmax.f32 %v250_v53, 0.0 }
  0xf7   :  { %v355_v5 = vmax.f32 %v309_v56, 0.0 }
  0xfb   :  { %v251_v59 = vpop.f32.mrf.mxu0 }
  0xfc   :  { %v252_v62 = vadd.f32 %v251_v59, %v1678_v30  ;;  %v310_v63 = vpop.f32.mrf.mxu1 }
  0xfd   :  { %v311_v0 = vadd.f32 %v310_v63, %v1680_v31 }
  0xfe   :  { %v356_v4 = vmax.f32 %v252_v62, 0.0 }
  0xff   :  { %v357_v6 = vmax.f32 %v311_v0, 0.0 }
 0x100   :  { %v386_v7 = vpack.c.bf16 %v356_v4, %v354_v3 }
 0x101   :  { %v387_v8 = vpack.c.bf16 %v357_v6, %v355_v5 }
 0x102   :  { %558 = vmatmul.bf16.gmra.mxu2 %v386_v7 }
 0x103   :  { %617 = vmatmul.bf16.gmra.mxu3 %v387_v8  ;;  %v254_v9 = vpop.f32.mrf.mxu0 }
 0x104   :  { %v313_v12 = vpop.f32.mrf.mxu1  ;;  %v255_v13 = vadd.f32 %v254_v9, %v1678_v30 }
 0x105   :  { %v314_v14 = vadd.f32 %v313_v12, %v1680_v31 }
 0x106   :  { %v358_v19 = vmax.f32 %v255_v13, 0.0 }
 0x107   :  { %v359_v23 = vmax.f32 %v314_v14, 0.0 }
 0x10b   :  { %v256_v15 = vpop.f32.mrf.mxu0 }
 0x10c   :  { %v257_v16 = vadd.f32 %v256_v15, %v1678_v30  ;;  %v315_v17 = vpop.f32.mrf.mxu1 }
 0x10d   :  { %v316_v18 = vadd.f32 %v315_v17, %v1680_v31 }
 0x10e   :  { %v360_v20 = vmax.f32 %v257_v16, 0.0 }
 0x10f   :  { %v361_v26 = vmax.f32 %v316_v18, 0.0 }
 0x110   :  { %v388_v27 = vpack.c.bf16 %v360_v20, %v358_v19 }
 0x111   :  { %v389_v28 = vpack.c.bf16 %v361_v26, %v359_v23 }
 0x112   :  { %563 = vmatmul.bf16.gmra.mxu2 %v388_v27 }
 0x113   :  { %622 = vmatmul.bf16.gmra.mxu3 %v389_v28  ;;  %v259_v29 = vpop.f32.mrf.mxu0 }
 0x114   :  { %v318_v32 = vpop.f32.mrf.mxu1  ;;  %v260_v33 = vadd.f32 %v259_v29, %v1678_v30  ;;  %v1727_v29 = vld [vmem:[%s2038_s4] ss:$0 sm:$0xff] }
 0x115   :  { %v319_v34 = vadd.f32 %v318_v32, %v1680_v31 }
 0x116   :  { %v362_v39 = vmax.f32 %v260_v33, 0.0 }
 0x117   :  { %v363_v41 = vmax.f32 %v319_v34, 0.0 }
 0x11b   :  { %v261_v35 = vpop.f32.mrf.mxu0 }
 0x11c   :  { %v262_v36 = vadd.f32 %v261_v35, %v1678_v30  ;;  %v320_v37 = vpop.f32.mrf.mxu1 }
 0x11d   :  { %v321_v38 = vadd.f32 %v320_v37, %v1680_v31 }
 0x11e   :  { %v364_v40 = vmax.f32 %v262_v36, 0.0 }
 0x11f   :  { %v365_v44 = vmax.f32 %v321_v38, 0.0 }
 0x120   :  { %v390_v45 = vpack.c.bf16 %v364_v40, %v362_v39 }
 0x121   :  { %v391_v46 = vpack.c.bf16 %v365_v44, %v363_v41 }
 0x122   :  { %568 = vmatmul.bf16.gmra.mxu2 %v390_v45 }
 0x123   :  { %627 = vmatmul.bf16.gmra.mxu3 %v391_v46  ;;  %v264_v49 = vpop.f32.mrf.mxu0 }
 0x124   :  { %v323_v50 = vpop.f32.mrf.mxu1  ;;  %v265_v53 = vadd.f32 %v264_v49, %v1678_v30 }
 0x125   :  { %v324_v56 = vadd.f32 %v323_v50, %v1680_v31 }
 0x126   :  { %v366_v3 = vmax.f32 %v265_v53, 0.0 }
 0x127   :  { %v367_v5 = vmax.f32 %v324_v56, 0.0 }
 0x12b   :  { %v266_v59 = vpop.f32.mrf.mxu0 }
 0x12c   :  { %v267_v62 = vadd.f32 %v266_v59, %v1678_v30  ;;  %v325_v63 = vpop.f32.mrf.mxu1 }
 0x12d   :  { %v326_v0 = vadd.f32 %v325_v63, %v1680_v31 }
 0x12e   :  { %v368_v4 = vmax.f32 %v267_v62, 0.0 }
 0x12f   :  { %v369_v6 = vmax.f32 %v326_v0, 0.0 }
 0x130   :  { %v392_v7 = vpack.c.bf16 %v368_v4, %v366_v3 }
 0x131   :  { %v393_v8 = vpack.c.bf16 %v369_v6, %v367_v5 }
 0x132   :  { %573 = vmatmul.bf16.gmra.mxu2 %v392_v7 }
 0x133   :  { %632 = vmatmul.bf16.gmra.mxu3 %v393_v8  ;;  %v269_v9 = vpop.f32.mrf.mxu0 }
 0x134   :  { %v328_v12 = vpop.f32.mrf.mxu1  ;;  %v270_v13 = vadd.f32 %v269_v9, %v1678_v30 }
 0x135   :  { %v329_v14 = vadd.f32 %v328_v12, %v1680_v31 }
 0x136   :  { %v370_v19 = vmax.f32 %v270_v13, 0.0 }
 0x137   :  { %v371_v23 = vmax.f32 %v329_v14, 0.0 }
 0x13b   :  { %v271_v15 = vpop.f32.mrf.mxu0 }
 0x13c   :  { %v272_v16 = vadd.f32 %v271_v15, %v1678_v30  ;;  %v330_v17 = vpop.f32.mrf.mxu1 }
 0x13d   :  { %v331_v18 = vadd.f32 %v330_v17, %v1680_v31 }
 0x13e   :  { %v372_v20 = vmax.f32 %v272_v16, 0.0 }
 0x13f   :  { %v373_v26 = vmax.f32 %v331_v18, 0.0 }
 0x140   :  { %v394_v27 = vpack.c.bf16 %v372_v20, %v370_v19 }
 0x141   :  { %v395_v28 = vpack.c.bf16 %v373_v26, %v371_v23 }
 0x142   :  { %578 = vmatmul.bf16.gmra.mxu2 %v394_v27 }
 0x143   :  { %637 = vmatmul.bf16.gmra.mxu3 %v395_v28  ;;  %v274_v32 = vpop.f32.mrf.mxu0 }
 0x144   :  { %v333_v33 = vpop.f32.mrf.mxu1  ;;  %v275_v38 = vadd.f32 %v274_v32, %v1678_v30 }
 0x145   :  { %v539_v34 = vpop.f32.mrf.mxu2  ;;  %v334_v40 = vadd.f32 %v333_v33, %v1680_v31 }
 0x146   :  { %v540_v35 = vadd.f32 %v1727_v29, %v539_v34  ;;  %v598_v36 = vpop.f32.mrf.mxu3  ;;  %v374_v53 = vmax.f32 %v275_v38, 0.0 }
 0x147   :  { %v375_v62 = vmax.f32 %v334_v40, 0.0 }
 0x148   :  { %v599_v37 = vadd.f32 %v598_v36, %v540_v35 }
 0x14a   :  { %v1732_v39 = vadd.f32 %v599_v37, %v1624_v47 }
 0x14b   :  { %v276_v41 = vpop.f32.mrf.mxu0 }
 0x14c   :  { %v277_v44 = vadd.f32 %v276_v41, %v1678_v30  ;;  %v335_v45 = vpop.f32.mrf.mxu1  ;;  %668 = vadd.xlane.f32.xlu0 %v1732_v39  ;;  %v708_v46 = vmul.f32 %v1732_v39, %v1732_v39 }
 0x14d   :  { %v336_v49 = vadd.f32 %v335_v45, %v1680_v31  ;;  %v541_v50 = vpop.f32.mrf.mxu2 }
 0x14e   :  { %v376_v56 = vmax.f32 %v277_v44, 0.0  ;;  %v542_v59 = vadd.f32 %v1727_v29, %v541_v50  ;;  %v600_v47 = vpop.f32.mrf.mxu3  ;;  %728 = vadd.xlane.f32.xlu2 %v708_v46 }
 0x14f   :  { %v377_v63 = vmax.f32 %v336_v49, 0.0 }
 0x150   :  { %v601_v0 = vadd.f32 %v600_v47, %v542_v59  ;;  %v396_v3 = vpack.c.bf16 %v376_v56, %v374_v53 }
 0x151   :  { %v397_v30 = vpack.c.bf16 %v377_v63, %v375_v62 }
 0x152   :  { %v1742_v4 = vadd.f32 %v601_v0, %v1626_v48  ;;  %583 = vmatmul.bf16.gmra.mxu2 %v396_v3 }
 0x153   :  { %642 = vmatmul.bf16.gmra.mxu3 %v397_v30 }
 0x154   :  { %670 = vadd.xlane.f32.xlu0 %v1742_v4  ;;  %v709_v9 = vmul.f32 %v1742_v4, %v1742_v4 }
 0x155   :  { %v544_v31 = vpop.f32.mrf.mxu2 }
 0x156   :  { %v545_v5 = vadd.f32 %v1727_v29, %v544_v31  ;;  %v603_v6 = vpop.f32.mrf.mxu3 }
 0x158   :  { %v604_v7 = vadd.f32 %v603_v6, %v545_v5 }
 0x15a   :  { %v1747_v8 = vadd.f32 %v604_v7, %v1630_v51 }
 0x15c   :  { %672 = vadd.xlane.f32.xlu1 %v1747_v8  ;;  %730 = vadd.xlane.f32.xlu0 %v709_v9  ;;  %v710_v16 = vmul.f32 %v1747_v8, %v1747_v8 }
 0x15d   :  { %v546_v48 = vpop.f32.mrf.mxu2 }
 0x15e   :  { %v547_v12 = vadd.f32 %v1727_v29, %v546_v48  ;;  %v605_v13 = vpop.f32.mrf.mxu3 }
 0x160   :  { %v606_v14 = vadd.f32 %v605_v13, %v547_v12 }
 0x162   :  { %v1754_v15 = vadd.f32 %v606_v14, %v1632_v52 }
 0x164   :  { %732 = vadd.xlane.f32.xlu1 %v710_v16  ;;  %v711_v51 = vmul.f32 %v1754_v15, %v1754_v15 }
 0x165   :  { %v549_v17 = vpop.f32.mrf.mxu2 }
 0x166   :  { %v550_v18 = vadd.f32 %v1727_v29, %v549_v17  ;;  %v608_v19 = vpop.f32.mrf.mxu3  ;;  %734 = vadd.xlane.f32.xlu2 %v711_v51 }
 0x168   :  { %v609_v20 = vadd.f32 %v608_v19, %v550_v18 }
 0x16a   :  { %v1762_v23 = vadd.f32 %v609_v20, %v1636_v54 }
 0x16c   :  { %674 = vadd.xlane.f32.xlu1 %v1754_v15  ;;  %v712_v52 = vmul.f32 %v1762_v23, %v1762_v23 }
 0x16d   :  { %v551_v26 = vpop.f32.mrf.mxu2 }
 0x16e   :  { %v552_v27 = vadd.f32 %v1727_v29, %v551_v26  ;;  %v610_v28 = vpop.f32.mrf.mxu3  ;;  %736 = vadd.xlane.f32.xlu0 %v712_v52  ;;  %676 = vadd.xlane.f32.xlu2 %v1762_v23 }
 0x170   :  { %v611_v32 = vadd.f32 %v610_v28, %v552_v27 }
 0x172   :  { %v1770_v33 = vadd.f32 %v611_v32, %v1638_v55 }
 0x174   :  { %v713_v54 = vmul.f32 %v1770_v33, %v1770_v33 }
 0x175   :  { %v554_v34 = vpop.f32.mrf.mxu2 }
 0x176   :  { %v555_v35 = vadd.f32 %v1727_v29, %v554_v34  ;;  %v613_v36 = vpop.f32.mrf.mxu3  ;;  %738 = vadd.xlane.f32.xlu1 %v713_v54  ;;  %678 = vadd.xlane.f32.xlu2 %v1770_v33 }
 0x178   :  { %v614_v37 = vadd.f32 %v613_v36, %v555_v35 }
 0x17a   :  { %v1777_v38 = vadd.f32 %v614_v37, %v1642_v57 }
 0x17c   :  { %680 = vadd.xlane.f32.xlu0 %v1777_v38  ;;  %v714_v55 = vmul.f32 %v1777_v38, %v1777_v38 }
 0x17d   :  { %v556_v40 = vpop.f32.mrf.mxu2 }
 0x17e   :  { %v557_v41 = vadd.f32 %v1727_v29, %v556_v40  ;;  %v615_v44 = vpop.f32.mrf.mxu3  ;;  %740 = vadd.xlane.f32.xlu2 %v714_v55 }
 0x180   :  { %v616_v45 = vadd.f32 %v615_v44, %v557_v41 }
 0x182   :  { %v1784_v46 = vadd.f32 %v616_v45, %v1644_v58 }
 0x184   :  { %682 = vadd.xlane.f32.xlu1 %v1784_v46  ;;  %v715_v57 = vmul.f32 %v1784_v46, %v1784_v46 }
 0x185   :  { %v559_v49 = vpop.f32.mrf.mxu2 }
 0x186   :  { %v560_v50 = vadd.f32 %v1727_v29, %v559_v49  ;;  %v618_v53 = vpop.f32.mrf.mxu3  ;;  %742 = vadd.xlane.f32.xlu0 %v715_v57 }
 0x188   :  { %v619_v56 = vadd.f32 %v618_v53, %v560_v50 }
 0x18a   :  { %v1791_v59 = vadd.f32 %v619_v56, %v1648_v60 }
 0x18c   :  { %684 = vadd.xlane.f32.xlu2 %v1791_v59  ;;  %v716_v58 = vmul.f32 %v1791_v59, %v1791_v59 }
 0x18d   :  { %v561_v47 = vpop.f32.mrf.mxu2 }
 0x18e   :  { %v562_v62 = vadd.f32 %v1727_v29, %v561_v47  ;;  %v620_v63 = vpop.f32.mrf.mxu3  ;;  %744 = vadd.xlane.f32.xlu1 %v716_v58 }
 0x190   :  { %v621_v0 = vadd.f32 %v620_v63, %v562_v62 }
 0x192   :  { %v1798_v3 = vadd.f32 %v621_v0, %v1650_v61 }
 0x194   :  { %686 = vadd.xlane.f32.xlu0 %v1798_v3  ;;  %v717_v60 = vmul.f32 %v1798_v3, %v1798_v3 }
 0x195   :  { %v564_v30 = vpop.f32.mrf.mxu2 }
 0x196   :  { %v565_v31 = vadd.f32 %v1727_v29, %v564_v30  ;;  %v623_v5 = vpop.f32.mrf.mxu3  ;;  %746 = vadd.xlane.f32.xlu2 %v717_v60 }
 0x198   :  { %v624_v6 = vadd.f32 %v623_v5, %v565_v31 }
 0x19a   :  { %v1805_v7 = vadd.f32 %v624_v6, %v1654_v1 }
 0x19c   :  { %688 = vadd.xlane.f32.xlu1 %v1805_v7  ;;  %v718_v61 = vmul.f32 %v1805_v7, %v1805_v7 }
 0x19d   :  { %v566_v9 = vpop.f32.mrf.mxu2 }
 0x19e   :  { %v567_v48 = vadd.f32 %v1727_v29, %v566_v9  ;;  %v625_v12 = vpop.f32.mrf.mxu3  ;;  %748 = vadd.xlane.f32.xlu0 %v718_v61 }
 0x1a0   :  { %v626_v13 = vadd.f32 %v625_v12, %v567_v48 }
 0x1a2   :  { %v1812_v14 = vadd.f32 %v626_v13, %v1656_v2 }
 0x1a4   :  { %690 = vadd.xlane.f32.xlu2 %v1812_v14  ;;  %v719_v1 = vmul.f32 %v1812_v14, %v1812_v14 }
 0x1a5   :  { %v569_v16 = vpop.f32.mrf.mxu2 }
 0x1a6   :  { %v570_v51 = vadd.f32 %v1727_v29, %v569_v16  ;;  %v628_v17 = vpop.f32.mrf.mxu3  ;;  %750 = vadd.xlane.f32.xlu1 %v719_v1 }
 0x1a8   :  { %v629_v18 = vadd.f32 %v628_v17, %v570_v51 }
 0x1aa   :  { %v1819_v19 = vadd.f32 %v629_v18, %v1660_v10 }
 0x1ac   :  { %692 = vadd.xlane.f32.xlu0 %v1819_v19  ;;  %v720_v2 = vmul.f32 %v1819_v19, %v1819_v19 }
 0x1ad   :  { %v571_v20 = vpop.f32.mrf.mxu2 }
 0x1ae   :  { %v572_v52 = vadd.f32 %v1727_v29, %v571_v20  ;;  %v630_v26 = vpop.f32.mrf.mxu3  ;;  %752 = vadd.xlane.f32.xlu2 %v720_v2 }
 0x1b0   :  { %v631_v27 = vadd.f32 %v630_v26, %v572_v52 }
 0x1b2   :  { %v1826_v28 = vadd.f32 %v631_v27, %v1662_v11 }
 0x1b4   :  { %694 = vadd.xlane.f32.xlu1 %v1826_v28  ;;  %v721_v10 = vmul.f32 %v1826_v28, %v1826_v28 }
 0x1b5   :  { %v574_v32 = vpop.f32.mrf.mxu2 }
 0x1b6   :  { %v575_v54 = vadd.f32 %v1727_v29, %v574_v32  ;;  %v633_v34 = vpop.f32.mrf.mxu3  ;;  %754 = vadd.xlane.f32.xlu0 %v721_v10 }
 0x1b8   :  { %v634_v35 = vadd.f32 %v633_v34, %v575_v54 }
 0x1ba   :  { %v1833_v36 = vadd.f32 %v634_v35, %v1666_v21 }
 0x1bc   :  { %696 = vadd.xlane.f32.xlu2 %v1833_v36  ;;  %v722_v11 = vmul.f32 %v1833_v36, %v1833_v36 }
 0x1bd   :  { %v576_v37 = vpop.f32.mrf.mxu2 }
 0x1be   :  { %v577_v55 = vadd.f32 %v1727_v29, %v576_v37  ;;  %v635_v40 = vpop.f32.mrf.mxu3  ;;  %756 = vadd.xlane.f32.xlu1 %v722_v11 }
 0x1bf   :  { %v669_v41 = vpop.xlane.xlu0 %668 }
 0x1c0   :  { %v636_v44 = vadd.f32 %v635_v40, %v577_v55  ;;  %v768_v45 = vmul.f32 0.0078125, %v669_v41 }
 0x1c1   :  { %v729_v57 = vpop.xlane.xlu2 %728 }
 0x1c2   :  { %v1840_v49 = vadd.f32 %v636_v44, %v1668_v22  ;;  %v808_v50 = vmul.f32 %v768_v45, %v768_v45  ;;  %v788_v21 = vmul.f32 0.0078125, %v729_v57  ;;  %v1088_v41 = vsub.f32 %v1732_v39, %v768_v45  ;;  %v1870_v44 = vld [vmem:[%s2039_s5] ss:$0 sm:$0xff]  ;;  %s1565_s5 = smov [#allocation10]  }
 0x1c4   :  { %v828_v53 = vsub.f32 %v788_v21, %v808_v50  ;;  %698 = vadd.xlane.f32.xlu0 %v1840_v49  ;;  %v723_v56 = vmul.f32 %v1840_v49, %v1840_v49 }
 0x1c5   :  { %v579_v58 = vpop.f32.mrf.mxu2 }
 0x1c6   :  { %v848_v47 = vmax.f32 %v828_v53, 0.0  ;;  %v580_v62 = vadd.f32 %v1727_v29, %v579_v58  ;;  %v638_v63 = vpop.f32.mrf.mxu3  ;;  %758 = vadd.xlane.f32.xlu2 %v723_v56  ;;  %v1878_v53 = vld [vmem:[%s2040_s6] ss:$0 sm:$0xff]  ;;  %s1200_s6 = sshll.u32 %s1565_s5, 4  ;;  %s1201_s6 = int_to_ptr.vmem [resolvable:$true] %s1200_s6 }
 0x1c7   :  { %v671_v0 = vpop.xlane.xlu0 %670 }
 0x1c8   :  { %v868_v60 = vadd.f32 1e-06, %v848_v47  ;;  %v639_v30 = vadd.f32 %v638_v63, %v580_v62  ;;  %v1849_v31 = vmul.f32 0.0078125, %v671_v0 }
 0x1ca   :  { %1389 = vrsqrt.f32 %v868_v60  ;;  %v1847_v22 = vadd.f32 %v639_v30, %v1672_v24  ;;  %v809_v1 = vmul.f32 %v1849_v31, %v1849_v31  ;;  %vm894_vm1 = vweird.f32 %v868_v60 }
 0x1cc   :  { %700 = vadd.xlane.f32.xlu1 %v1847_v22  ;;  %v724_v5 = vmul.f32 %v1847_v22, %v1847_v22 }
 0x1cd   :  { %v581_v6 = vpop.f32.mrf.mxu2 }
 0x1ce   :  { %v582_v61 = vadd.f32 %v1727_v29, %v581_v6  ;;  %v640_v9 = vpop.f32.mrf.mxu3  ;;  %760 = vadd.xlane.f32.xlu0 %v724_v5 }
 0x1cf   :  { %v673_v48 = vpop.xlane.xlu1 %672  ;;  %v731_v12 = vpop.xlane.xlu0 %730 }
 0x1d0   :  { %v1390_v13 = vpop.eup %1389  ;;  %v641_v24 = vadd.f32 %v640_v9, %v582_v61  ;;  %v789_v16 = vmul.f32 0.0078125, %v731_v12  ;;  %v1860_v20 = vmul.f32 0.0078125, %v673_v48 }
 0x1d1   :  { %v889_v51 = vmul.f32 %v1390_v13, %v868_v60  ;;  %vm895_vm0 = vweird.f32 %v1390_v13 }
 0x1d2   :  { %v1858_v17 = vadd.f32 %v641_v24, %v1674_v25  ;;  %v829_v18 = vsub.f32 %v789_v16, %v809_v1  ;;  %v810_v25 = vmul.f32 %v1860_v20, %v1860_v20  ;;  %vm896_vm2 = vmor %vm894_vm1, %vm895_vm0 }
 0x1d3   :  { %v890_v2 = vmul.f32 %v1390_v13, %v889_v51 }
 0x1d4   :  { %v849_v52 = vmax.f32 %v829_v18, 0.0  ;;  %702 = vadd.xlane.f32.xlu2 %v1858_v17 }
 0x1d5   :  { %v891_v26 = vmul.f32 0.5, %v890_v2  ;;  %v584_v27 = vpop.f32.mrf.mxu2 }
 0x1d6   :  { %v869_v10 = vadd.f32 1e-06, %v849_v52  ;;  %v585_v32 = vadd.f32 %v1727_v29, %v584_v27  ;;  %v643_v54 = vpop.f32.mrf.mxu3 }
 0x1d7   :  { %v892_v34 = vsub.f32 1.5, %v891_v26  ;;  %v733_v35 = vpop.xlane.xlu1 %732 }
 0x1d8   :  { %1391 = vrsqrt.f32 %v869_v10  ;;  %v644_v11 = vadd.f32 %v643_v54, %v585_v32  ;;  %v790_v37 = vmul.f32 0.0078125, %v733_v35  ;;  %vm904_vm4 = vweird.f32 %v869_v10 }
 0x1d9   :  { %v893_v55 = vmul.f32 %v1390_v13, %v892_v34  ;;  %v735_v40 = vpop.xlane.xlu2 %734  ;;  %v1089_v35 = vsub.f32 %v1742_v4, %v1849_v31 }
 0x1da   :  { %v1873_v57 = vadd.f32 %v644_v11, %v1686_v42  ;;  %v830_v50 = vsub.f32 %v790_v37, %v810_v25  ;;  %v791_v24 = vmul.f32 0.0078125, %v735_v40 }
 0x1db   :  { %v897_v21 = vsel %vm896_vm2, %v1390_v13, %v893_v55 }
 0x1dc   :  { %v1108_v56 = vmul.f32 %v1088_v41, %v897_v21  ;;  %v850_v58 = vmax.f32 %v830_v50, 0.0  ;;  %704 = vadd.xlane.f32.xlu0 %v1873_v57  ;;  %v726_v39 = vmul.f32 %v1873_v57, %v1873_v57 }
 0x1dd   :  { %v586_v45 = vpop.f32.mrf.mxu2 }
 0x1de   :  { %v1392_v47 = vpop.eup %1391  ;;  %v1132_v62 = vmul.f32 %v1870_v44, %v1108_v56  ;;  %v870_v42 = vadd.f32 1e-06, %v850_v58  ;;  %v587_v63 = vadd.f32 %v1727_v29, %v586_v45  ;;  %764 = vadd.xlane.f32.xlu2 %v726_v39  ;;  %v645_v60 = vpop.f32.mrf.mxu3  ;;  %v725_v58 = vmul.f32 %v1858_v17, %v1858_v17 }
 0x1df   :  { %v899_v0 = vmul.f32 %v1392_v47, %v869_v10  ;;  %v675_v30 = vpop.xlane.xlu1 %674  ;;  %vm905_vm3 = vweird.f32 %v1392_v47 }
 0x1e0   :  { %v1156_v5 = vadd.f32 %v1878_v53, %v1132_v62  ;;  %1393 = vrsqrt.f32 %v870_v42  ;;  %v646_v6 = vadd.f32 %v645_v60, %v587_v63  ;;  %v1886_v9 = vmul.f32 0.0078125, %v675_v30  ;;  %vm906_vm5 = vmor %vm904_vm4, %vm905_vm3 }
 0x1e1   :  { %v900_v61 = vmul.f32 %v1392_v47, %v899_v0  ;;  %v737_v48 = vpop.xlane.xlu0 %736  ;;  %v677_v12 = vpop.xlane.xlu2 %676  ;;  %vm914_vm7 = vweird.f32 %v870_v42  ;;  %v1090_v60 = vsub.f32 %v1747_v8, %v1860_v20 }
 0x1e2   :  { %1176 = vst [vmem:[#allocation10] sm:$0xff] %v1156_v5  ;;  %v1889_v13 = vadd.f32 %v646_v6, %v1688_v43  ;;  %v1891_v1 = vmul.f32 0.0078125, %v677_v12  ;;  %v811_v16 = vmul.f32 %v1886_v9, %v1886_v9  ;;  %v792_v51 = vmul.f32 0.0078125, %v737_v48 }
 0x1e3   :  { %v901_v29 = vmul.f32 0.5, %v900_v61 }
 0x1e4   :  { %v812_v18 = vmul.f32 %v1891_v1, %v1891_v1  ;;  %706 = vadd.xlane.f32.xlu1 %v1889_v13  ;;  %v727_v2 = vmul.f32 %v1889_v13, %v1889_v13  ;;  %v831_v43 = vsub.f32 %v791_v24, %v811_v16 }
 0x1e5   :  { %v902_v52 = vsub.f32 1.5, %v901_v29 }
 0x1e6   :  { %v1394_v26 = vpop.eup %1393  ;;  %v832_v27 = vsub.f32 %v792_v51, %v812_v18  ;;  %766 = vadd.xlane.f32.xlu0 %v727_v2  ;;  %v851_v34 = vmax.f32 %v831_v43, 0.0 }
 0x1e7   :  { %v903_v32 = vmul.f32 %v1392_v47, %v902_v52  ;;  %v909_v54 = vmul.f32 %v1394_v26, %v870_v42  ;;  %vm915_vm6 = vweird.f32 %v1394_v26 }
 0x1e8   :  { %v852_v25 = vmax.f32 %v832_v27, 0.0  ;;  %v871_v55 = vadd.f32 1e-06, %v851_v34  ;;  %vm916_vm8 = vmor %vm914_vm7, %vm915_vm6 }
 0x1e9   :  { %v907_v11 = vsel %vm906_vm5, %v1392_v47, %v903_v32  ;;  %v910_v37 = vmul.f32 %v1394_v26, %v909_v54  ;;  %v739_v40 = vpop.xlane.xlu1 %738  ;;  %v679_v41 = vpop.xlane.xlu2 %678 }
 0x1ea   :  { %v1109_v50 = vmul.f32 %v1089_v35, %v907_v11  ;;  %v872_v21 = vadd.f32 1e-06, %v852_v25  ;;  %v1902_v56 = vmul.f32 0.0078125, %v679_v41  ;;  %1395 = vrsqrt.f32 %v871_v55 }
 0x1eb   :  { %v911_v10 = vmul.f32 0.5, %v910_v37  ;;  %v793_v4 = vmul.f32 0.0078125, %v739_v40  ;;  %v1091_v35 = vsub.f32 %v1754_v15, %v1886_v9  ;;  %vm924_vm11 = vweird.f32 %v871_v55 }
 0x1ec   :  { %v1133_v39 = vmul.f32 %v1870_v44, %v1109_v50  ;;  %1397 = vrsqrt.f32 %v872_v21  ;;  %v813_v31 = vmul.f32 %v1902_v56, %v1902_v56  ;;  %762 = vadd.xlane.f32.xlu1 %v725_v58  ;;  %vm934_vm13 = vweird.f32 %v872_v21 }
 0x1ed   :  { %v912_v45 = vsub.f32 1.5, %v911_v10  ;;  %v1092_v15 = vsub.f32 %v1762_v23, %v1891_v1 }
 0x1ee   :  { %v1157_v47 = vadd.f32 %v1878_v53, %v1133_v39  ;;  %v833_v62 = vsub.f32 %v793_v4, %v813_v31 }
 0x1ef   :  { %v913_v63 = vmul.f32 %v1394_v26, %v912_v45  ;;  %v681_v0 = vpop.xlane.xlu0 %680 }
 0x1f0   :  { %1177 = vst [vmem:[#allocation10 + $0x8] sm:$0xff] %v1157_v47  ;;  %v853_v30 = vmax.f32 %v833_v62, 0.0  ;;  %v1912_v5 = vmul.f32 0.0078125, %v681_v0  ;;  %v1396_v6 = vpop.eup %1395 }
 0x1f1   :  { %v917_v61 = vsel %vm916_vm8, %v1394_v26, %v913_v63  ;;  %v919_v29 = vmul.f32 %v1396_v6, %v871_v55  ;;  %v741_v16 = vpop.xlane.xlu2 %740  ;;  %vm925_vm9 = vweird.f32 %v1396_v6 }
 0x1f2   :  { %v1398_v48 = vpop.eup %1397  ;;  %v1110_v12 = vmul.f32 %v1090_v60, %v917_v61  ;;  %v873_v24 = vadd.f32 1e-06, %v853_v30  ;;  %v814_v42 = vmul.f32 %v1912_v5, %v1912_v5  ;;  %v794_v20 = vmul.f32 0.0078125, %v741_v16  ;;  %vm926_vm12 = vmor %vm924_vm11, %vm925_vm9 }
 0x1f3   :  { %v929_v51 = vmul.f32 %v1398_v48, %v872_v21  ;;  %v920_v2 = vmul.f32 %v1396_v6, %v919_v29  ;;  %vm935_vm10 = vweird.f32 %v1398_v48 }
 0x1f4   :  { %v1134_v18 = vmul.f32 %v1870_v44, %v1110_v12  ;;  %1399 = vrsqrt.f32 %v873_v24  ;;  %v834_v26 = vsub.f32 %v794_v20, %v814_v42  ;;  %vm936_vm14 = vmor %vm934_vm13, %vm935_vm10  ;;  %vm944_vm0 = vweird.f32 %v873_v24 }
 0x1f5   :  { %v930_v8 = vmul.f32 %v1398_v48, %v929_v51  ;;  %v921_v43 = vmul.f32 0.5, %v920_v2 }
 0x1f6   :  { %v1158_v52 = vadd.f32 %v1878_v53, %v1134_v18  ;;  %v854_v11 = vmax.f32 %v834_v26, 0.0  ;;  %v1093_v18 = vsub.f32 %v1770_v33, %v1902_v56 }
 0x1f7   :  { %v931_v27 = vmul.f32 0.5, %v930_v8  ;;  %v683_v32 = vpop.xlane.xlu1 %682  ;;  %v922_v54 = vsub.f32 1.5, %v921_v43 }
 0x1f8   :  { %1178 = vst [vmem:[#allocation10 + $0x10] sm:$0xff] %v1158_v52  ;;  %v1918_v34 = vmul.f32 0.0078125, %v683_v32  ;;  %v874_v4 = vadd.f32 1e-06, %v854_v11 }
 0x1f9   :  { %v932_v25 = vsub.f32 1.5, %v931_v27  ;;  %v743_v37 = vpop.xlane.xlu0 %742  ;;  %v923_v41 = vmul.f32 %v1396_v6, %v922_v54 }
 0x1fa   :  { %v1400_v40 = vpop.eup %1399  ;;  %v815_v50 = vmul.f32 %v1918_v34, %v1918_v34  ;;  %v795_v58 = vmul.f32 0.0078125, %v743_v37  ;;  %1401 = vrsqrt.f32 %v874_v4  ;;  %vm954_vm3 = vweird.f32 %v874_v4 }
 0x1fb   :  { %v933_v10 = vmul.f32 %v1398_v48, %v932_v25  ;;  %v939_v39 = vmul.f32 %v1400_v40, %v873_v24  ;;  %v927_v31 = vsel %vm926_vm12, %v1396_v6, %v923_v41  ;;  %vm945_vm15 = vweird.f32 %v1400_v40 }
 0x1fc   :  { %v835_v9 = vsub.f32 %v795_v58, %v815_v50  ;;  %v1111_v45 = vmul.f32 %v1091_v35, %v927_v31  ;;  %vm946_vm1 = vmor %vm944_vm0, %vm945_vm15 }
 0x1fd   :  { %v937_v47 = vsel %vm936_vm14, %v1398_v48, %v933_v10  ;;  %v940_v62 = vmul.f32 %v1400_v40, %v939_v39  ;;  %v1094_v10 = vsub.f32 %v1777_v38, %v1912_v5  ;;  %v1095_v38 = vsub.f32 %v1784_v46, %v1918_v34 }
 0x1fe   :  { %v1112_v55 = vmul.f32 %v1092_v15, %v937_v47  ;;  %v855_v63 = vmax.f32 %v835_v9, 0.0  ;;  %v1135_v0 = vmul.f32 %v1870_v44, %v1111_v45 }
 0x1ff   :  { %v941_v60 = vmul.f32 0.5, %v940_v62  ;;  %v685_v30 = vpop.xlane.xlu2 %684 }
 0x200   :  { %v1136_v21 = vmul.f32 %v1870_v44, %v1112_v55  ;;  %v875_v61 = vadd.f32 1e-06, %v855_v63  ;;  %v1928_v12 = vmul.f32 0.0078125, %v685_v30  ;;  %v1159_v6 = vadd.f32 %v1878_v53, %v1135_v0  ;;  %v1402_v16 = vpop.eup %1401 }
 0x201   :  { %v942_v29 = vsub.f32 1.5, %v941_v60  ;;  %v745_v23 = vpop.xlane.xlu1 %744  ;;  %v949_v2 = vmul.f32 %v1402_v16, %v874_v4  ;;  %vm955_vm2 = vweird.f32 %v1402_v16 }
 0x202   :  { %v1160_v1 = vadd.f32 %v1878_v53, %v1136_v21  ;;  %1403 = vrsqrt.f32 %v875_v61  ;;  %v816_v48 = vmul.f32 %v1928_v12, %v1928_v12  ;;  %1179 = vst [vmem:[#allocation10 + $0x18] sm:$0xff] %v1159_v6  ;;  %v796_v42 = vmul.f32 0.0078125, %v745_v23  ;;  %vm956_vm4 = vmor %vm954_vm3, %vm955_vm2 }
 0x203   :  { %v943_v51 = vmul.f32 %v1400_v40, %v942_v29  ;;  %v950_v43 = vmul.f32 %v1402_v16, %v949_v2  ;;  %vm964_vm6 = vweird.f32 %v875_v61 }
 0x204   :  { %1180 = vst [vmem:[#allocation10 + $0x20] sm:$0xff] %v1160_v1  ;;  %v836_v20 = vsub.f32 %v796_v42, %v816_v48 }
 0x205   :  { %v947_v8 = vsel %vm946_vm1, %v1400_v40, %v943_v51  ;;  %v951_v35 = vmul.f32 0.5, %v950_v43 }
 0x206   :  { %v1113_v52 = vmul.f32 %v1093_v18, %v947_v8  ;;  %v856_v27 = vmax.f32 %v836_v20, 0.0 }
 0x207   :  { %v687_v26 = vpop.xlane.xlu0 %686  ;;  %v952_v50 = vsub.f32 1.5, %v951_v35 }
 0x208   :  { %v1404_v32 = vpop.eup %1403  ;;  %v1137_v54 = vmul.f32 %v1870_v44, %v1113_v52  ;;  %v1937_v25 = vmul.f32 0.0078125, %v687_v26  ;;  %v876_v11 = vadd.f32 1e-06, %v856_v27  ;;  %v1096_v26 = vsub.f32 %v1791_v59, %v1928_v12 }
 0x209   :  { %v959_v24 = vmul.f32 %v1404_v32, %v875_v61  ;;  %v747_v37 = vpop.xlane.xlu2 %746  ;;  %v953_v58 = vmul.f32 %v1402_v16, %v952_v50  ;;  %vm965_vm5 = vweird.f32 %v1404_v32 }
 0x20a   :  { %v1161_v41 = vadd.f32 %v1878_v53, %v1137_v54  ;;  %v817_v33 = vmul.f32 %v1937_v25, %v1937_v25  ;;  %1405 = vrsqrt.f32 %v876_v11  ;;  %v797_v40 = vmul.f32 0.0078125, %v747_v37  ;;  %vm966_vm7 = vmor %vm964_vm6, %vm965_vm5 }
 0x20b   :  { %v960_v56 = vmul.f32 %v1404_v32, %v959_v24  ;;  %v957_v15 = vsel %vm956_vm4, %v1402_v16, %v953_v58  ;;  %vm974_vm9 = vweird.f32 %v876_v11 }
 0x20c   :  { %1181 = vst [vmem:[#allocation10 + $0x28] sm:$0xff] %v1161_v41  ;;  %v837_v31 = vsub.f32 %v797_v40, %v817_v33  ;;  %v1114_v9 = vmul.f32 %v1094_v10, %v957_v15 }
 0x20d   :  { %v961_v39 = vmul.f32 0.5, %v960_v56 }
 0x20e   :  { %v857_v47 = vmax.f32 %v837_v31, 0.0  ;;  %v1138_v0 = vmul.f32 %v1870_v44, %v1114_v9 }
 0x20f   :  { %v962_v45 = vsub.f32 1.5, %v961_v39  ;;  %v689_v62 = vpop.xlane.xlu1 %688 }
 0x210   :  { %v1944_v55 = vmul.f32 0.0078125, %v689_v62  ;;  %v1406_v63 = vpop.eup %1405  ;;  %v877_v4 = vadd.f32 1e-06, %v857_v47  ;;  %v1162_v6 = vadd.f32 %v1878_v53, %v1138_v0 }
 0x211   :  { %v963_v60 = vmul.f32 %v1404_v32, %v962_v45  ;;  %v749_v30 = vpop.xlane.xlu0 %748  ;;  %v969_v5 = vmul.f32 %v1406_v63, %v876_v11  ;;  %vm975_vm8 = vweird.f32 %v1406_v63  ;;  %v1097_v45 = vsub.f32 %v1798_v3, %v1937_v25 }
 0x212   :  { %v818_v21 = vmul.f32 %v1944_v55, %v1944_v55  ;;  %1407 = vrsqrt.f32 %v877_v4  ;;  %v798_v48 = vmul.f32 0.0078125, %v749_v30  ;;  %1182 = vst [vmem:[#allocation10 + $0x30] sm:$0xff] %v1162_v6  ;;  %vm976_vm10 = vmor %vm974_vm9, %vm975_vm8  ;;  %vm984_vm12 = vweird.f32 %v877_v4 }
 0x213   :  { %v967_v29 = vsel %vm966_vm7, %v1404_v32, %v963_v60  ;;  %v970_v1 = vmul.f32 %v1406_v63, %v969_v5 }
 0x214   :  { %v1115_v23 = vmul.f32 %v1095_v38, %v967_v29  ;;  %v838_v51 = vsub.f32 %v798_v48, %v818_v21 }
 0x215   :  { %v971_v16 = vmul.f32 0.5, %v970_v1 }
 0x216   :  { %v1139_v61 = vmul.f32 %v1870_v44, %v1115_v23  ;;  %v858_v18 = vmax.f32 %v838_v51, 0.0  ;;  %v1098_v51 = vsub.f32 %v1805_v7, %v1944_v55 }
 0x217   :  { %v691_v42 = vpop.xlane.xlu2 %690  ;;  %v972_v34 = vsub.f32 1.5, %v971_v16 }
 0x218   :  { %v1163_v46 = vadd.f32 %v1878_v53, %v1139_v61  ;;  %v1954_v2 = vmul.f32 0.0078125, %v691_v42  ;;  %v1408_v8 = vpop.eup %1407  ;;  %v878_v27 = vadd.f32 1e-06, %v858_v18 }
 0x219   :  { %v751_v20 = vpop.xlane.xlu1 %750  ;;  %v973_v52 = vmul.f32 %v1406_v63, %v972_v34  ;;  %v979_v43 = vmul.f32 %v1408_v8, %v877_v4  ;;  %vm985_vm11 = vweird.f32 %v1408_v8 }
 0x21a   :  { %1183 = vst [vmem:[#allocation10 + $0x38] sm:$0xff] %v1163_v46  ;;  %v819_v32 = vmul.f32 %v1954_v2, %v1954_v2  ;;  %v799_v54 = vmul.f32 0.0078125, %v751_v20  ;;  %1409 = vrsqrt.f32 %v878_v27  ;;  %vm986_vm13 = vmor %vm984_vm12, %vm985_vm11  ;;  %vm994_vm15 = vweird.f32 %v878_v27 }
 0x21b   :  { %v977_v35 = vsel %vm976_vm10, %v1406_v63, %v973_v52  ;;  %v980_v24 = vmul.f32 %v1408_v8, %v979_v43 }
 0x21c   :  { %v1116_v37 = vmul.f32 %v1096_v26, %v977_v35  ;;  %v839_v41 = vsub.f32 %v799_v54, %v819_v32 }
 0x21d   :  { %v981_v50 = vmul.f32 0.5, %v980_v24 }
 0x21e   :  { %v1140_v33 = vmul.f32 %v1870_v44, %v1116_v37  ;;  %v859_v56 = vmax.f32 %v839_v41, 0.0  ;;  %v1099_v41 = vsub.f32 %v1812_v14, %v1954_v2 }
 0x21f   :  { %v693_v11 = vpop.xlane.xlu0 %692  ;;  %v982_v40 = vsub.f32 1.5, %v981_v50 }
 0x220   :  { %v1961_v58 = vmul.f32 0.0078125, %v693_v11  ;;  %v1164_v59 = vadd.f32 %v1878_v53, %v1140_v33  ;;  %v879_v12 = vadd.f32 1e-06, %v859_v56  ;;  %v1410_v39 = vpop.eup %1409 }
 0x221   :  { %v753_v10 = vpop.xlane.xlu2 %752  ;;  %v983_v31 = vmul.f32 %v1408_v8, %v982_v40  ;;  %v989_v47 = vmul.f32 %v1410_v39, %v878_v27  ;;  %vm995_vm14 = vweird.f32 %v1410_v39 }
 0x222   :  { %v820_v15 = vmul.f32 %v1961_v58, %v1961_v58  ;;  %v800_v9 = vmul.f32 0.0078125, %v753_v10  ;;  %1184 = vst [vmem:[#allocation10 + $0x40] sm:$0xff] %v1164_v59  ;;  %1411 = vrsqrt.f32 %v879_v12  ;;  %vm996_vm0 = vmor %vm994_vm15, %vm995_vm14  ;;  %vm1004_vm2 = vweird.f32 %v879_v12 }
 0x223   :  { %v987_v62 = vsel %vm986_vm13, %v1408_v8, %v983_v31  ;;  %v990_v60 = vmul.f32 %v1410_v39, %v989_v47 }
 0x224   :  { %v840_v63 = vsub.f32 %v800_v9, %v820_v15  ;;  %v1117_v0 = vmul.f32 %v1097_v45, %v987_v62  ;;  %v1100_v62 = vsub.f32 %v1819_v19, %v1961_v58 }
 0x225   :  { %v991_v5 = vmul.f32 0.5, %v990_v60 }
 0x226   :  { %v860_v30 = vmax.f32 %v840_v63, 0.0  ;;  %v1141_v38 = vmul.f32 %v1870_v44, %v1117_v0 }
 0x227   :  { %v695_v4 = vpop.xlane.xlu1 %694  ;;  %v992_v1 = vsub.f32 1.5, %v991_v5 }
 0x228   :  { %v880_v21 = vadd.f32 1e-06, %v860_v30  ;;  %v1969_v6 = vmul.f32 0.0078125, %v695_v4  ;;  %v1412_v29 = vpop.eup %1411  ;;  %v1165_v23 = vadd.f32 %v1878_v53, %v1141_v38 }
 0x229   :  { %v755_v3 = vpop.xlane.xlu0 %754  ;;  %v999_v25 = vmul.f32 %v1412_v29, %v879_v12  ;;  %v993_v48 = vmul.f32 %v1410_v39, %v992_v1  ;;  %vm1005_vm1 = vweird.f32 %v1412_v29 }
 0x22a   :  { %1413 = vrsqrt.f32 %v880_v21  ;;  %1185 = vst [vmem:[#allocation10 + $0x48] sm:$0xff] %v1165_v23  ;;  %v821_v61 = vmul.f32 %v1969_v6, %v1969_v6  ;;  %v801_v16 = vmul.f32 0.0078125, %v755_v3  ;;  %vm1006_vm3 = vmor %vm1004_vm2, %vm1005_vm1  ;;  %vm1014_vm5 = vweird.f32 %v880_v21 }
 0x22b   :  { %v1000_v42 = vmul.f32 %v1412_v29, %v999_v25  ;;  %v997_v46 = vsel %vm996_vm0, %v1410_v39, %v993_v48 }
 0x22c   :  { %v841_v34 = vsub.f32 %v801_v16, %v821_v61  ;;  %v1118_v18 = vmul.f32 %v1098_v51, %v997_v46  ;;  %v1101_v46 = vsub.f32 %v1826_v28, %v1969_v6 }
 0x22d   :  { %v1001_v8 = vmul.f32 0.5, %v1000_v42 }
 0x22e   :  { %v861_v20 = vmax.f32 %v841_v34, 0.0  ;;  %v1142_v26 = vmul.f32 %v1870_v44, %v1118_v18 }
 0x22f   :  { %v697_v52 = vpop.xlane.xlu2 %696  ;;  %v1002_v32 = vsub.f32 1.5, %v1001_v8 }
 0x230   :  { %v1414_v43 = vpop.eup %1413  ;;  %v1977_v27 = vmul.f32 0.0078125, %v697_v52  ;;  %v881_v35 = vadd.f32 1e-06, %v861_v20  ;;  %v1166_v7 = vadd.f32 %v1878_v53, %v1142_v26 }
 0x231   :  { %v1009_v54 = vmul.f32 %v1414_v43, %v880_v21  ;;  %v757_v24 = vpop.xlane.xlu1 %756  ;;  %v1003_v55 = vmul.f32 %v1412_v29, %v1002_v32  ;;  %vm1015_vm4 = vweird.f32 %v1414_v43 }
 0x232   :  { %v822_v37 = vmul.f32 %v1977_v27, %v1977_v27  ;;  %1415 = vrsqrt.f32 %v881_v35  ;;  %v802_v33 = vmul.f32 0.0078125, %v757_v24  ;;  %1186 = vst [vmem:[#allocation10 + $0x50] sm:$0xff] %v1166_v7  ;;  %vm1016_vm6 = vmor %vm1014_vm5, %vm1015_vm4  ;;  %vm1024_vm8 = vweird.f32 %v881_v35 }
 0x233   :  { %v1010_v50 = vmul.f32 %v1414_v43, %v1009_v54  ;;  %v1007_v56 = vsel %vm1006_vm3, %v1412_v29, %v1003_v55  ;;  %v1102_v6 = vsub.f32 %v1833_v36, %v1977_v27 }
 0x234   :  { %v1119_v11 = vmul.f32 %v1099_v41, %v1007_v56  ;;  %v842_v59 = vsub.f32 %v802_v33, %v822_v37 }
 0x235   :  { %v1011_v40 = vmul.f32 0.5, %v1010_v50 }
 0x236   :  { %v1143_v10 = vmul.f32 %v1870_v44, %v1119_v11  ;;  %v862_v12 = vmax.f32 %v842_v59, 0.0 }
 0x237   :  { %v1012_v39 = vsub.f32 1.5, %v1011_v40  ;;  %v699_v31 = vpop.xlane.xlu0 %698 }
 0x238   :  { %v1985_v15 = vmul.f32 0.0078125, %v699_v31  ;;  %v1416_v9 = vpop.eup %1415  ;;  %v1167_v14 = vadd.f32 %v1878_v53, %v1143_v10  ;;  %v882_v45 = vadd.f32 1e-06, %v862_v12 }
 0x239   :  { %v1013_v2 = vmul.f32 %v1414_v43, %v1012_v39  ;;  %v759_v47 = vpop.xlane.xlu2 %758  ;;  %v1019_v63 = vmul.f32 %v1416_v9, %v881_v35  ;;  %vm1025_vm7 = vweird.f32 %v1416_v9 }
 0x23a   :  { %v823_v0 = vmul.f32 %v1985_v15, %v1985_v15  ;;  %1187 = vst [vmem:[#allocation10 + $0x58] sm:$0xff] %v1167_v14  ;;  %1417 = vrsqrt.f32 %v882_v45  ;;  %v803_v30 = vmul.f32 0.0078125, %v759_v47  ;;  %vm1026_vm9 = vmor %vm1024_vm8, %vm1025_vm7  ;;  %vm1034_vm11 = vweird.f32 %v882_v45 }
 0x23b   :  { %v1017_v60 = vsel %vm1016_vm6, %v1414_v43, %v1013_v2  ;;  %v1020_v5 = vmul.f32 %v1416_v9, %v1019_v63  ;;  %v1103_v14 = vsub.f32 %v1840_v49, %v1985_v15 }
 0x23c   :  { %v1120_v38 = vmul.f32 %v1100_v62, %v1017_v60  ;;  %v843_v4 = vsub.f32 %v803_v30, %v823_v0 }
 0x23d   :  { %v1021_v21 = vmul.f32 0.5, %v1020_v5 }
 0x23e   :  { %v1144_v29 = vmul.f32 %v1870_v44, %v1120_v38  ;;  %v863_v23 = vmax.f32 %v843_v4, 0.0 }
 0x23f   :  { %v701_v1 = vpop.xlane.xlu1 %700  ;;  %v1022_v19 = vsub.f32 1.5, %v1021_v21 }
 0x240   :  { %v1168_v3 = vadd.f32 %v1878_v53, %v1144_v29  ;;  %v1994_v58 = vmul.f32 0.0078125, %v701_v1  ;;  %v1418_v25 = vpop.eup %1417  ;;  %v883_v48 = vadd.f32 1e-06, %v863_v23 }
 0x241   :  { %v761_v61 = vpop.xlane.xlu0 %760  ;;  %v1023_v16 = vmul.f32 %v1416_v9, %v1022_v19  ;;  %v1029_v51 = vmul.f32 %v1418_v25, %v882_v45  ;;  %vm1035_vm10 = vweird.f32 %v1418_v25 }
 0x242   :  { %1188 = vst [vmem:[#allocation10 + $0x60] sm:$0xff] %v1168_v3  ;;  %v824_v42 = vmul.f32 %v1994_v58, %v1994_v58  ;;  %1419 = vrsqrt.f32 %v883_v48  ;;  %v804_v34 = vmul.f32 0.0078125, %v761_v61  ;;  %vm1036_vm12 = vmor %vm1034_vm11, %vm1035_vm10  ;;  %vm1044_vm14 = vweird.f32 %v883_v48 }
 0x243   :  { %v1027_v18 = vsel %vm1026_vm9, %v1416_v9, %v1023_v16  ;;  %v1030_v8 = vmul.f32 %v1418_v25, %v1029_v51  ;;  %v1104_v3 = vsub.f32 %v1847_v22, %v1994_v58 }
 0x244   :  { %v1121_v20 = vmul.f32 %v1101_v46, %v1027_v18  ;;  %v844_v52 = vsub.f32 %v804_v34, %v824_v42 }
 0x245   :  { %v1031_v43 = vmul.f32 0.5, %v1030_v8 }
 0x246   :  { %v1145_v26 = vmul.f32 %v1870_v44, %v1121_v20  ;;  %v864_v32 = vmax.f32 %v844_v52, 0.0 }
 0x247   :  { %v1032_v54 = vsub.f32 1.5, %v1031_v43  ;;  %v703_v55 = vpop.xlane.xlu2 %702 }
 0x248   :  { %v1420_v35 = vpop.eup %1419  ;;  %v1169_v24 = vadd.f32 %v1878_v53, %v1145_v26  ;;  %v884_v7 = vadd.f32 1e-06, %v864_v32  ;;  %v785_v61 = vmul.f32 0.0078125, %v703_v55 }
 0x249   :  { %v1033_v37 = vmul.f32 %v1418_v25, %v1032_v54  ;;  %v1039_v28 = vmul.f32 %v1420_v35, %v883_v48  ;;  %vm1045_vm13 = vweird.f32 %v1420_v35 }
 0x24a   :  { %1189 = vst [vmem:[#allocation10 + $0x68] sm:$0xff] %v1169_v24  ;;  %1421 = vrsqrt.f32 %v884_v7  ;;  %vm1046_vm15 = vmor %vm1044_vm14, %vm1045_vm13  ;;  %vm1054_vm1 = vweird.f32 %v884_v7  ;;  %v825_v20 = vmul.f32 %v785_v61, %v785_v61 }
 0x24b   :  { %v1037_v41 = vsel %vm1036_vm12, %v1418_v25, %v1033_v37  ;;  %v1040_v50 = vmul.f32 %v1420_v35, %v1039_v28 }
 0x24c   :  { %v1122_v33 = vmul.f32 %v1102_v6, %v1037_v41 }
 0x24d   :  { %v1041_v56 = vmul.f32 0.5, %v1040_v50 }
 0x24e   :  { %v1146_v11 = vmul.f32 %v1870_v44, %v1122_v33 }
 0x24f   :  { %v705_v40 = vpop.xlane.xlu0 %704  ;;  %v1042_v59 = vsub.f32 1.5, %v1041_v56 }
 0x250   :  { %v2005_v10 = vmul.f32 0.0078125, %v705_v40  ;;  %v1422_v39 = vpop.eup %1421  ;;  %v1170_v12 = vadd.f32 %v1878_v53, %v1146_v11 }
 0x251   :  { %v765_v31 = vpop.xlane.xlu2 %764  ;;  %v1043_v9 = vmul.f32 %v1420_v35, %v1042_v59  ;;  %v1049_v36 = vmul.f32 %v1422_v39, %v884_v7  ;;  %vm1055_vm0 = vweird.f32 %v1422_v39 }
 0x252   :  { %v826_v27 = vmul.f32 %v2005_v10, %v2005_v10  ;;  %1190 = vst [vmem:[#allocation10 + $0x70] sm:$0xff] %v1170_v12  ;;  %v806_v2 = vmul.f32 0.0078125, %v765_v31  ;;  %vm1056_vm2 = vmor %vm1054_vm1, %vm1055_vm0  ;;  %v1106_v55 = vsub.f32 %v1873_v57, %v2005_v10 }
 0x253   :  { %v1047_v45 = vsel %vm1046_vm15, %v1420_v35, %v1043_v9  ;;  %v1050_v47 = vmul.f32 %v1422_v39, %v1049_v36 }
 0x254   :  { %v1123_v62 = vmul.f32 %v1103_v14, %v1047_v45  ;;  %v846_v63 = vsub.f32 %v806_v2, %v826_v27  ;;  %v1105_v2 = vsub.f32 %v1858_v17, %v785_v61 }
 0x255   :  { %v1051_v0 = vmul.f32 0.5, %v1050_v47 }
 0x256   :  { %v1147_v60 = vmul.f32 %v1870_v44, %v1123_v62  ;;  %v866_v30 = vmax.f32 %v846_v63, 0.0 }
 0x257   :  { %v707_v38 = vpop.xlane.xlu1 %706  ;;  %v1052_v5 = vsub.f32 1.5, %v1051_v0 }
 0x258   :  { %v787_v4 = vmul.f32 0.0078125, %v707_v38  ;;  %v1171_v29 = vadd.f32 %v1878_v53, %v1147_v60  ;;  %v886_v21 = vadd.f32 1e-06, %v866_v30 }
 0x259   :  { %v767_v23 = vpop.xlane.xlu0 %766  ;;  %v1053_v1 = vmul.f32 %v1422_v39, %v1052_v5 }
 0x25a   :  { %v827_v49 = vmul.f32 %v787_v4, %v787_v4  ;;  %v807_v15 = vmul.f32 0.0078125, %v767_v23  ;;  %1191 = vst [vmem:[#allocation10 + $0x78] sm:$0xff] %v1171_v29  ;;  %1423 = vrsqrt.f32 %v886_v21  ;;  %vm1074_vm4 = vweird.f32 %v886_v21 }
 0x25b   :  { %v1057_v19 = vsel %vm1056_vm2, %v1422_v39, %v1053_v1  ;;  %v1107_v39 = vsub.f32 %v1889_v13, %v787_v4 }
 0x25c   :  { %v847_v25 = vsub.f32 %v807_v15, %v827_v49  ;;  %v1124_v48 = vmul.f32 %v1104_v3, %v1057_v19 }
 0x25e   :  { %v867_v16 = vmax.f32 %v847_v25, 0.0  ;;  %v1148_v51 = vmul.f32 %v1870_v44, %v1124_v48 }
 0x25f   :  { %v763_v42 = vpop.xlane.xlu1 %762 }
 0x260   :  { %v887_v46 = vadd.f32 1e-06, %v867_v16  ;;  %v805_v34 = vmul.f32 0.0078125, %v763_v42  ;;  %v1424_v18 = vpop.eup %1423  ;;  %v1172_v8 = vadd.f32 %v1878_v53, %v1148_v51 }
 0x261   :  { %v1069_v52 = vmul.f32 %v1424_v18, %v886_v21  ;;  %vm1075_vm3 = vweird.f32 %v1424_v18 }
 0x262   :  { %1425 = vrsqrt.f32 %v887_v46  ;;  %1192 = vst [vmem:[#allocation10 + $0x80] sm:$0xff] %v1172_v8  ;;  %v845_v22 = vsub.f32 %v805_v34, %v825_v20  ;;  %vm1076_vm5 = vmor %vm1074_vm4, %vm1075_vm3  ;;  %vm1084_vm7 = vweird.f32 %v887_v46 }
 0x263   :  { %v1070_v58 = vmul.f32 %v1424_v18, %v1069_v52 }
 0x264   :  { %v865_v43 = vmax.f32 %v845_v22, 0.0 }
 0x265   :  { %v1071_v26 = vmul.f32 0.5, %v1070_v58 }
 0x266   :  { %v885_v32 = vadd.f32 1e-06, %v865_v43 }
 0x267   :  { %v1072_v35 = vsub.f32 1.5, %v1071_v26 }
 0x268   :  { %v1426_v54 = vpop.eup %1425  ;;  %1427 = vrsqrt.f32 %v885_v32  ;;  %vm1064_vm10 = vweird.f32 %v885_v32 }
 0x269   :  { %v1079_v24 = vmul.f32 %v1426_v54, %v887_v46  ;;  %v1073_v7 = vmul.f32 %v1424_v18, %v1072_v35  ;;  %vm1085_vm6 = vweird.f32 %v1426_v54 }
 0x26a   :  { %vm1086_vm8 = vmor %vm1084_vm7, %vm1085_vm6 }
 0x26b   :  { %v1080_v37 = vmul.f32 %v1426_v54, %v1079_v24  ;;  %v1077_v28 = vsel %vm1076_vm5, %v1424_v18, %v1073_v7 }
 0x26c   :  { %v1126_v6 = vmul.f32 %v1106_v55, %v1077_v28 }
 0x26d   :  { %v1081_v41 = vmul.f32 0.5, %v1080_v37 }
 0x26e   :  { %v1428_v50 = vpop.eup %1427  ;;  %v1150_v33 = vmul.f32 %v1870_v44, %v1126_v6 }
 0x26f   :  { %v1082_v56 = vsub.f32 1.5, %v1081_v41  ;;  %v1059_v11 = vmul.f32 %v1428_v50, %v885_v32  ;;  %vm1065_vm9 = vweird.f32 %v1428_v50 }
 0x270   :  { %v1174_v40 = vadd.f32 %v1878_v53, %v1150_v33  ;;  %vm1066_vm11 = vmor %vm1064_vm10, %vm1065_vm9 }
 0x271   :  { %v1083_v59 = vmul.f32 %v1426_v54, %v1082_v56  ;;  %v1060_v12 = vmul.f32 %v1428_v50, %v1059_v11 }
 0x272   :  { %1194 = vst [vmem:[#allocation10 + $0x90] sm:$0xff] %v1174_v40 }
 0x273   :  { %v1087_v57 = vsel %vm1086_vm8, %v1426_v54, %v1083_v59  ;;  %v1061_v31 = vmul.f32 0.5, %v1060_v12 }
 0x274   :  { %v1127_v10 = vmul.f32 %v1107_v39, %v1087_v57 }
 0x275   :  { %v1062_v36 = vsub.f32 1.5, %v1061_v31 }
 0x276   :  { %v1151_v9 = vmul.f32 %v1870_v44, %v1127_v10 }
 0x277   :  { %v1063_v14 = vmul.f32 %v1428_v50, %v1062_v36 }
 0x278   :  { %v1175_v27 = vadd.f32 %v1878_v53, %v1151_v9 }
 0x279   :  { %v1067_v45 = vsel %vm1066_vm11, %v1428_v50, %v1063_v14 }
 0x27a   :  { %1195 = vst [vmem:[#allocation10 + $0x98] sm:$0xff] %v1175_v27  ;;  %v1125_v13 = vmul.f32 %v1105_v2, %v1067_v45 }
 0x27c   :  { %v1149_v47 = vmul.f32 %v1870_v44, %v1125_v13 }
 0x27e   :  { %v1173_v62 = vadd.f32 %v1878_v53, %v1149_v47 }
 0x280   :  { %1193 = vst [vmem:[#allocation10 + $0x88] sm:$0xff] %v1173_v62 }
 0x281   :  { %1208 = dma.vmem_to_hbm [thread:$0]  %s1201_s6, 2560, %s1203_s28, [#allocation4], %s1558_s9, %s1558_s9, %s1559_s10  }
 0x282   :  { %1555 = dma.done.wait [#allocation4], 2560  }
 0x283   :  { %1556 = vsyncadd [#allocation4], 4294964736 }
 0x284   :  { %1213 = vsyncpa [#allocation3], 1 }
 0x285   :  { %1214 = vsyncpa [#allocation6], 1 }
 0x286   :  { %1215 = vsyncpa [#allocation9], 1 }
 0x287   :  { %1216 = vsyncpa [#allocation4], 1 }

</bundles_post_ra>
